<compile_context>
chip_gen: v5e
topology: v5e:2x2
jax: 0.10.0
libtpu: 0.0.40
codegen_flags: <defaults>
</compile_context>

<pallas_src>
import functools

import jax
import jax.numpy as jnp
import numpy as np
from jax.experimental import pallas as pl
from jax.experimental.pallas import tpu as pltpu


def _round_up(v, m):
    return ((v + m - 1) // m) * m


def _mamba_block_kernel(x_ref, lnw_ref, lnb_ref, win_ref, bin_ref,
                        ktap_ref, cpow_ref, bpow_ref, abarc_ref,
                        convw_ref, convb_ref, wout_ref, bout_ref,
                        y_ref, st_ref,
                        xpad_ref, convpad_ref, h_ref,
                        *, d_model, tap_dtype):
    f32 = jnp.float32
    BT, C, DP = x_ref.shape
    N, DIP = abarc_ref.shape
    K = convw_ref.shape[0]
    H = C // 2
    chunk = pl.program_id(1)
    last_chunk = pl.num_programs(1) - 1

    # ---------------- LayerNorm (eps=1e-5, padded lanes stay exactly zero) ---
    x2 = x_ref[...].reshape(BT * C, DP)
    inv_d = 1.0 / float(d_model)
    s1 = jnp.sum(x2, axis=-1, keepdims=True)            # padded lanes are zero
    s2 = jnp.sum(x2 * x2, axis=-1, keepdims=True)
    mean = s1 * inv_d
    var = jnp.maximum(s2 * inv_d - mean * mean, 0.0)
    xn = (x2 - mean) * jax.lax.rsqrt(var + 1e-5) * lnw_ref[...] + lnb_ref[...]

    # ---------------- proj_in: one MXU matmul over BT*C rows -----------------
    xin = jnp.dot(xn.astype(jnp.bfloat16), win_ref[...],
                  preferred_element_type=f32) + bin_ref[...]
    xin3 = xin.reshape(BT, C, DIP)

    # ---------------- per-batch-block init / cross-chunk carries -------------
    @pl.when(chunk == 0)
    def _init():
        h_ref[...] = jnp.zeros_like(h_ref)
        # zero prefixes only once per batch block (never overwritten later)
        xpad_ref[:, pl.ds(0, H), :] = jnp.zeros((BT, H, DIP), tap_dtype)
        convpad_ref[:, pl.ds(0, 8), :] = jnp.zeros((BT, 8, DIP), tap_dtype)

    @pl.when(chunk > 0)
    def _carry_conv_tail():
        # last K-1 inputs of the previous chunk feed the causal conv prefix
        tail = convpad_ref[:, pl.ds(8 + C - (K - 1), K - 1), :]
        convpad_ref[:, pl.ds(8 - (K - 1), K - 1), :] = tail

    h_prev = h_ref[...]                                   # (BT, N, DIP) f32

    xin_t = xin3.astype(tap_dtype)
    xpad_ref[:, pl.ds(H, C), :] = xin_t                   # zero-prefixed (SSM)
    convpad_ref[:, pl.ds(8, C), :] = xin_t                # tail-prefixed (conv)

    # ---------------- SSM: cross-chunk contribution of the carried state -----
    # y_cross[b,t,d] = sum_n c_n * Abar^{t+1} * h_prev[b,n,d]
    ktap = ktap_ref[...]                                  # (C, DIP)
    cpow = cpow_ref[...]                                  # (C, N, DIP)
    kt0 = jax.lax.slice_in_dim(ktap, 0, 1, axis=0)[None]  # tau=0 tap (+D skip)
    y = kt0 * xin3
    for n in range(N):
        y = y + cpow[:, n, :][None, :, :] * h_prev[:, n, :][:, None, :]

    # ---------------- SSM: intra-chunk correlation (triangle blocked) --------
    for tau in range(1, H):
        kt = jax.lax.slice_in_dim(ktap, tau, tau + 1, axis=0)[None]
        y = y + kt * xpad_ref[:, pl.ds(H - tau, C), :].astype(f32)
    y_hi = y[:, H:, :]
    for tau in range(H, C):                               # lower half is all-zero
        kt = jax.lax.slice_in_dim(ktap, tau, tau + 1, axis=0)[None]
        y_hi = y_hi + kt * xpad_ref[:, pl.ds(2 * H - tau, H), :].astype(f32)
    yssm = jnp.concatenate([y[:, :H, :], y_hi], axis=1)   # (BT, C, DIP)

    # ---------------- SSM: state update across the chunk ---------------------
    bpow = bpow_ref[...]                                  # (C, N, DIP)
    h_acc = abarc_ref[...][None] * h_prev
    for tau in range(C):
        h_acc = h_acc + bpow[tau][None] * xin3[:, C - 1 - tau, :][:, None, :]
    h_ref[...] = h_acc

    @pl.when(chunk == last_chunk)
    def _finalize_state():
        st_ref[...] = h_acc                               # h[L-1]

    # ---------------- depthwise causal conv + SiLU (ConvBlock) ---------------
    convw = convw_ref[...]                                # (K, DIP)
    conv = None
    for k in range(K):
        shift = K - 1 - k
        wk = jax.lax.slice_in_dim(convw, k, k + 1, axis=0)[None]
        term = wk * convpad_ref[:, pl.ds(8 - shift, C), :].astype(f32)
        conv = term if conv is None else conv + term
    conv = conv + convb_ref[...]
    conv = conv * jax.nn.sigmoid(conv)                    # SiLU inside ConvBlock

    # ---------------- gate, proj_out, residual --------------------------------
    # sigmoid on top of the SiLU'd conv output, exactly as the PyTorch module.
    gated = yssm * jax.nn.sigmoid(conv)
    out = jnp.dot(gated.reshape(BT * C, DIP).astype(jnp.bfloat16), wout_ref[...],
                  preferred_element_type=f32) + bout_ref[...]
    # residual: re-read x_ref (already VMEM-resident) -> no long f32 live range
    y_ref[...] = out.reshape(BT, C, DP) + x_ref[...]


def parallel_mamba_block(x, params, *, block_batch=None, chunk=None,
                         tap_dtype=jnp.float32):
    B, L, D = x.shape
    DI = params["win"].shape[1]
    N = params["abar"].shape[0]
    K = params["convw"].shape[0]

    C = L if chunk is None else chunk
    BT = B if block_batch is None else block_batch
    assert B % BT == 0, "batch must tile"
    assert L % C == 0, "sequence must tile into chunks"
    assert C % 16 == 0, "chunk must be a multiple of 16 (8-aligned halves)"
    assert N % 8 == 0, "SSM state dim must be sublane aligned"
    assert K - 1 <= 8, "conv prefix holds at most 8 carried rows"
    H = C // 2

    DP = _round_up(D, 128)          # lane-dense padded d_model
    DIP = _round_up(DI, 128)        # lane-dense padded d_inner

    f32, bf16 = jnp.float32, jnp.bfloat16

    # ------------- host-side precompute of SSM tap / power coefficients ------
    abar = params["abar"].astype(f32)                     # (N, DI)
    bcol = params["bcol"].astype(f32)                     # (N, 1)
    ccol = params["ccol"].astype(f32)                     # (N, 1)
    taus = jnp.arange(C, dtype=f32)[:, None, None]
    apow = abar[None] ** taus                             # (C, N, DI) = Abar^t
    ktap = jnp.sum((ccol * bcol)[None] * apow, axis=1)    # (C, DI)
    ktap = ktap.at[0].add(params["dskip"].astype(f32)[0])  # fold D skip into tau=0
    cpow = ccol[None] * abar[None] * apow                 # (C, N, DI) = c*Abar^{t+1}
    bpow = bcol[None] * apow                              # (C, N, DI) = b*Abar^{t}
    abarC = abar ** C                                     # (N, DI)

    def padto(a, targets, dtype=f32):
        a = a.astype(f32)
        pads = [(0, t - s) for s, t in zip(a.shape, targets)]
        return jnp.pad(a, pads).astype(dtype)

    xp = x.astype(f32) if DP == D else jnp.pad(
        x.astype(f32), ((0, 0), (0, 0), (0, DP - D)))
    lnw = padto(params["lnw"], (1, DP))
    lnb = padto(params["lnb"], (1, DP))
    win = padto(params["win"], (DP, DIP), bf16)
    bin_ = padto(params["bin"], (1, DIP))
    ktap_p = padto(ktap, (C, DIP))
    cpow_p = padto(cpow, (C, N, DIP))
    bpow_p = padto(bpow, (C, N, DIP))
    abarC_p = padto(abarC, (N, DIP))
    convw = padto(params["convw"], (K, DIP))
    convb = padto(params["convb"], (1, DIP))
    wout = padto(params["wout"], (DIP, DP), bf16)
    bout = padto(params["bout"], (1, DP))

    kernel = functools.partial(_mamba_block_kernel, d_model=D,
                               tap_dtype=tap_dtype)

    # Constant-index weights: single-buffered (Buffered(1)) to halve residency.
    def rep(shape):
        nd = len(shape)
        imap = lambda b, c, _nd=nd: (0,) * _nd
        try:
            return pl.BlockSpec(shape, imap, pipeline_mode=pl.Buffered(1))
        except (TypeError, AttributeError):
            return pl.BlockSpec(shape, imap)

    in_specs = [
        pl.BlockSpec((BT, C, DP), lambda b, c: (b, c, 0)),      # x (dbl-buffered)
        rep((1, DP)), rep((1, DP)),                             # layernorm w, b
        rep((DP, DIP)), rep((1, DIP)),                          # proj_in W(bf16), b
        rep((C, DIP)),                                          # ktap
        rep((C, N, DIP)), rep((C, N, DIP)),                     # cpow, bpow
        rep((N, DIP)),                                          # Abar^C
        rep((K, DIP)), rep((1, DIP)),                           # conv W, b
        rep((DIP, DP)), rep((1, DP)),                           # proj_out W(bf16), b
    ]
    out_specs = (
        pl.BlockSpec((BT, C, DP), lambda b, c: (b, c, 0)),      # y tile
        pl.BlockSpec((BT, N, DIP), lambda b, c: (b, 0, 0)),     # final state
    )
    out_shape = (
        jax.ShapeDtypeStruct((B, L, DP), f32),
        jax.ShapeDtypeStruct((B, N, DIP), f32),
    )

    # ------------- explicit VMEM budget (review: mandatory for v7x 64 MiB) ---
    def nbytes(shape, dt):
        return int(np.prod(shape)) * int(np.dtype(dt).itemsize)
    tb = np.dtype(tap_dtype).itemsize
    est = 0
    est += 2 * nbytes((BT, C, DP), f32) * 2                 # x + y tiles, dbl buf
    est += 2 * nbytes((BT, N, DIP), f32)                    # state output
    est += nbytes((DP, DIP), bf16) + nbytes((DIP, DP), bf16)  # projections x1
    est += 2 * nbytes((C, N, DIP), f32)                     # cpow + bpow
    est += nbytes((C, DIP), f32) + nbytes((N, DIP), f32)    # ktap + Abar^C
    est += nbytes((K, DIP), f32) + 3 * nbytes((1, DIP), f32) + 3 * nbytes((1, DP), f32)
    est += (BT * (H + C) * DIP + BT * (8 + C) * DIP) * tb   # padded scratches
    est += nbytes((BT, N, DIP), f32)                        # h scratch
    est += 6 * nbytes((BT, C, DIP), f32)                    # live intermediates
    vmem_limit = int(min(64 << 20, max(32 << 20, int(1.5 * est) + (2 << 20))))

    fn = pl.pallas_call(
        kernel,
        out_shape=out_shape,
        grid_spec=pltpu.PrefetchScalarGridSpec(
            num_scalar_prefetch=0,
            grid=(B // BT, L // C),
            in_specs=in_specs,
            out_specs=out_specs,
            scratch_shapes=[
                pltpu.VMEM((BT, H + C, DIP), tap_dtype),    # zero-prefixed x (SSM)
                pltpu.VMEM((BT, 8 + C, DIP), tap_dtype),    # tail-prefixed x (conv)
                pltpu.VMEM((BT, N, DIP), f32),              # carried SSM state
            ]),
        compiler_params=pltpu.CompilerParams(
            dimension_semantics=("parallel", "arbitrary"),
            vmem_limit_bytes=vmem_limit),
    )
    y_pad, st_pad = fn(xp, lnw, lnb, win, bin_, ktap_p, cpow_p, bpow_p,
                       abarC_p, convw, convb, wout, bout)
    y = y_pad if DP == D else y_pad[:, :, :D]
    st = st_pad if DIP == DI else st_pad[:, :, :DI]
    return y, st


def reference(x, p):
    """Pure-JAX reference: f32 recurrence SSM, bf16 matmul operands (matching
    the kernel's MXU numerics), f32 everywhere else."""
    B, L, D = x.shape
    K = p["convw"].shape[0]
    mean = x.mean(-1, keepdims=True)
    var = jnp.maximum((x * x).mean(-1, keepdims=True) - mean * mean, 0.0)
    xn = (x - mean) * jax.lax.rsqrt(var + 1e-5) * p["lnw"][0] + p["lnb"][0]
    xin = jnp.dot(xn.astype(jnp.bfloat16), p["win"].astype(jnp.bfloat16),
                  preferred_element_type=jnp.float32) + p["bin"][0]

    def step(h, xt):                       # h: (B, N, DI), xt: (B, DI)
        h = p["abar"][None] * h + p["bcol"][None] * xt[:, None, :]
        y = jnp.sum(p["ccol"][None] * h, axis=1) + p["dskip"][0] * xt
        return h, y

    h0 = jnp.zeros((B, p["abar"].shape[0], p["win"].shape[1]), jnp.float32)
    hF, ys = jax.lax.scan(step, h0, jnp.swapaxes(xin, 0, 1))
    yssm = jnp.swapaxes(ys, 0, 1)

    conv = jnp.zeros_like(xin) + p["convb"][0]
    for k in range(K):
        shift = K - 1 - k
        xs = xin if shift == 0 else jnp.pad(xin, ((0, 0), (shift, 0), (0, 0)))[:, :L, :]
        conv = conv + xs * p["convw"][k][None, None, :]
    conv = conv * jax.nn.sigmoid(conv)

    gated = yssm * jax.nn.sigmoid(conv)
    out = jnp.dot(gated.astype(jnp.bfloat16), p["wout"].astype(jnp.bfloat16),
                  preferred_element_type=jnp.float32) + p["bout"][0] + x
    return out, hF


if __name__ == "__main__":
    # Small demo shapes; production sizing should pick BT*C >= 256 matmul rows
    # and C in [64, 128] so both MXU utilization and VMEM stay healthy.
    B, L, D = 4, 32, 32          # batch, sequence, d_model
    expand = 2
    DI = expand * D              # d_inner = 64
    N = 16                       # SSM state size
    K = 4                        # conv kernel size

    key = jax.random.PRNGKey(0)
    ks = jax.random.split(key, 10)
    x = jax.random.normal(ks[0], (B, L, D), jnp.float32)

    params = dict(
        lnw=jnp.ones((1, D), jnp.float32),
        lnb=jnp.zeros((1, D), jnp.float32),
        win=0.1 * jax.random.normal(ks[1], (D, DI), jnp.float32),
        bin=0.02 * jax.random.normal(ks[2], (1, DI), jnp.float32),
        abar=jnp.exp(-jnp.exp(0.5 * jax.random.normal(ks[3], (N, DI), jnp.float32))),
        bcol=0.5 * jax.random.normal(ks[4], (N, 1), jnp.float32),
        ccol=0.5 * jax.random.normal(ks[5], (N, 1), jnp.float32),
        dskip=0.1 * jax.random.normal(ks[6], (1, DI), jnp.float32),
        convw=0.2 * jax.random.normal(ks[7], (K, DI), jnp.float32),
        convb=0.02 * jax.random.normal(ks[8], (1, DI), jnp.float32),
        wout=0.1 * jax.random.normal(ks[9], (DI, D), jnp.float32),
        bout=jnp.zeros((1, D), jnp.float32),
    )

    # grid = (2, 2): batch-parallel (even, feeds both v7x TCs) x 2 seq chunks
    # ("arbitrary") carrying the SSM state / conv tail across chunks.
    y, state = parallel_mamba_block(x, params, block_batch=2, chunk=16)
    jax.block_until_ready((y, state))

    y_ref, state_ref = reference(x, params)
    assert y.shape == (B, L, D) and state.shape == (B, N, DI)
    np.testing.assert_allclose(np.asarray(y), np.asarray(y_ref), atol=3e-3, rtol=3e-3)
    np.testing.assert_allclose(np.asarray(state), np.asarray(state_ref), atol=3e-3, rtol=3e-3)
    print("KERNEL_OK")
</pallas_src>

<mosaic_0001>
module attributes {stable_mosaic.version = 11 : i64} {
  func.func @_mamba_block_kernel(%arg0: i32, %arg1: i32, %arg2: memref<2x16x128xf32, #tpu.memory_space<vmem>>, %arg3: memref<1x128xf32, #tpu.memory_space<vmem>>, %arg4: memref<1x128xf32, #tpu.memory_space<vmem>>, %arg5: memref<128x128xbf16, #tpu.memory_space<vmem>>, %arg6: memref<1x128xf32, #tpu.memory_space<vmem>>, %arg7: memref<16x128xf32, #tpu.memory_space<vmem>>, %arg8: memref<16x16x128xf32, #tpu.memory_space<vmem>>, %arg9: memref<16x16x128xf32, #tpu.memory_space<vmem>>, %arg10: memref<16x128xf32, #tpu.memory_space<vmem>>, %arg11: memref<4x128xf32, #tpu.memory_space<vmem>>, %arg12: memref<1x128xf32, #tpu.memory_space<vmem>>, %arg13: memref<128x128xbf16, #tpu.memory_space<vmem>>, %arg14: memref<1x128xf32, #tpu.memory_space<vmem>>, %arg15: memref<2x16x128xf32, #tpu.memory_space<vmem>>, %arg16: memref<2x16x128xf32, #tpu.memory_space<vmem>>, %arg17: memref<2x24x128xf32, #tpu.memory_space<vmem>>, %arg18: memref<2x24x128xf32, #tpu.memory_space<vmem>>, %arg19: memref<2x16x128xf32, #tpu.memory_space<vmem>>) attributes {dimension_semantics = [#tpu.dimension_semantics<parallel>, #tpu.dimension_semantics<arbitrary>], iteration_bounds = array<i64: 2, 2>, scalar_prefetch = 0 : i64, scratch_operands = 3 : i64, tpu.core_type = #tpu.core_type<tc>, window_params = [{transform_indices = @transform_0, window_bounds = array<i64: 2, 16, 128>}, {pipeline_mode = #tpu.pipeline_mode<synchronous>, transform_indices = @transform_1, window_bounds = array<i64: 1, 128>}, {pipeline_mode = #tpu.pipeline_mode<synchronous>, transform_indices = @transform_2, window_bounds = array<i64: 1, 128>}, {pipeline_mode = #tpu.pipeline_mode<synchronous>, transform_indices = @transform_3, window_bounds = array<i64: 128, 128>}, {pipeline_mode = #tpu.pipeline_mode<synchronous>, transform_indices = @transform_4, window_bounds = array<i64: 1, 128>}, {pipeline_mode = #tpu.pipeline_mode<synchronous>, transform_indices = @transform_5, window_bounds = array<i64: 16, 128>}, {pipeline_mode = #tpu.pipeline_mode<synchronous>, transform_indices = @transform_6, window_bounds = array<i64: 16, 16, 128>}, {pipeline_mode = #tpu.pipeline_mode<synchronous>, transform_indices = @transform_7, window_bounds = array<i64: 16, 16, 128>}, {pipeline_mode = #tpu.pipeline_mode<synchronous>, transform_indices = @transform_8, window_bounds = array<i64: 16, 128>}, {pipeline_mode = #tpu.pipeline_mode<synchronous>, transform_indices = @transform_9, window_bounds = array<i64: 4, 128>}, {pipeline_mode = #tpu.pipeline_mode<synchronous>, transform_indices = @transform_10, window_bounds = array<i64: 1, 128>}, {pipeline_mode = #tpu.pipeline_mode<synchronous>, transform_indices = @transform_11, window_bounds = array<i64: 128, 128>}, {pipeline_mode = #tpu.pipeline_mode<synchronous>, transform_indices = @transform_12, window_bounds = array<i64: 1, 128>}, {transform_indices = @transform_13, window_bounds = array<i64: 2, 16, 128>}, {transform_indices = @transform_14, window_bounds = array<i64: 2, 16, 128>}]} {
    %c0 = arith.constant 0 : index
    %c0_0 = arith.constant 0 : index
    %c0_1 = arith.constant 0 : index
    %0 = vector.load %arg2[%c0, %c0_0, %c0_1] : memref<2x16x128xf32, #tpu.memory_space<vmem>>, vector<2x16x128xf32>
    %1 = vector.shape_cast %0 : vector<2x16x128xf32> to vector<32x128xf32>
    %cst = arith.constant dense<0.000000e+00> : vector<32xf32>
    %2 = vector.multi_reduction <add>, %1, %cst [1] : vector<32x128xf32> to vector<32xf32>
    %3 = vector.shape_cast %2 : vector<32xf32> to vector<32x1xf32>
    %4 = arith.mulf %1, %1 : vector<32x128xf32>
    %cst_2 = arith.constant dense<0.000000e+00> : vector<32xf32>
    %5 = vector.multi_reduction <add>, %4, %cst_2 [1] : vector<32x128xf32> to vector<32xf32>
    %6 = vector.shape_cast %5 : vector<32xf32> to vector<32x1xf32>
    %cst_3 = arith.constant 3.125000e-02 : f32
    %7 = vector.broadcast %cst_3 : f32 to vector<32x1xf32>
    %8 = arith.mulf %3, %7 : vector<32x1xf32>
    %cst_4 = arith.constant 3.125000e-02 : f32
    %9 = vector.broadcast %cst_4 : f32 to vector<32x1xf32>
    %10 = arith.mulf %6, %9 : vector<32x1xf32>
    %11 = arith.mulf %8, %8 : vector<32x1xf32>
    %12 = arith.subf %10, %11 : vector<32x1xf32>
    %cst_5 = arith.constant 0.000000e+00 : f32
    %13 = vector.broadcast %cst_5 : f32 to vector<32x1xf32>
    %14 = arith.maximumf %12, %13 : vector<32x1xf32>
    %15 = vector.broadcast %8 : vector<32x1xf32> to vector<32x128xf32>
    %16 = arith.subf %1, %15 : vector<32x128xf32>
    %cst_6 = arith.constant 9.99999974E-6 : f32
    %17 = vector.broadcast %cst_6 : f32 to vector<32x1xf32>
    %18 = arith.addf %14, %17 : vector<32x1xf32>
    %19 = math.rsqrt %18 : vector<32x1xf32>
    %20 = vector.broadcast %19 : vector<32x1xf32> to vector<32x128xf32>
    %21 = arith.mulf %16, %20 : vector<32x128xf32>
    %c0_7 = arith.constant 0 : index
    %c0_8 = arith.constant 0 : index
    %22 = vector.load %arg3[%c0_7, %c0_8] : memref<1x128xf32, #tpu.memory_space<vmem>>, vector<1x128xf32>
    %23 = vector.broadcast %22 : vector<1x128xf32> to vector<32x128xf32>
    %24 = arith.mulf %21, %23 : vector<32x128xf32>
    %c0_9 = arith.constant 0 : index
    %c0_10 = arith.constant 0 : index
    %25 = vector.load %arg4[%c0_9, %c0_10] : memref<1x128xf32, #tpu.memory_space<vmem>>, vector<1x128xf32>
    %26 = vector.broadcast %25 : vector<1x128xf32> to vector<32x128xf32>
    %27 = arith.addf %24, %26 : vector<32x128xf32>
    %28 = arith.truncf %27 : vector<32x128xf32> to vector<32x128xbf16>
    %c0_11 = arith.constant 0 : index
    %c0_12 = arith.constant 0 : index
    %29 = vector.load %arg5[%c0_11, %c0_12] : memref<128x128xbf16, #tpu.memory_space<vmem>>, vector<128x128xbf16>
    %cst_13 = arith.constant dense<0.000000e+00> : vector<32x128xf32>
    %30 = tpu.matmul %28, %29, %cst_13 {dimension_numbers = #tpu.dot_dimension_numbers<[1], [0], [0], [1], [0, 0, 1, 1], [], []>} : vector<32x128xbf16>, vector<128x128xbf16>, vector<32x128xf32> -> vector<32x128xf32>
    %c0_14 = arith.constant 0 : index
    %c0_15 = arith.constant 0 : index
    %31 = vector.load %arg6[%c0_14, %c0_15] : memref<1x128xf32, #tpu.memory_space<vmem>>, vector<1x128xf32>
    %32 = vector.broadcast %31 : vector<1x128xf32> to vector<32x128xf32>
    %33 = arith.addf %30, %32 : vector<32x128xf32>
    %34 = vector.shape_cast %33 : vector<32x128xf32> to vector<2x16x128xf32>
    %c0_i32 = arith.constant 0 : i32
    %35 = arith.cmpi eq, %arg1, %c0_i32 : i32
    %36 = arith.extui %35 : i1 to i32
    %c0_i32_16 = arith.constant 0 : i32
    %37 = arith.cmpi ne, %36, %c0_i32_16 : i32
    scf.if %37 {
      %cst_108 = arith.constant 0.000000e+00 : f32
      %523 = vector.broadcast %cst_108 : f32 to vector<2x16x128xf32>
      %c0_109 = arith.constant 0 : index
      %c0_110 = arith.constant 0 : index
      %c0_111 = arith.constant 0 : index
      %524 = vector.load %arg19[%c0_109, %c0_110, %c0_111] : memref<2x16x128xf32, #tpu.memory_space<vmem>>, vector<2x16x128xf32>
      tpu.vector_store %arg19[%c0_109, %c0_110, %c0_111], %523 {strides = array<i32>} : memref<2x16x128xf32, #tpu.memory_space<vmem>>, vector<2x16x128xf32>,
      %cst_112 = arith.constant 0.000000e+00 : f32
      %525 = vector.broadcast %cst_112 : f32 to vector<2x8x128xf32>
      %c0_113 = arith.constant 0 : index
      %c0_114 = arith.constant 0 : index
      %c0_115 = arith.constant 0 : index
      %526 = vector.load %arg17[%c0_113, %c0_114, %c0_115] : memref<2x24x128xf32, #tpu.memory_space<vmem>>, vector<2x8x128xf32>
      tpu.vector_store %arg17[%c0_113, %c0_114, %c0_115], %525 {strides = array<i32>} : memref<2x24x128xf32, #tpu.memory_space<vmem>>, vector<2x8x128xf32>,
      %cst_116 = arith.constant 0.000000e+00 : f32
      %527 = vector.broadcast %cst_116 : f32 to vector<2x8x128xf32>
      %c0_117 = arith.constant 0 : index
      %c0_118 = arith.constant 0 : index
      %c0_119 = arith.constant 0 : index
      %528 = vector.load %arg18[%c0_117, %c0_118, %c0_119] : memref<2x24x128xf32, #tpu.memory_space<vmem>>, vector<2x8x128xf32>
      tpu.vector_store %arg18[%c0_117, %c0_118, %c0_119], %527 {strides = array<i32>} : memref<2x24x128xf32, #tpu.memory_space<vmem>>, vector<2x8x128xf32>,
    } else {
    }
    %c0_i32_17 = arith.constant 0 : i32
    %38 = arith.cmpi sgt, %arg1, %c0_i32_17 : i32
    %39 = arith.extui %38 : i1 to i32
    %c0_i32_18 = arith.constant 0 : i32
    %40 = arith.cmpi ne, %39, %c0_i32_18 : i32
    scf.if %40 {
      %c0_108 = arith.constant 0 : index
      %c21 = arith.constant 21 : index
      %c0_109 = arith.constant 0 : index
      %523 = vector.load %arg18[%c0_108, %c21, %c0_109] : memref<2x24x128xf32, #tpu.memory_space<vmem>>, vector<2x3x128xf32>
      %c0_110 = arith.constant 0 : index
      %c5_111 = arith.constant 5 : index
      %c0_112 = arith.constant 0 : index
      %524 = vector.load %arg18[%c0_110, %c5_111, %c0_112] : memref<2x24x128xf32, #tpu.memory_space<vmem>>, vector<2x3x128xf32>
      tpu.vector_store %arg18[%c0_110, %c5_111, %c0_112], %523 {strides = array<i32>} : memref<2x24x128xf32, #tpu.memory_space<vmem>>, vector<2x3x128xf32>,
    } else {
    }
    %c0_19 = arith.constant 0 : index
    %c0_20 = arith.constant 0 : index
    %c0_21 = arith.constant 0 : index
    %41 = vector.load %arg19[%c0_19, %c0_20, %c0_21] : memref<2x16x128xf32, #tpu.memory_space<vmem>>, vector<2x16x128xf32>
    %c0_22 = arith.constant 0 : index
    %c8 = arith.constant 8 : index
    %c0_23 = arith.constant 0 : index
    %42 = vector.load %arg17[%c0_22, %c8, %c0_23] : memref<2x24x128xf32, #tpu.memory_space<vmem>>, vector<2x16x128xf32>
    tpu.vector_store %arg17[%c0_22, %c8, %c0_23], %34 {strides = array<i32>} : memref<2x24x128xf32, #tpu.memory_space<vmem>>, vector<2x16x128xf32>,
    %c0_24 = arith.constant 0 : index
    %c8_25 = arith.constant 8 : index
    %c0_26 = arith.constant 0 : index
    %43 = vector.load %arg18[%c0_24, %c8_25, %c0_26] : memref<2x24x128xf32, #tpu.memory_space<vmem>>, vector<2x16x128xf32>
    tpu.vector_store %arg18[%c0_24, %c8_25, %c0_26], %34 {strides = array<i32>} : memref<2x24x128xf32, #tpu.memory_space<vmem>>, vector<2x16x128xf32>,
    %c0_27 = arith.constant 0 : index
    %c0_28 = arith.constant 0 : index
    %44 = vector.load %arg7[%c0_27, %c0_28] : memref<16x128xf32, #tpu.memory_space<vmem>>, vector<16x128xf32>
    %c0_29 = arith.constant 0 : index
    %c0_30 = arith.constant 0 : index
    %c0_31 = arith.constant 0 : index
    %45 = vector.load %arg8[%c0_29, %c0_30, %c0_31] : memref<16x16x128xf32, #tpu.memory_space<vmem>>, vector<16x16x128xf32>
    %46 = vector.extract_strided_slice %44 {offsets = [0, 0], sizes = [1, 128], strides = [1, 1]} : vector<16x128xf32> to vector<1x128xf32>
    %47 = vector.shape_cast %46 : vector<1x128xf32> to vector<1x1x128xf32>
    %48 = vector.broadcast %47 : vector<1x1x128xf32> to vector<2x16x128xf32>
    %49 = arith.mulf %48, %34 : vector<2x16x128xf32>
    %50 = vector.extract_strided_slice %45 {offsets = [0, 0, 0], sizes = [16, 1, 128], strides = [1, 1, 1]} : vector<16x16x128xf32> to vector<16x1x128xf32>
    %51 = vector.shape_cast %50 : vector<16x1x128xf32> to vector<16x128xf32>
    %52 = vector.shape_cast %51 : vector<16x128xf32> to vector<1x16x128xf32>
    %53 = vector.extract_strided_slice %41 {offsets = [0, 0, 0], sizes = [2, 1, 128], strides = [1, 1, 1]} : vector<2x16x128xf32> to vector<2x1x128xf32>
    %54 = vector.shape_cast %53 : vector<2x1x128xf32> to vector<2x128xf32>
    %55 = vector.shape_cast %54 : vector<2x128xf32> to vector<2x1x128xf32>
    %56 = vector.broadcast %52 : vector<1x16x128xf32> to vector<2x16x128xf32>
    %57 = vector.broadcast %55 : vector<2x1x128xf32> to vector<2x16x128xf32>
    %58 = arith.mulf %56, %57 : vector<2x16x128xf32>
    %59 = arith.addf %49, %58 : vector<2x16x128xf32>
    %60 = vector.extract_strided_slice %45 {offsets = [0, 1, 0], sizes = [16, 1, 128], strides = [1, 1, 1]} : vector<16x16x128xf32> to vector<16x1x128xf32>
    %61 = vector.shape_cast %60 : vector<16x1x128xf32> to vector<16x128xf32>
    %62 = vector.shape_cast %61 : vector<16x128xf32> to vector<1x16x128xf32>
    %63 = vector.extract_strided_slice %41 {offsets = [0, 1, 0], sizes = [2, 1, 128], strides = [1, 1, 1]} : vector<2x16x128xf32> to vector<2x1x128xf32>
    %64 = vector.shape_cast %63 : vector<2x1x128xf32> to vector<2x128xf32>
    %65 = vector.shape_cast %64 : vector<2x128xf32> to vector<2x1x128xf32>
    %66 = vector.broadcast %62 : vector<1x16x128xf32> to vector<2x16x128xf32>
    %67 = vector.broadcast %65 : vector<2x1x128xf32> to vector<2x16x128xf32>
    %68 = arith.mulf %66, %67 : vector<2x16x128xf32>
    %69 = arith.addf %59, %68 : vector<2x16x128xf32>
    %70 = vector.extract_strided_slice %45 {offsets = [0, 2, 0], sizes = [16, 1, 128], strides = [1, 1, 1]} : vector<16x16x128xf32> to vector<16x1x128xf32>
    %71 = vector.shape_cast %70 : vector<16x1x128xf32> to vector<16x128xf32>
    %72 = vector.shape_cast %71 : vector<16x128xf32> to vector<1x16x128xf32>
    %73 = vector.extract_strided_slice %41 {offsets = [0, 2, 0], sizes = [2, 1, 128], strides = [1, 1, 1]} : vector<2x16x128xf32> to vector<2x1x128xf32>
    %74 = vector.shape_cast %73 : vector<2x1x128xf32> to vector<2x128xf32>
    %75 = vector.shape_cast %74 : vector<2x128xf32> to vector<2x1x128xf32>
    %76 = vector.broadcast %72 : vector<1x16x128xf32> to vector<2x16x128xf32>
    %77 = vector.broadcast %75 : vector<2x1x128xf32> to vector<2x16x128xf32>
    %78 = arith.mulf %76, %77 : vector<2x16x128xf32>
    %79 = arith.addf %69, %78 : vector<2x16x128xf32>
    %80 = vector.extract_strided_slice %45 {offsets = [0, 3, 0], sizes = [16, 1, 128], strides = [1, 1, 1]} : vector<16x16x128xf32> to vector<16x1x128xf32>
    %81 = vector.shape_cast %80 : vector<16x1x128xf32> to vector<16x128xf32>
    %82 = vector.shape_cast %81 : vector<16x128xf32> to vector<1x16x128xf32>
    %83 = vector.extract_strided_slice %41 {offsets = [0, 3, 0], sizes = [2, 1, 128], strides = [1, 1, 1]} : vector<2x16x128xf32> to vector<2x1x128xf32>
    %84 = vector.shape_cast %83 : vector<2x1x128xf32> to vector<2x128xf32>
    %85 = vector.shape_cast %84 : vector<2x128xf32> to vector<2x1x128xf32>
    %86 = vector.broadcast %82 : vector<1x16x128xf32> to vector<2x16x128xf32>
    %87 = vector.broadcast %85 : vector<2x1x128xf32> to vector<2x16x128xf32>
    %88 = arith.mulf %86, %87 : vector<2x16x128xf32>
    %89 = arith.addf %79, %88 : vector<2x16x128xf32>
    %90 = vector.extract_strided_slice %45 {offsets = [0, 4, 0], sizes = [16, 1, 128], strides = [1, 1, 1]} : vector<16x16x128xf32> to vector<16x1x128xf32>
    %91 = vector.shape_cast %90 : vector<16x1x128xf32> to vector<16x128xf32>
    %92 = vector.shape_cast %91 : vector<16x128xf32> to vector<1x16x128xf32>
    %93 = vector.extract_strided_slice %41 {offsets = [0, 4, 0], sizes = [2, 1, 128], strides = [1, 1, 1]} : vector<2x16x128xf32> to vector<2x1x128xf32>
    %94 = vector.shape_cast %93 : vector<2x1x128xf32> to vector<2x128xf32>
    %95 = vector.shape_cast %94 : vector<2x128xf32> to vector<2x1x128xf32>
    %96 = vector.broadcast %92 : vector<1x16x128xf32> to vector<2x16x128xf32>
    %97 = vector.broadcast %95 : vector<2x1x128xf32> to vector<2x16x128xf32>
    %98 = arith.mulf %96, %97 : vector<2x16x128xf32>
    %99 = arith.addf %89, %98 : vector<2x16x128xf32>
    %100 = vector.extract_strided_slice %45 {offsets = [0, 5, 0], sizes = [16, 1, 128], strides = [1, 1, 1]} : vector<16x16x128xf32> to vector<16x1x128xf32>
    %101 = vector.shape_cast %100 : vector<16x1x128xf32> to vector<16x128xf32>
    %102 = vector.shape_cast %101 : vector<16x128xf32> to vector<1x16x128xf32>
    %103 = vector.extract_strided_slice %41 {offsets = [0, 5, 0], sizes = [2, 1, 128], strides = [1, 1, 1]} : vector<2x16x128xf32> to vector<2x1x128xf32>
    %104 = vector.shape_cast %103 : vector<2x1x128xf32> to vector<2x128xf32>
    %105 = vector.shape_cast %104 : vector<2x128xf32> to vector<2x1x128xf32>
    %106 = vector.broadcast %102 : vector<1x16x128xf32> to vector<2x16x128xf32>
    %107 = vector.broadcast %105 : vector<2x1x128xf32> to vector<2x16x128xf32>
    %108 = arith.mulf %106, %107 : vector<2x16x128xf32>
    %109 = arith.addf %99, %108 : vector<2x16x128xf32>
    %110 = vector.extract_strided_slice %45 {offsets = [0, 6, 0], sizes = [16, 1, 128], strides = [1, 1, 1]} : vector<16x16x128xf32> to vector<16x1x128xf32>
    %111 = vector.shape_cast %110 : vector<16x1x128xf32> to vector<16x128xf32>
    %112 = vector.shape_cast %111 : vector<16x128xf32> to vector<1x16x128xf32>
    %113 = vector.extract_strided_slice %41 {offsets = [0, 6, 0], sizes = [2, 1, 128], strides = [1, 1, 1]} : vector<2x16x128xf32> to vector<2x1x128xf32>
    %114 = vector.shape_cast %113 : vector<2x1x128xf32> to vector<2x128xf32>
    %115 = vector.shape_cast %114 : vector<2x128xf32> to vector<2x1x128xf32>
    %116 = vector.broadcast %112 : vector<1x16x128xf32> to vector<2x16x128xf32>
    %117 = vector.broadcast %115 : vector<2x1x128xf32> to vector<2x16x128xf32>
    %118 = arith.mulf %116, %117 : vector<2x16x128xf32>
    %119 = arith.addf %109, %118 : vector<2x16x128xf32>
    %120 = vector.extract_strided_slice %45 {offsets = [0, 7, 0], sizes = [16, 1, 128], strides = [1, 1, 1]} : vector<16x16x128xf32> to vector<16x1x128xf32>
    %121 = vector.shape_cast %120 : vector<16x1x128xf32> to vector<16x128xf32>
    %122 = vector.shape_cast %121 : vector<16x128xf32> to vector<1x16x128xf32>
    %123 = vector.extract_strided_slice %41 {offsets = [0, 7, 0], sizes = [2, 1, 128], strides = [1, 1, 1]} : vector<2x16x128xf32> to vector<2x1x128xf32>
    %124 = vector.shape_cast %123 : vector<2x1x128xf32> to vector<2x128xf32>
    %125 = vector.shape_cast %124 : vector<2x128xf32> to vector<2x1x128xf32>
    %126 = vector.broadcast %122 : vector<1x16x128xf32> to vector<2x16x128xf32>
    %127 = vector.broadcast %125 : vector<2x1x128xf32> to vector<2x16x128xf32>
    %128 = arith.mulf %126, %127 : vector<2x16x128xf32>
    %129 = arith.addf %119, %128 : vector<2x16x128xf32>
    %130 = vector.extract_strided_slice %45 {offsets = [0, 8, 0], sizes = [16, 1, 128], strides = [1, 1, 1]} : vector<16x16x128xf32> to vector<16x1x128xf32>
    %131 = vector.shape_cast %130 : vector<16x1x128xf32> to vector<16x128xf32>
    %132 = vector.shape_cast %131 : vector<16x128xf32> to vector<1x16x128xf32>
    %133 = vector.extract_strided_slice %41 {offsets = [0, 8, 0], sizes = [2, 1, 128], strides = [1, 1, 1]} : vector<2x16x128xf32> to vector<2x1x128xf32>
    %134 = vector.shape_cast %133 : vector<2x1x128xf32> to vector<2x128xf32>
    %135 = vector.shape_cast %134 : vector<2x128xf32> to vector<2x1x128xf32>
    %136 = vector.broadcast %132 : vector<1x16x128xf32> to vector<2x16x128xf32>
    %137 = vector.broadcast %135 : vector<2x1x128xf32> to vector<2x16x128xf32>
    %138 = arith.mulf %136, %137 : vector<2x16x128xf32>
    %139 = arith.addf %129, %138 : vector<2x16x128xf32>
    %140 = vector.extract_strided_slice %45 {offsets = [0, 9, 0], sizes = [16, 1, 128], strides = [1, 1, 1]} : vector<16x16x128xf32> to vector<16x1x128xf32>
    %141 = vector.shape_cast %140 : vector<16x1x128xf32> to vector<16x128xf32>
    %142 = vector.shape_cast %141 : vector<16x128xf32> to vector<1x16x128xf32>
    %143 = vector.extract_strided_slice %41 {offsets = [0, 9, 0], sizes = [2, 1, 128], strides = [1, 1, 1]} : vector<2x16x128xf32> to vector<2x1x128xf32>
    %144 = vector.shape_cast %143 : vector<2x1x128xf32> to vector<2x128xf32>
    %145 = vector.shape_cast %144 : vector<2x128xf32> to vector<2x1x128xf32>
    %146 = vector.broadcast %142 : vector<1x16x128xf32> to vector<2x16x128xf32>
    %147 = vector.broadcast %145 : vector<2x1x128xf32> to vector<2x16x128xf32>
    %148 = arith.mulf %146, %147 : vector<2x16x128xf32>
    %149 = arith.addf %139, %148 : vector<2x16x128xf32>
    %150 = vector.extract_strided_slice %45 {offsets = [0, 10, 0], sizes = [16, 1, 128], strides = [1, 1, 1]} : vector<16x16x128xf32> to vector<16x1x128xf32>
    %151 = vector.shape_cast %150 : vector<16x1x128xf32> to vector<16x128xf32>
    %152 = vector.shape_cast %151 : vector<16x128xf32> to vector<1x16x128xf32>
    %153 = vector.extract_strided_slice %41 {offsets = [0, 10, 0], sizes = [2, 1, 128], strides = [1, 1, 1]} : vector<2x16x128xf32> to vector<2x1x128xf32>
    %154 = vector.shape_cast %153 : vector<2x1x128xf32> to vector<2x128xf32>
    %155 = vector.shape_cast %154 : vector<2x128xf32> to vector<2x1x128xf32>
    %156 = vector.broadcast %152 : vector<1x16x128xf32> to vector<2x16x128xf32>
    %157 = vector.broadcast %155 : vector<2x1x128xf32> to vector<2x16x128xf32>
    %158 = arith.mulf %156, %157 : vector<2x16x128xf32>
    %159 = arith.addf %149, %158 : vector<2x16x128xf32>
    %160 = vector.extract_strided_slice %45 {offsets = [0, 11, 0], sizes = [16, 1, 128], strides = [1, 1, 1]} : vector<16x16x128xf32> to vector<16x1x128xf32>
    %161 = vector.shape_cast %160 : vector<16x1x128xf32> to vector<16x128xf32>
    %162 = vector.shape_cast %161 : vector<16x128xf32> to vector<1x16x128xf32>
    %163 = vector.extract_strided_slice %41 {offsets = [0, 11, 0], sizes = [2, 1, 128], strides = [1, 1, 1]} : vector<2x16x128xf32> to vector<2x1x128xf32>
    %164 = vector.shape_cast %163 : vector<2x1x128xf32> to vector<2x128xf32>
    %165 = vector.shape_cast %164 : vector<2x128xf32> to vector<2x1x128xf32>
    %166 = vector.broadcast %162 : vector<1x16x128xf32> to vector<2x16x128xf32>
    %167 = vector.broadcast %165 : vector<2x1x128xf32> to vector<2x16x128xf32>
    %168 = arith.mulf %166, %167 : vector<2x16x128xf32>
    %169 = arith.addf %159, %168 : vector<2x16x128xf32>
    %170 = vector.extract_strided_slice %45 {offsets = [0, 12, 0], sizes = [16, 1, 128], strides = [1, 1, 1]} : vector<16x16x128xf32> to vector<16x1x128xf32>
    %171 = vector.shape_cast %170 : vector<16x1x128xf32> to vector<16x128xf32>
    %172 = vector.shape_cast %171 : vector<16x128xf32> to vector<1x16x128xf32>
    %173 = vector.extract_strided_slice %41 {offsets = [0, 12, 0], sizes = [2, 1, 128], strides = [1, 1, 1]} : vector<2x16x128xf32> to vector<2x1x128xf32>
    %174 = vector.shape_cast %173 : vector<2x1x128xf32> to vector<2x128xf32>
    %175 = vector.shape_cast %174 : vector<2x128xf32> to vector<2x1x128xf32>
    %176 = vector.broadcast %172 : vector<1x16x128xf32> to vector<2x16x128xf32>
    %177 = vector.broadcast %175 : vector<2x1x128xf32> to vector<2x16x128xf32>
    %178 = arith.mulf %176, %177 : vector<2x16x128xf32>
    %179 = arith.addf %169, %178 : vector<2x16x128xf32>
    %180 = vector.extract_strided_slice %45 {offsets = [0, 13, 0], sizes = [16, 1, 128], strides = [1, 1, 1]} : vector<16x16x128xf32> to vector<16x1x128xf32>
    %181 = vector.shape_cast %180 : vector<16x1x128xf32> to vector<16x128xf32>
    %182 = vector.shape_cast %181 : vector<16x128xf32> to vector<1x16x128xf32>
    %183 = vector.extract_strided_slice %41 {offsets = [0, 13, 0], sizes = [2, 1, 128], strides = [1, 1, 1]} : vector<2x16x128xf32> to vector<2x1x128xf32>
    %184 = vector.shape_cast %183 : vector<2x1x128xf32> to vector<2x128xf32>
    %185 = vector.shape_cast %184 : vector<2x128xf32> to vector<2x1x128xf32>
    %186 = vector.broadcast %182 : vector<1x16x128xf32> to vector<2x16x128xf32>
    %187 = vector.broadcast %185 : vector<2x1x128xf32> to vector<2x16x128xf32>
    %188 = arith.mulf %186, %187 : vector<2x16x128xf32>
    %189 = arith.addf %179, %188 : vector<2x16x128xf32>
    %190 = vector.extract_strided_slice %45 {offsets = [0, 14, 0], sizes = [16, 1, 128], strides = [1, 1, 1]} : vector<16x16x128xf32> to vector<16x1x128xf32>
    %191 = vector.shape_cast %190 : vector<16x1x128xf32> to vector<16x128xf32>
    %192 = vector.shape_cast %191 : vector<16x128xf32> to vector<1x16x128xf32>
    %193 = vector.extract_strided_slice %41 {offsets = [0, 14, 0], sizes = [2, 1, 128], strides = [1, 1, 1]} : vector<2x16x128xf32> to vector<2x1x128xf32>
    %194 = vector.shape_cast %193 : vector<2x1x128xf32> to vector<2x128xf32>
    %195 = vector.shape_cast %194 : vector<2x128xf32> to vector<2x1x128xf32>
    %196 = vector.broadcast %192 : vector<1x16x128xf32> to vector<2x16x128xf32>
    %197 = vector.broadcast %195 : vector<2x1x128xf32> to vector<2x16x128xf32>
    %198 = arith.mulf %196, %197 : vector<2x16x128xf32>
    %199 = arith.addf %189, %198 : vector<2x16x128xf32>
    %200 = vector.extract_strided_slice %45 {offsets = [0, 15, 0], sizes = [16, 1, 128], strides = [1, 1, 1]} : vector<16x16x128xf32> to vector<16x1x128xf32>
    %201 = vector.shape_cast %200 : vector<16x1x128xf32> to vector<16x128xf32>
    %202 = vector.shape_cast %201 : vector<16x128xf32> to vector<1x16x128xf32>
    %203 = vector.extract_strided_slice %41 {offsets = [0, 15, 0], sizes = [2, 1, 128], strides = [1, 1, 1]} : vector<2x16x128xf32> to vector<2x1x128xf32>
    %204 = vector.shape_cast %203 : vector<2x1x128xf32> to vector<2x128xf32>
    %205 = vector.shape_cast %204 : vector<2x128xf32> to vector<2x1x128xf32>
    %206 = vector.broadcast %202 : vector<1x16x128xf32> to vector<2x16x128xf32>
    %207 = vector.broadcast %205 : vector<2x1x128xf32> to vector<2x16x128xf32>
    %208 = arith.mulf %206, %207 : vector<2x16x128xf32>
    %209 = arith.addf %199, %208 : vector<2x16x128xf32>
    %210 = vector.extract_strided_slice %44 {offsets = [1, 0], sizes = [1, 128], strides = [1, 1]} : vector<16x128xf32> to vector<1x128xf32>
    %211 = vector.shape_cast %210 : vector<1x128xf32> to vector<1x1x128xf32>
    %c0_32 = arith.constant 0 : index
    %c7 = arith.constant 7 : index
    %c0_33 = arith.constant 0 : index
    %212 = vector.load %arg17[%c0_32, %c7, %c0_33] : memref<2x24x128xf32, #tpu.memory_space<vmem>>, vector<2x16x128xf32>
    %213 = vector.broadcast %211 : vector<1x1x128xf32> to vector<2x16x128xf32>
    %214 = arith.mulf %213, %212 : vector<2x16x128xf32>
    %215 = arith.addf %209, %214 : vector<2x16x128xf32>
    %216 = vector.extract_strided_slice %44 {offsets = [2, 0], sizes = [1, 128], strides = [1, 1]} : vector<16x128xf32> to vector<1x128xf32>
    %217 = vector.shape_cast %216 : vector<1x128xf32> to vector<1x1x128xf32>
    %c0_34 = arith.constant 0 : index
    %c6 = arith.constant 6 : index
    %c0_35 = arith.constant 0 : index
    %218 = vector.load %arg17[%c0_34, %c6, %c0_35] : memref<2x24x128xf32, #tpu.memory_space<vmem>>, vector<2x16x128xf32>
    %219 = vector.broadcast %217 : vector<1x1x128xf32> to vector<2x16x128xf32>
    %220 = arith.mulf %219, %218 : vector<2x16x128xf32>
    %221 = arith.addf %215, %220 : vector<2x16x128xf32>
    %222 = vector.extract_strided_slice %44 {offsets = [3, 0], sizes = [1, 128], strides = [1, 1]} : vector<16x128xf32> to vector<1x128xf32>
    %223 = vector.shape_cast %222 : vector<1x128xf32> to vector<1x1x128xf32>
    %c0_36 = arith.constant 0 : index
    %c5 = arith.constant 5 : index
    %c0_37 = arith.constant 0 : index
    %224 = vector.load %arg17[%c0_36, %c5, %c0_37] : memref<2x24x128xf32, #tpu.memory_space<vmem>>, vector<2x16x128xf32>
    %225 = vector.broadcast %223 : vector<1x1x128xf32> to vector<2x16x128xf32>
    %226 = arith.mulf %225, %224 : vector<2x16x128xf32>
    %227 = arith.addf %221, %226 : vector<2x16x128xf32>
    %228 = vector.extract_strided_slice %44 {offsets = [4, 0], sizes = [1, 128], strides = [1, 1]} : vector<16x128xf32> to vector<1x128xf32>
    %229 = vector.shape_cast %228 : vector<1x128xf32> to vector<1x1x128xf32>
    %c0_38 = arith.constant 0 : index
    %c4 = arith.constant 4 : index
    %c0_39 = arith.constant 0 : index
    %230 = vector.load %arg17[%c0_38, %c4, %c0_39] : memref<2x24x128xf32, #tpu.memory_space<vmem>>, vector<2x16x128xf32>
    %231 = vector.broadcast %229 : vector<1x1x128xf32> to vector<2x16x128xf32>
    %232 = arith.mulf %231, %230 : vector<2x16x128xf32>
    %233 = arith.addf %227, %232 : vector<2x16x128xf32>
    %234 = vector.extract_strided_slice %44 {offsets = [5, 0], sizes = [1, 128], strides = [1, 1]} : vector<16x128xf32> to vector<1x128xf32>
    %235 = vector.shape_cast %234 : vector<1x128xf32> to vector<1x1x128xf32>
    %c0_40 = arith.constant 0 : index
    %c3 = arith.constant 3 : index
    %c0_41 = arith.constant 0 : index
    %236 = vector.load %arg17[%c0_40, %c3, %c0_41] : memref<2x24x128xf32, #tpu.memory_space<vmem>>, vector<2x16x128xf32>
    %237 = vector.broadcast %235 : vector<1x1x128xf32> to vector<2x16x128xf32>
    %238 = arith.mulf %237, %236 : vector<2x16x128xf32>
    %239 = arith.addf %233, %238 : vector<2x16x128xf32>
    %240 = vector.extract_strided_slice %44 {offsets = [6, 0], sizes = [1, 128], strides = [1, 1]} : vector<16x128xf32> to vector<1x128xf32>
    %241 = vector.shape_cast %240 : vector<1x128xf32> to vector<1x1x128xf32>
    %c0_42 = arith.constant 0 : index
    %c2 = arith.constant 2 : index
    %c0_43 = arith.constant 0 : index
    %242 = vector.load %arg17[%c0_42, %c2, %c0_43] : memref<2x24x128xf32, #tpu.memory_space<vmem>>, vector<2x16x128xf32>
    %243 = vector.broadcast %241 : vector<1x1x128xf32> to vector<2x16x128xf32>
    %244 = arith.mulf %243, %242 : vector<2x16x128xf32>
    %245 = arith.addf %239, %244 : vector<2x16x128xf32>
    %246 = vector.extract_strided_slice %44 {offsets = [7, 0], sizes = [1, 128], strides = [1, 1]} : vector<16x128xf32> to vector<1x128xf32>
    %247 = vector.shape_cast %246 : vector<1x128xf32> to vector<1x1x128xf32>
    %c0_44 = arith.constant 0 : index
    %c1 = arith.constant 1 : index
    %c0_45 = arith.constant 0 : index
    %248 = vector.load %arg17[%c0_44, %c1, %c0_45] : memref<2x24x128xf32, #tpu.memory_space<vmem>>, vector<2x16x128xf32>
    %249 = vector.broadcast %247 : vector<1x1x128xf32> to vector<2x16x128xf32>
    %250 = arith.mulf %249, %248 : vector<2x16x128xf32>
    %251 = arith.addf %245, %250 : vector<2x16x128xf32>
    %252 = vector.extract_strided_slice %251 {offsets = [0, 8, 0], sizes = [2, 8, 128], strides = [1, 1, 1]} : vector<2x16x128xf32> to vector<2x8x128xf32>
    %253 = vector.extract_strided_slice %44 {offsets = [8, 0], sizes = [1, 128], strides = [1, 1]} : vector<16x128xf32> to vector<1x128xf32>
    %254 = vector.shape_cast %253 : vector<1x128xf32> to vector<1x1x128xf32>
    %c0_46 = arith.constant 0 : index
    %c8_47 = arith.constant 8 : index
    %c0_48 = arith.constant 0 : index
    %255 = vector.load %arg17[%c0_46, %c8_47, %c0_48] : memref<2x24x128xf32, #tpu.memory_space<vmem>>, vector<2x8x128xf32>
    %256 = vector.broadcast %254 : vector<1x1x128xf32> to vector<2x8x128xf32>
    %257 = arith.mulf %256, %255 : vector<2x8x128xf32>
    %258 = arith.addf %252, %257 : vector<2x8x128xf32>
    %259 = vector.extract_strided_slice %44 {offsets = [9, 0], sizes = [1, 128], strides = [1, 1]} : vector<16x128xf32> to vector<1x128xf32>
    %260 = vector.shape_cast %259 : vector<1x128xf32> to vector<1x1x128xf32>
    %c0_49 = arith.constant 0 : index
    %c7_50 = arith.constant 7 : index
    %c0_51 = arith.constant 0 : index
    %261 = vector.load %arg17[%c0_49, %c7_50, %c0_51] : memref<2x24x128xf32, #tpu.memory_space<vmem>>, vector<2x8x128xf32>
    %262 = vector.broadcast %260 : vector<1x1x128xf32> to vector<2x8x128xf32>
    %263 = arith.mulf %262, %261 : vector<2x8x128xf32>
    %264 = arith.addf %258, %263 : vector<2x8x128xf32>
    %265 = vector.extract_strided_slice %44 {offsets = [10, 0], sizes = [1, 128], strides = [1, 1]} : vector<16x128xf32> to vector<1x128xf32>
    %266 = vector.shape_cast %265 : vector<1x128xf32> to vector<1x1x128xf32>
    %c0_52 = arith.constant 0 : index
    %c6_53 = arith.constant 6 : index
    %c0_54 = arith.constant 0 : index
    %267 = vector.load %arg17[%c0_52, %c6_53, %c0_54] : memref<2x24x128xf32, #tpu.memory_space<vmem>>, vector<2x8x128xf32>
    %268 = vector.broadcast %266 : vector<1x1x128xf32> to vector<2x8x128xf32>
    %269 = arith.mulf %268, %267 : vector<2x8x128xf32>
    %270 = arith.addf %264, %269 : vector<2x8x128xf32>
    %271 = vector.extract_strided_slice %44 {offsets = [11, 0], sizes = [1, 128], strides = [1, 1]} : vector<16x128xf32> to vector<1x128xf32>
    %272 = vector.shape_cast %271 : vector<1x128xf32> to vector<1x1x128xf32>
    %c0_55 = arith.constant 0 : index
    %c5_56 = arith.constant 5 : index
    %c0_57 = arith.constant 0 : index
    %273 = vector.load %arg17[%c0_55, %c5_56, %c0_57] : memref<2x24x128xf32, #tpu.memory_space<vmem>>, vector<2x8x128xf32>
    %274 = vector.broadcast %272 : vector<1x1x128xf32> to vector<2x8x128xf32>
    %275 = arith.mulf %274, %273 : vector<2x8x128xf32>
    %276 = arith.addf %270, %275 : vector<2x8x128xf32>
    %277 = vector.extract_strided_slice %44 {offsets = [12, 0], sizes = [1, 128], strides = [1, 1]} : vector<16x128xf32> to vector<1x128xf32>
    %278 = vector.shape_cast %277 : vector<1x128xf32> to vector<1x1x128xf32>
    %c0_58 = arith.constant 0 : index
    %c4_59 = arith.constant 4 : index
    %c0_60 = arith.constant 0 : index
    %279 = vector.load %arg17[%c0_58, %c4_59, %c0_60] : memref<2x24x128xf32, #tpu.memory_space<vmem>>, vector<2x8x128xf32>
    %280 = vector.broadcast %278 : vector<1x1x128xf32> to vector<2x8x128xf32>
    %281 = arith.mulf %280, %279 : vector<2x8x128xf32>
    %282 = arith.addf %276, %281 : vector<2x8x128xf32>
    %283 = vector.extract_strided_slice %44 {offsets = [13, 0], sizes = [1, 128], strides = [1, 1]} : vector<16x128xf32> to vector<1x128xf32>
    %284 = vector.shape_cast %283 : vector<1x128xf32> to vector<1x1x128xf32>
    %c0_61 = arith.constant 0 : index
    %c3_62 = arith.constant 3 : index
    %c0_63 = arith.constant 0 : index
    %285 = vector.load %arg17[%c0_61, %c3_62, %c0_63] : memref<2x24x128xf32, #tpu.memory_space<vmem>>, vector<2x8x128xf32>
    %286 = vector.broadcast %284 : vector<1x1x128xf32> to vector<2x8x128xf32>
    %287 = arith.mulf %286, %285 : vector<2x8x128xf32>
    %288 = arith.addf %282, %287 : vector<2x8x128xf32>
    %289 = vector.extract_strided_slice %44 {offsets = [14, 0], sizes = [1, 128], strides = [1, 1]} : vector<16x128xf32> to vector<1x128xf32>
    %290 = vector.shape_cast %289 : vector<1x128xf32> to vector<1x1x128xf32>
    %c0_64 = arith.constant 0 : index
    %c2_65 = arith.constant 2 : index
    %c0_66 = arith.constant 0 : index
    %291 = vector.load %arg17[%c0_64, %c2_65, %c0_66] : memref<2x24x128xf32, #tpu.memory_space<vmem>>, vector<2x8x128xf32>
    %292 = vector.broadcast %290 : vector<1x1x128xf32> to vector<2x8x128xf32>
    %293 = arith.mulf %292, %291 : vector<2x8x128xf32>
    %294 = arith.addf %288, %293 : vector<2x8x128xf32>
    %295 = vector.extract_strided_slice %44 {offsets = [15, 0], sizes = [1, 128], strides = [1, 1]} : vector<16x128xf32> to vector<1x128xf32>
    %296 = vector.shape_cast %295 : vector<1x128xf32> to vector<1x1x128xf32>
    %c0_67 = arith.constant 0 : index
    %c1_68 = arith.constant 1 : index
    %c0_69 = arith.constant 0 : index
    %297 = vector.load %arg17[%c0_67, %c1_68, %c0_69] : memref<2x24x128xf32, #tpu.memory_space<vmem>>, vector<2x8x128xf32>
    %298 = vector.broadcast %296 : vector<1x1x128xf32> to vector<2x8x128xf32>
    %299 = arith.mulf %298, %297 : vector<2x8x128xf32>
    %300 = arith.addf %294, %299 : vector<2x8x128xf32>
    %301 = vector.extract_strided_slice %251 {offsets = [0, 0, 0], sizes = [2, 8, 128], strides = [1, 1, 1]} : vector<2x16x128xf32> to vector<2x8x128xf32>
    %302 = tpu.concatenate %301, %300 in 1 : vector<2x8x128xf32>, vector<2x8x128xf32> -> vector<2x16x128xf32>
    %c0_70 = arith.constant 0 : index
    %c0_71 = arith.constant 0 : index
    %c0_72 = arith.constant 0 : index
    %303 = vector.load %arg9[%c0_70, %c0_71, %c0_72] : memref<16x16x128xf32, #tpu.memory_space<vmem>>, vector<16x16x128xf32>
    %c0_73 = arith.constant 0 : index
    %c0_74 = arith.constant 0 : index
    %304 = vector.load %arg10[%c0_73, %c0_74] : memref<16x128xf32, #tpu.memory_space<vmem>>, vector<16x128xf32>
    %305 = vector.shape_cast %304 : vector<16x128xf32> to vector<1x16x128xf32>
    %306 = vector.broadcast %305 : vector<1x16x128xf32> to vector<2x16x128xf32>
    %307 = arith.mulf %306, %41 : vector<2x16x128xf32>
    %308 = vector.extract_strided_slice %303 {offsets = [0, 0, 0], sizes = [1, 16, 128], strides = [1, 1, 1]} : vector<16x16x128xf32> to vector<1x16x128xf32>
    %309 = vector.shape_cast %308 : vector<1x16x128xf32> to vector<16x128xf32>
    %310 = vector.shape_cast %309 : vector<16x128xf32> to vector<1x16x128xf32>
    %311 = vector.extract_strided_slice %34 {offsets = [0, 15, 0], sizes = [2, 1, 128], strides = [1, 1, 1]} : vector<2x16x128xf32> to vector<2x1x128xf32>
    %312 = vector.shape_cast %311 : vector<2x1x128xf32> to vector<2x128xf32>
    %313 = vector.shape_cast %312 : vector<2x128xf32> to vector<2x1x128xf32>
    %314 = vector.broadcast %310 : vector<1x16x128xf32> to vector<2x16x128xf32>
    %315 = vector.broadcast %313 : vector<2x1x128xf32> to vector<2x16x128xf32>
    %316 = arith.mulf %314, %315 : vector<2x16x128xf32>
    %317 = arith.addf %307, %316 : vector<2x16x128xf32>
    %318 = vector.extract_strided_slice %303 {offsets = [1, 0, 0], sizes = [1, 16, 128], strides = [1, 1, 1]} : vector<16x16x128xf32> to vector<1x16x128xf32>
    %319 = vector.shape_cast %318 : vector<1x16x128xf32> to vector<16x128xf32>
    %320 = vector.shape_cast %319 : vector<16x128xf32> to vector<1x16x128xf32>
    %321 = vector.extract_strided_slice %34 {offsets = [0, 14, 0], sizes = [2, 1, 128], strides = [1, 1, 1]} : vector<2x16x128xf32> to vector<2x1x128xf32>
    %322 = vector.shape_cast %321 : vector<2x1x128xf32> to vector<2x128xf32>
    %323 = vector.shape_cast %322 : vector<2x128xf32> to vector<2x1x128xf32>
    %324 = vector.broadcast %320 : vector<1x16x128xf32> to vector<2x16x128xf32>
    %325 = vector.broadcast %323 : vector<2x1x128xf32> to vector<2x16x128xf32>
    %326 = arith.mulf %324, %325 : vector<2x16x128xf32>
    %327 = arith.addf %317, %326 : vector<2x16x128xf32>
    %328 = vector.extract_strided_slice %303 {offsets = [2, 0, 0], sizes = [1, 16, 128], strides = [1, 1, 1]} : vector<16x16x128xf32> to vector<1x16x128xf32>
    %329 = vector.shape_cast %328 : vector<1x16x128xf32> to vector<16x128xf32>
    %330 = vector.shape_cast %329 : vector<16x128xf32> to vector<1x16x128xf32>
    %331 = vector.extract_strided_slice %34 {offsets = [0, 13, 0], sizes = [2, 1, 128], strides = [1, 1, 1]} : vector<2x16x128xf32> to vector<2x1x128xf32>
    %332 = vector.shape_cast %331 : vector<2x1x128xf32> to vector<2x128xf32>
    %333 = vector.shape_cast %332 : vector<2x128xf32> to vector<2x1x128xf32>
    %334 = vector.broadcast %330 : vector<1x16x128xf32> to vector<2x16x128xf32>
    %335 = vector.broadcast %333 : vector<2x1x128xf32> to vector<2x16x128xf32>
    %336 = arith.mulf %334, %335 : vector<2x16x128xf32>
    %337 = arith.addf %327, %336 : vector<2x16x128xf32>
    %338 = vector.extract_strided_slice %303 {offsets = [3, 0, 0], sizes = [1, 16, 128], strides = [1, 1, 1]} : vector<16x16x128xf32> to vector<1x16x128xf32>
    %339 = vector.shape_cast %338 : vector<1x16x128xf32> to vector<16x128xf32>
    %340 = vector.shape_cast %339 : vector<16x128xf32> to vector<1x16x128xf32>
    %341 = vector.extract_strided_slice %34 {offsets = [0, 12, 0], sizes = [2, 1, 128], strides = [1, 1, 1]} : vector<2x16x128xf32> to vector<2x1x128xf32>
    %342 = vector.shape_cast %341 : vector<2x1x128xf32> to vector<2x128xf32>
    %343 = vector.shape_cast %342 : vector<2x128xf32> to vector<2x1x128xf32>
    %344 = vector.broadcast %340 : vector<1x16x128xf32> to vector<2x16x128xf32>
    %345 = vector.broadcast %343 : vector<2x1x128xf32> to vector<2x16x128xf32>
    %346 = arith.mulf %344, %345 : vector<2x16x128xf32>
    %347 = arith.addf %337, %346 : vector<2x16x128xf32>
    %348 = vector.extract_strided_slice %303 {offsets = [4, 0, 0], sizes = [1, 16, 128], strides = [1, 1, 1]} : vector<16x16x128xf32> to vector<1x16x128xf32>
    %349 = vector.shape_cast %348 : vector<1x16x128xf32> to vector<16x128xf32>
    %350 = vector.shape_cast %349 : vector<16x128xf32> to vector<1x16x128xf32>
    %351 = vector.extract_strided_slice %34 {offsets = [0, 11, 0], sizes = [2, 1, 128], strides = [1, 1, 1]} : vector<2x16x128xf32> to vector<2x1x128xf32>
    %352 = vector.shape_cast %351 : vector<2x1x128xf32> to vector<2x128xf32>
    %353 = vector.shape_cast %352 : vector<2x128xf32> to vector<2x1x128xf32>
    %354 = vector.broadcast %350 : vector<1x16x128xf32> to vector<2x16x128xf32>
    %355 = vector.broadcast %353 : vector<2x1x128xf32> to vector<2x16x128xf32>
    %356 = arith.mulf %354, %355 : vector<2x16x128xf32>
    %357 = arith.addf %347, %356 : vector<2x16x128xf32>
    %358 = vector.extract_strided_slice %303 {offsets = [5, 0, 0], sizes = [1, 16, 128], strides = [1, 1, 1]} : vector<16x16x128xf32> to vector<1x16x128xf32>
    %359 = vector.shape_cast %358 : vector<1x16x128xf32> to vector<16x128xf32>
    %360 = vector.shape_cast %359 : vector<16x128xf32> to vector<1x16x128xf32>
    %361 = vector.extract_strided_slice %34 {offsets = [0, 10, 0], sizes = [2, 1, 128], strides = [1, 1, 1]} : vector<2x16x128xf32> to vector<2x1x128xf32>
    %362 = vector.shape_cast %361 : vector<2x1x128xf32> to vector<2x128xf32>
    %363 = vector.shape_cast %362 : vector<2x128xf32> to vector<2x1x128xf32>
    %364 = vector.broadcast %360 : vector<1x16x128xf32> to vector<2x16x128xf32>
    %365 = vector.broadcast %363 : vector<2x1x128xf32> to vector<2x16x128xf32>
    %366 = arith.mulf %364, %365 : vector<2x16x128xf32>
    %367 = arith.addf %357, %366 : vector<2x16x128xf32>
    %368 = vector.extract_strided_slice %303 {offsets = [6, 0, 0], sizes = [1, 16, 128], strides = [1, 1, 1]} : vector<16x16x128xf32> to vector<1x16x128xf32>
    %369 = vector.shape_cast %368 : vector<1x16x128xf32> to vector<16x128xf32>
    %370 = vector.shape_cast %369 : vector<16x128xf32> to vector<1x16x128xf32>
    %371 = vector.extract_strided_slice %34 {offsets = [0, 9, 0], sizes = [2, 1, 128], strides = [1, 1, 1]} : vector<2x16x128xf32> to vector<2x1x128xf32>
    %372 = vector.shape_cast %371 : vector<2x1x128xf32> to vector<2x128xf32>
    %373 = vector.shape_cast %372 : vector<2x128xf32> to vector<2x1x128xf32>
    %374 = vector.broadcast %370 : vector<1x16x128xf32> to vector<2x16x128xf32>
    %375 = vector.broadcast %373 : vector<2x1x128xf32> to vector<2x16x128xf32>
    %376 = arith.mulf %374, %375 : vector<2x16x128xf32>
    %377 = arith.addf %367, %376 : vector<2x16x128xf32>
    %378 = vector.extract_strided_slice %303 {offsets = [7, 0, 0], sizes = [1, 16, 128], strides = [1, 1, 1]} : vector<16x16x128xf32> to vector<1x16x128xf32>
    %379 = vector.shape_cast %378 : vector<1x16x128xf32> to vector<16x128xf32>
    %380 = vector.shape_cast %379 : vector<16x128xf32> to vector<1x16x128xf32>
    %381 = vector.extract_strided_slice %34 {offsets = [0, 8, 0], sizes = [2, 1, 128], strides = [1, 1, 1]} : vector<2x16x128xf32> to vector<2x1x128xf32>
    %382 = vector.shape_cast %381 : vector<2x1x128xf32> to vector<2x128xf32>
    %383 = vector.shape_cast %382 : vector<2x128xf32> to vector<2x1x128xf32>
    %384 = vector.broadcast %380 : vector<1x16x128xf32> to vector<2x16x128xf32>
    %385 = vector.broadcast %383 : vector<2x1x128xf32> to vector<2x16x128xf32>
    %386 = arith.mulf %384, %385 : vector<2x16x128xf32>
    %387 = arith.addf %377, %386 : vector<2x16x128xf32>
    %388 = vector.extract_strided_slice %303 {offsets = [8, 0, 0], sizes = [1, 16, 128], strides = [1, 1, 1]} : vector<16x16x128xf32> to vector<1x16x128xf32>
    %389 = vector.shape_cast %388 : vector<1x16x128xf32> to vector<16x128xf32>
    %390 = vector.shape_cast %389 : vector<16x128xf32> to vector<1x16x128xf32>
    %391 = vector.extract_strided_slice %34 {offsets = [0, 7, 0], sizes = [2, 1, 128], strides = [1, 1, 1]} : vector<2x16x128xf32> to vector<2x1x128xf32>
    %392 = vector.shape_cast %391 : vector<2x1x128xf32> to vector<2x128xf32>
    %393 = vector.shape_cast %392 : vector<2x128xf32> to vector<2x1x128xf32>
    %394 = vector.broadcast %390 : vector<1x16x128xf32> to vector<2x16x128xf32>
    %395 = vector.broadcast %393 : vector<2x1x128xf32> to vector<2x16x128xf32>
    %396 = arith.mulf %394, %395 : vector<2x16x128xf32>
    %397 = arith.addf %387, %396 : vector<2x16x128xf32>
    %398 = vector.extract_strided_slice %303 {offsets = [9, 0, 0], sizes = [1, 16, 128], strides = [1, 1, 1]} : vector<16x16x128xf32> to vector<1x16x128xf32>
    %399 = vector.shape_cast %398 : vector<1x16x128xf32> to vector<16x128xf32>
    %400 = vector.shape_cast %399 : vector<16x128xf32> to vector<1x16x128xf32>
    %401 = vector.extract_strided_slice %34 {offsets = [0, 6, 0], sizes = [2, 1, 128], strides = [1, 1, 1]} : vector<2x16x128xf32> to vector<2x1x128xf32>
    %402 = vector.shape_cast %401 : vector<2x1x128xf32> to vector<2x128xf32>
    %403 = vector.shape_cast %402 : vector<2x128xf32> to vector<2x1x128xf32>
    %404 = vector.broadcast %400 : vector<1x16x128xf32> to vector<2x16x128xf32>
    %405 = vector.broadcast %403 : vector<2x1x128xf32> to vector<2x16x128xf32>
    %406 = arith.mulf %404, %405 : vector<2x16x128xf32>
    %407 = arith.addf %397, %406 : vector<2x16x128xf32>
    %408 = vector.extract_strided_slice %303 {offsets = [10, 0, 0], sizes = [1, 16, 128], strides = [1, 1, 1]} : vector<16x16x128xf32> to vector<1x16x128xf32>
    %409 = vector.shape_cast %408 : vector<1x16x128xf32> to vector<16x128xf32>
    %410 = vector.shape_cast %409 : vector<16x128xf32> to vector<1x16x128xf32>
    %411 = vector.extract_strided_slice %34 {offsets = [0, 5, 0], sizes = [2, 1, 128], strides = [1, 1, 1]} : vector<2x16x128xf32> to vector<2x1x128xf32>
    %412 = vector.shape_cast %411 : vector<2x1x128xf32> to vector<2x128xf32>
    %413 = vector.shape_cast %412 : vector<2x128xf32> to vector<2x1x128xf32>
    %414 = vector.broadcast %410 : vector<1x16x128xf32> to vector<2x16x128xf32>
    %415 = vector.broadcast %413 : vector<2x1x128xf32> to vector<2x16x128xf32>
    %416 = arith.mulf %414, %415 : vector<2x16x128xf32>
    %417 = arith.addf %407, %416 : vector<2x16x128xf32>
    %418 = vector.extract_strided_slice %303 {offsets = [11, 0, 0], sizes = [1, 16, 128], strides = [1, 1, 1]} : vector<16x16x128xf32> to vector<1x16x128xf32>
    %419 = vector.shape_cast %418 : vector<1x16x128xf32> to vector<16x128xf32>
    %420 = vector.shape_cast %419 : vector<16x128xf32> to vector<1x16x128xf32>
    %421 = vector.extract_strided_slice %34 {offsets = [0, 4, 0], sizes = [2, 1, 128], strides = [1, 1, 1]} : vector<2x16x128xf32> to vector<2x1x128xf32>
    %422 = vector.shape_cast %421 : vector<2x1x128xf32> to vector<2x128xf32>
    %423 = vector.shape_cast %422 : vector<2x128xf32> to vector<2x1x128xf32>
    %424 = vector.broadcast %420 : vector<1x16x128xf32> to vector<2x16x128xf32>
    %425 = vector.broadcast %423 : vector<2x1x128xf32> to vector<2x16x128xf32>
    %426 = arith.mulf %424, %425 : vector<2x16x128xf32>
    %427 = arith.addf %417, %426 : vector<2x16x128xf32>
    %428 = vector.extract_strided_slice %303 {offsets = [12, 0, 0], sizes = [1, 16, 128], strides = [1, 1, 1]} : vector<16x16x128xf32> to vector<1x16x128xf32>
    %429 = vector.shape_cast %428 : vector<1x16x128xf32> to vector<16x128xf32>
    %430 = vector.shape_cast %429 : vector<16x128xf32> to vector<1x16x128xf32>
    %431 = vector.extract_strided_slice %34 {offsets = [0, 3, 0], sizes = [2, 1, 128], strides = [1, 1, 1]} : vector<2x16x128xf32> to vector<2x1x128xf32>
    %432 = vector.shape_cast %431 : vector<2x1x128xf32> to vector<2x128xf32>
    %433 = vector.shape_cast %432 : vector<2x128xf32> to vector<2x1x128xf32>
    %434 = vector.broadcast %430 : vector<1x16x128xf32> to vector<2x16x128xf32>
    %435 = vector.broadcast %433 : vector<2x1x128xf32> to vector<2x16x128xf32>
    %436 = arith.mulf %434, %435 : vector<2x16x128xf32>
    %437 = arith.addf %427, %436 : vector<2x16x128xf32>
    %438 = vector.extract_strided_slice %303 {offsets = [13, 0, 0], sizes = [1, 16, 128], strides = [1, 1, 1]} : vector<16x16x128xf32> to vector<1x16x128xf32>
    %439 = vector.shape_cast %438 : vector<1x16x128xf32> to vector<16x128xf32>
    %440 = vector.shape_cast %439 : vector<16x128xf32> to vector<1x16x128xf32>
    %441 = vector.extract_strided_slice %34 {offsets = [0, 2, 0], sizes = [2, 1, 128], strides = [1, 1, 1]} : vector<2x16x128xf32> to vector<2x1x128xf32>
    %442 = vector.shape_cast %441 : vector<2x1x128xf32> to vector<2x128xf32>
    %443 = vector.shape_cast %442 : vector<2x128xf32> to vector<2x1x128xf32>
    %444 = vector.broadcast %440 : vector<1x16x128xf32> to vector<2x16x128xf32>
    %445 = vector.broadcast %443 : vector<2x1x128xf32> to vector<2x16x128xf32>
    %446 = arith.mulf %444, %445 : vector<2x16x128xf32>
    %447 = arith.addf %437, %446 : vector<2x16x128xf32>
    %448 = vector.extract_strided_slice %303 {offsets = [14, 0, 0], sizes = [1, 16, 128], strides = [1, 1, 1]} : vector<16x16x128xf32> to vector<1x16x128xf32>
    %449 = vector.shape_cast %448 : vector<1x16x128xf32> to vector<16x128xf32>
    %450 = vector.shape_cast %449 : vector<16x128xf32> to vector<1x16x128xf32>
    %451 = vector.extract_strided_slice %34 {offsets = [0, 1, 0], sizes = [2, 1, 128], strides = [1, 1, 1]} : vector<2x16x128xf32> to vector<2x1x128xf32>
    %452 = vector.shape_cast %451 : vector<2x1x128xf32> to vector<2x128xf32>
    %453 = vector.shape_cast %452 : vector<2x128xf32> to vector<2x1x128xf32>
    %454 = vector.broadcast %450 : vector<1x16x128xf32> to vector<2x16x128xf32>
    %455 = vector.broadcast %453 : vector<2x1x128xf32> to vector<2x16x128xf32>
    %456 = arith.mulf %454, %455 : vector<2x16x128xf32>
    %457 = arith.addf %447, %456 : vector<2x16x128xf32>
    %458 = vector.extract_strided_slice %303 {offsets = [15, 0, 0], sizes = [1, 16, 128], strides = [1, 1, 1]} : vector<16x16x128xf32> to vector<1x16x128xf32>
    %459 = vector.shape_cast %458 : vector<1x16x128xf32> to vector<16x128xf32>
    %460 = vector.shape_cast %459 : vector<16x128xf32> to vector<1x16x128xf32>
    %461 = vector.extract_strided_slice %34 {offsets = [0, 0, 0], sizes = [2, 1, 128], strides = [1, 1, 1]} : vector<2x16x128xf32> to vector<2x1x128xf32>
    %462 = vector.shape_cast %461 : vector<2x1x128xf32> to vector<2x128xf32>
    %463 = vector.shape_cast %462 : vector<2x128xf32> to vector<2x1x128xf32>
    %464 = vector.broadcast %460 : vector<1x16x128xf32> to vector<2x16x128xf32>
    %465 = vector.broadcast %463 : vector<2x1x128xf32> to vector<2x16x128xf32>
    %466 = arith.mulf %464, %465 : vector<2x16x128xf32>
    %467 = arith.addf %457, %466 : vector<2x16x128xf32>
    %c0_75 = arith.constant 0 : index
    %c0_76 = arith.constant 0 : index
    %c0_77 = arith.constant 0 : index
    %468 = vector.load %arg19[%c0_75, %c0_76, %c0_77] : memref<2x16x128xf32, #tpu.memory_space<vmem>>, vector<2x16x128xf32>
    tpu.vector_store %arg19[%c0_75, %c0_76, %c0_77], %467 {strides = array<i32>} : memref<2x16x128xf32, #tpu.memory_space<vmem>>, vector<2x16x128xf32>,
    %c1_i32 = arith.constant 1 : i32
    %469 = arith.cmpi eq, %arg1, %c1_i32 : i32
    %470 = arith.extui %469 : i1 to i32
    %c0_i32_78 = arith.constant 0 : i32
    %471 = arith.cmpi ne, %470, %c0_i32_78 : i32
    scf.if %471 {
      %c0_108 = arith.constant 0 : index
      %c0_109 = arith.constant 0 : index
      %c0_110 = arith.constant 0 : index
      %523 = vector.load %arg16[%c0_108, %c0_109, %c0_110] : memref<2x16x128xf32, #tpu.memory_space<vmem>>, vector<2x16x128xf32>
      tpu.vector_store %arg16[%c0_108, %c0_109, %c0_110], %467 {strides = array<i32>} : memref<2x16x128xf32, #tpu.memory_space<vmem>>, vector<2x16x128xf32>,
    } else {
    }
    %c0_79 = arith.constant 0 : index
    %c0_80 = arith.constant 0 : index
    %472 = vector.load %arg11[%c0_79, %c0_80] : memref<4x128xf32, #tpu.memory_space<vmem>>, vector<4x128xf32>
    %473 = vector.extract_strided_slice %472 {offsets = [0, 0], sizes = [1, 128], strides = [1, 1]} : vector<4x128xf32> to vector<1x128xf32>
    %474 = vector.shape_cast %473 : vector<1x128xf32> to vector<1x1x128xf32>
    %c0_81 = arith.constant 0 : index
    %c5_82 = arith.constant 5 : index
    %c0_83 = arith.constant 0 : index
    %475 = vector.load %arg18[%c0_81, %c5_82, %c0_83] : memref<2x24x128xf32, #tpu.memory_space<vmem>>, vector<2x16x128xf32>
    %476 = vector.broadcast %474 : vector<1x1x128xf32> to vector<2x16x128xf32>
    %477 = arith.mulf %476, %475 : vector<2x16x128xf32>
    %478 = vector.extract_strided_slice %472 {offsets = [1, 0], sizes = [1, 128], strides = [1, 1]} : vector<4x128xf32> to vector<1x128xf32>
    %479 = vector.shape_cast %478 : vector<1x128xf32> to vector<1x1x128xf32>
    %c0_84 = arith.constant 0 : index
    %c6_85 = arith.constant 6 : index
    %c0_86 = arith.constant 0 : index
    %480 = vector.load %arg18[%c0_84, %c6_85, %c0_86] : memref<2x24x128xf32, #tpu.memory_space<vmem>>, vector<2x16x128xf32>
    %481 = vector.broadcast %479 : vector<1x1x128xf32> to vector<2x16x128xf32>
    %482 = arith.mulf %481, %480 : vector<2x16x128xf32>
    %483 = arith.addf %477, %482 : vector<2x16x128xf32>
    %484 = vector.extract_strided_slice %472 {offsets = [2, 0], sizes = [1, 128], strides = [1, 1]} : vector<4x128xf32> to vector<1x128xf32>
    %485 = vector.shape_cast %484 : vector<1x128xf32> to vector<1x1x128xf32>
    %c0_87 = arith.constant 0 : index
    %c7_88 = arith.constant 7 : index
    %c0_89 = arith.constant 0 : index
    %486 = vector.load %arg18[%c0_87, %c7_88, %c0_89] : memref<2x24x128xf32, #tpu.memory_space<vmem>>, vector<2x16x128xf32>
    %487 = vector.broadcast %485 : vector<1x1x128xf32> to vector<2x16x128xf32>
    %488 = arith.mulf %487, %486 : vector<2x16x128xf32>
    %489 = arith.addf %483, %488 : vector<2x16x128xf32>
    %490 = vector.extract_strided_slice %472 {offsets = [3, 0], sizes = [1, 128], strides = [1, 1]} : vector<4x128xf32> to vector<1x128xf32>
    %491 = vector.shape_cast %490 : vector<1x128xf32> to vector<1x1x128xf32>
    %c0_90 = arith.constant 0 : index
    %c8_91 = arith.constant 8 : index
    %c0_92 = arith.constant 0 : index
    %492 = vector.load %arg18[%c0_90, %c8_91, %c0_92] : memref<2x24x128xf32, #tpu.memory_space<vmem>>, vector<2x16x128xf32>
    %493 = vector.broadcast %491 : vector<1x1x128xf32> to vector<2x16x128xf32>
    %494 = arith.mulf %493, %492 : vector<2x16x128xf32>
    %495 = arith.addf %489, %494 : vector<2x16x128xf32>
    %c0_93 = arith.constant 0 : index
    %c0_94 = arith.constant 0 : index
    %496 = vector.load %arg12[%c0_93, %c0_94] : memref<1x128xf32, #tpu.memory_space<vmem>>, vector<1x128xf32>
    %497 = vector.shape_cast %496 : vector<1x128xf32> to vector<1x1x128xf32>
    %498 = vector.broadcast %497 : vector<1x1x128xf32> to vector<2x16x128xf32>
    %499 = arith.addf %495, %498 : vector<2x16x128xf32>
    %500 = arith.negf %499 : vector<2x16x128xf32>
    %501 = math.exp %500 : vector<2x16x128xf32>
    %cst_95 = arith.constant 1.000000e+00 : f32
    %502 = vector.broadcast %cst_95 : f32 to vector<2x16x128xf32>
    %503 = arith.addf %502, %501 : vector<2x16x128xf32>
    %504 = arith.divf %502, %503 : vector<2x16x128xf32>
    %505 = arith.mulf %499, %504 : vector<2x16x128xf32>
    %506 = arith.negf %505 : vector<2x16x128xf32>
    %507 = math.exp %506 : vector<2x16x128xf32>
    %cst_96 = arith.constant 1.000000e+00 : f32
    %508 = vector.broadcast %cst_96 : f32 to vector<2x16x128xf32>
    %509 = arith.addf %508, %507 : vector<2x16x128xf32>
    %510 = arith.divf %508, %509 : vector<2x16x128xf32>
    %511 = arith.mulf %302, %510 : vector<2x16x128xf32>
    %512 = vector.shape_cast %511 : vector<2x16x128xf32> to vector<32x128xf32>
    %513 = arith.truncf %512 : vector<32x128xf32> to vector<32x128xbf16>
    %c0_97 = arith.constant 0 : index
    %c0_98 = arith.constant 0 : index
    %514 = vector.load %arg13[%c0_97, %c0_98] : memref<128x128xbf16, #tpu.memory_space<vmem>>, vector<128x128xbf16>
    %cst_99 = arith.constant dense<0.000000e+00> : vector<32x128xf32>
    %515 = tpu.matmul %513, %514, %cst_99 {dimension_numbers = #tpu.dot_dimension_numbers<[1], [0], [0], [1], [0, 0, 1, 1], [], []>} : vector<32x128xbf16>, vector<128x128xbf16>, vector<32x128xf32> -> vector<32x128xf32>
    %c0_100 = arith.constant 0 : index
    %c0_101 = arith.constant 0 : index
    %516 = vector.load %arg14[%c0_100, %c0_101] : memref<1x128xf32, #tpu.memory_space<vmem>>, vector<1x128xf32>
    %517 = vector.broadcast %516 : vector<1x128xf32> to vector<32x128xf32>
    %518 = arith.addf %515, %517 : vector<32x128xf32>
    %519 = vector.shape_cast %518 : vector<32x128xf32> to vector<2x16x128xf32>
    %c0_102 = arith.constant 0 : index
    %c0_103 = arith.constant 0 : index
    %c0_104 = arith.constant 0 : index
    %520 = vector.load %arg2[%c0_102, %c0_103, %c0_104] : memref<2x16x128xf32, #tpu.memory_space<vmem>>, vector<2x16x128xf32>
    %521 = arith.addf %519, %520 : vector<2x16x128xf32>
    %c0_105 = arith.constant 0 : index
    %c0_106 = arith.constant 0 : index
    %c0_107 = arith.constant 0 : index
    %522 = vector.load %arg15[%c0_105, %c0_106, %c0_107] : memref<2x16x128xf32, #tpu.memory_space<vmem>>, vector<2x16x128xf32>
    tpu.vector_store %arg15[%c0_105, %c0_106, %c0_107], %521 {strides = array<i32>} : memref<2x16x128xf32, #tpu.memory_space<vmem>>, vector<2x16x128xf32>,
    return
  }
  func.func @transform_0(%arg0: i32, %arg1: i32) -> (i32, i32, i32) {
    %c0_i32 = arith.constant 0 : i32
    %c0_i32_0 = arith.constant 0 : i32
    return %arg0, %arg1, %c0_i32 : i32, i32, i32
  }
  func.func @transform_1(%arg0: i32, %arg1: i32) -> (i32, i32) {
    %c0_i32 = arith.constant 0 : i32
    %c0_i32_0 = arith.constant 0 : i32
    %c0_i32_1 = arith.constant 0 : i32
    return %c0_i32, %c0_i32_0 : i32, i32
  }
  func.func @transform_2(%arg0: i32, %arg1: i32) -> (i32, i32) {
    %c0_i32 = arith.constant 0 : i32
    %c0_i32_0 = arith.constant 0 : i32
    %c0_i32_1 = arith.constant 0 : i32
    return %c0_i32, %c0_i32_0 : i32, i32
  }
  func.func @transform_3(%arg0: i32, %arg1: i32) -> (i32, i32) {
    %c0_i32 = arith.constant 0 : i32
    %c0_i32_0 = arith.constant 0 : i32
    %c0_i32_1 = arith.constant 0 : i32
    return %c0_i32, %c0_i32_0 : i32, i32
  }
  func.func @transform_4(%arg0: i32, %arg1: i32) -> (i32, i32) {
    %c0_i32 = arith.constant 0 : i32
    %c0_i32_0 = arith.constant 0 : i32
    %c0_i32_1 = arith.constant 0 : i32
    return %c0_i32, %c0_i32_0 : i32, i32
  }
  func.func @transform_5(%arg0: i32, %arg1: i32) -> (i32, i32) {
    %c0_i32 = arith.constant 0 : i32
    %c0_i32_0 = arith.constant 0 : i32
    %c0_i32_1 = arith.constant 0 : i32
    return %c0_i32, %c0_i32_0 : i32, i32
  }
  func.func @transform_6(%arg0: i32, %arg1: i32) -> (i32, i32, i32) {
    %c0_i32 = arith.constant 0 : i32
    %c0_i32_0 = arith.constant 0 : i32
    %c0_i32_1 = arith.constant 0 : i32
    %c0_i32_2 = arith.constant 0 : i32
    return %c0_i32, %c0_i32_0, %c0_i32_1 : i32, i32, i32
  }
  func.func @transform_7(%arg0: i32, %arg1: i32) -> (i32, i32, i32) {
    %c0_i32 = arith.constant 0 : i32
    %c0_i32_0 = arith.constant 0 : i32
    %c0_i32_1 = arith.constant 0 : i32
    %c0_i32_2 = arith.constant 0 : i32
    return %c0_i32, %c0_i32_0, %c0_i32_1 : i32, i32, i32
  }
  func.func @transform_8(%arg0: i32, %arg1: i32) -> (i32, i32) {
    %c0_i32 = arith.constant 0 : i32
    %c0_i32_0 = arith.constant 0 : i32
    %c0_i32_1 = arith.constant 0 : i32
    return %c0_i32, %c0_i32_0 : i32, i32
  }
  func.func @transform_9(%arg0: i32, %arg1: i32) -> (i32, i32) {
    %c0_i32 = arith.constant 0 : i32
    %c0_i32_0 = arith.constant 0 : i32
    %c0_i32_1 = arith.constant 0 : i32
    return %c0_i32, %c0_i32_0 : i32, i32
  }
  func.func @transform_10(%arg0: i32, %arg1: i32) -> (i32, i32) {
    %c0_i32 = arith.constant 0 : i32
    %c0_i32_0 = arith.constant 0 : i32
    %c0_i32_1 = arith.constant 0 : i32
    return %c0_i32, %c0_i32_0 : i32, i32
  }
  func.func @transform_11(%arg0: i32, %arg1: i32) -> (i32, i32) {
    %c0_i32 = arith.constant 0 : i32
    %c0_i32_0 = arith.constant 0 : i32
    %c0_i32_1 = arith.constant 0 : i32
    return %c0_i32, %c0_i32_0 : i32, i32
  }
  func.func @transform_12(%arg0: i32, %arg1: i32) -> (i32, i32) {
    %c0_i32 = arith.constant 0 : i32
    %c0_i32_0 = arith.constant 0 : i32
    %c0_i32_1 = arith.constant 0 : i32
    return %c0_i32, %c0_i32_0 : i32, i32
  }
  func.func @transform_13(%arg0: i32, %arg1: i32) -> (i32, i32, i32) {
    %c0_i32 = arith.constant 0 : i32
    %c0_i32_0 = arith.constant 0 : i32
    return %arg0, %arg1, %c0_i32 : i32, i32, i32
  }
  func.func @transform_14(%arg0: i32, %arg1: i32) -> (i32, i32, i32) {
    %c0_i32 = arith.constant 0 : i32
    %c0_i32_0 = arith.constant 0 : i32
    %c0_i32_1 = arith.constant 0 : i32
    return %arg0, %c0_i32, %c0_i32_0 : i32, i32, i32
  }
}

</mosaic_0001>

<bundles_post_ra>
// kernel: tpu_custom_call.1
= control target key start
LH: loop header
LB: loop body
LE: loop exit
PB: predicated region body
PF: predicated region fallthrough
CT: control target
= control target key end

     0   :  { %s7312_s0 = inlined_call_operand.hbm [shape: f32[4,32,128], index: 0, kind: input, shape index: {}]   ;;  %s7313_s1 = inlined_call_operand.hbm [shape: f32[1,128], index: 1, kind: input, shape index: {}]   ;;  %s7314_s2 = inlined_call_operand.vmem [shape: f32[1,128], index: 2, kind: input, shape index: {}]   ;;  %s7315_s3 = inlined_call_operand.hbm [shape: bf16[128,128], index: 3, kind: input, shape index: {}]   ;;  %s7316_s4 = inlined_call_operand.vmem [shape: f32[1,128], index: 4, kind: input, shape index: {}]   ;;  %s7317_s5 = inlined_call_operand.hbm [shape: f32[16,128], index: 5, kind: input, shape index: {}]   ;;  %s7318_s6 = inlined_call_operand.hbm [shape: f32[16,16,128], index: 6, kind: input, shape index: {}]   ;;  %s7319_s7 = inlined_call_operand.hbm [shape: f32[16,16,128], index: 7, kind: input, shape index: {}]   ;;  %s7320_s8 = inlined_call_operand.hbm [shape: f32[16,128], index: 8, kind: input, shape index: {}]   ;;  %s7321_s9 = inlined_call_operand.vmem [shape: f32[4,128], index: 9, kind: input, shape index: {}]   ;;  %s7322_s10 = inlined_call_operand.vmem [shape: f32[1,128], index: 10, kind: input, shape index: {}]   ;;  %s7323_s11 = inlined_call_operand.hbm [shape: bf16[128,128], index: 11, kind: input, shape index: {}]   ;;  %s7324_s12 = inlined_call_operand.vmem [shape: f32[1,128], index: 12, kind: input, shape index: {}]   ;;  %s7325_s13 = inlined_call_operand.hbm [shape: f32[4,32,128], index: 13, kind: output, shape index: {0}]   ;;  %s7326_s14 = inlined_call_operand.hbm [shape: f32[4,16,128], index: 14, kind: output, shape index: {1}]  }
   0x1   :  { %7428 = sst [smem:[#allocation56_spill]] %s7313_s1 }
   0x2   :  { %7429 = sst [smem:[#allocation57_spill]] %s7314_s2 }
   0x3   :  { %7430 = sst [smem:[#allocation58_spill]] %s7315_s3 }
   0x4   :  { %7431 = sst [smem:[#allocation59_spill]] %s7316_s4 }
   0x5   :  { %7432 = sst [smem:[#allocation60_spill]] %s7317_s5 }
   0x6   :  { %7433 = sst [smem:[#allocation61_spill]] %s7319_s7 }
   0x7   :  { %7434 = sst [smem:[#allocation62_spill]] %s7321_s9 }
   0x8   :  { %7435 = sst [smem:[#allocation63_spill]] %s7322_s10 }
   0x9   :  { %7436 = sst [smem:[#allocation64_spill]] %s7324_s12 }
   0xa   :  { %7437 = sst [smem:[#allocation65_spill]] %s7325_s13 }
   0xb   :  { %7438 = sst [smem:[#allocation66_spill]] %s7326_s14 }
   0xc   :  { %20 = vsyncpa [#allocation6], 0 }
   0xd   :  { %22 = vsyncpa [#allocation6 + $0x1], 0 }
   0xe   :  { %23 = vsyncpa [#allocation9], 0 }
   0xf   :  { %24 = vsyncpa [#allocation12], 0 }
  0x10   :  { %25 = vsyncpa [#allocation15], 0 }
  0x11   :  { %26 = vsyncpa [#allocation18], 0 }
  0x12   :  { %27 = vsyncpa [#allocation7], 0 }
  0x13   :  { %29 = vsyncpa [#allocation7 + $0x1], 0 }
  0x14   :  { %30 = vsyncpa [#allocation21], 0 }
  0x15   :  { %32 = vsyncpa [#allocation21 + $0x1], 0  ;;  %s4838_s29 = smov 0   ;;  %s4840_s30 = smov 0  }
  0x16   :  { %s4842_s15 = smov 0   ;;  %s4844_s16 = smov 0  }
  0x17   :  { %s4846_s17 = smov 0   ;;  %s4848_s18 = smov 0  }
  0x18   :  { %s4850_s19 = smov 0   ;;  %s4852_s20 = smov 0  }
  0x19   :  { %s4854_s21 = smov 0   ;;  %s4856_s22 = smov 0  }
  0x1a   :  { %s4858_s23 = smov 0  }
  0x1b LB: > { %7439 = sst [smem:[#allocation34_spill]] %s4694_s29  ;;  %s3937_s24 = sadd.s32 4294967295, %s4734_s23   ;;  %s4734_s23 = sphi %s4858_s23, %s38_s23   ;;  %s4730_s22 = sphi %s4856_s22, %s7619_s22   ;;  %s4726_s21 = sphi %s4854_s21, %s7618_s21   ;;  %s4722_s20 = sphi %s4852_s20, %s7617_s20   ;;  %s4718_s19 = sphi %s4850_s19, %s7616_s19   ;;  %s4714_s18 = sphi %s4848_s18, %s7615_s18   ;;  %s4710_s17 = sphi %s4846_s17, %s7614_s17   ;;  %s4706_s16 = sphi %s4844_s16, %s7613_s16   ;;  %s4702_s15 = sphi %s4842_s15, %s7607_s15   ;;  %s4698_s30 = sphi %s4840_s30, %s7612_s30   ;;  %s4694_s29 = sphi %s4838_s29, %s7611_s29  }
  0x1c   : > { %7440 = sst [smem:[#allocation35_spill]] %s4702_s15  ;;  %s3938_s25 = sadd.s32 4294967294, %s4734_s23  }
  0x1d   : > { %7441 = sst [smem:[#allocation36_spill]] %s4706_s16  ;;  %s47_s26 = sadd.s32 1, %s4726_s21 }
  0x1e   : > { %7442 = sst [smem:[#allocation37_spill]] %s4718_s19  ;;  %s50_s27 = sadd.s32 1, %s4730_s22 }
  0x1f   : > { %7443 = sst [smem:[#allocation38_spill]] %s4722_s20  ;;  %p48_p0 = scmp.ge.s32.totalorder %s47_s26, 2 }
  0x20   : > { %s59_s28 = sadd.s32 1, %s4714_s18  ;;  %p66_p1 = scmp.ne.s32.totalorder %s4714_s18, %s4710_s17 }
  0x21   : > { %p67_p2 = scmp.eq.s32.totalorder %s4734_s23, 0  ;;  %s7621_s26 = smov (%p48_p0, %s47_s26), 0 }
  0x22   : > { %7444 = sst [smem:[#allocation39_spill]] %s7621_s26  ;;  %s7623_s27 = smov (!%p48_p0, %s50_s27), %s4730_s22 }
  0x23   : > { %s55_s14 = ssub.s32 %s4726_s21, %s7621_s26  ;;  %p4906_p3 = por %p67_p2, %p66_p1 }
  0x24   : > { %p52_p4 = scmp.ge.s32.totalorder %s7623_s27, 2  ;;  %p72_p5 = scmp.ne.s32.totalorder %s4710_s17, %s4706_s16 }
  0x25   : > { %p4912_p6 = scmp.eq.s32.totalorder %s3937_s24, 0  ;;  %p4916_p7 = scmp.eq.s32.totalorder %s3937_s24, 3 }
  0x26   : > { %s7625_s27 = smov (%p52_p4, %s7623_s27), 0  ;;  %p4936_p10 = scmp.eq.s32.totalorder %s3938_s25, 3 }
  0x27   : > { %7448 = sst [smem:[#allocation40_spill]] %s7625_s27  ;;  %p4924_p8 = por %p4912_p6, %p72_p5 }
  0x28   : > { %p4930_p9 = por %p4916_p7, %p66_p1  ;;  %s54_s24 = ssub.s32 %s4730_s22, %s7625_s27 }
  0x29   : > { %s56_s9 = sor.u32 %s55_s14, %s54_s24  ;;  %p363_p11 = scmp.eq.s32.totalorder %s54_s24, 0 }
  0x2a   : > { %s7450_s16 = scalar_select %p4930_p9, 1, 0 }
  0x2b   : > { %p57_p12 = scmp.eq.s32.totalorder %s56_s9, 0  ;;  %p4942_p13 = por %p4936_p10, %p72_p5 }
  0x2c   : > { %s365_s4 = sadd.s32 1, %s4702_s15  ;;  %p375_p0 = scmp.ne.s32.totalorder %s4702_s15, %s4698_s30 }
  0x2d   : > { %s7452_s19 = scalar_select %p4942_p13, 1, 0 }
  0x2e   : > { %s4950_s2 = scalar_select %p57_p12, %s4714_s18, %s59_s28  }
  0x2f   : > { %7453 = sst [smem:[#allocation41_spill]] %s7452_s19  ;;  %p4957_p1 = por %p375_p0, %p4916_p7 }
  0x30   : > { %7454 = sst [smem:[#allocation42_spill]] %s4950_s2  ;;  %p381_p2 = scmp.ne.s32.totalorder %s4698_s30, %s4694_s29 }
  0x31   : > { %s4953_s27 = scalar_select %p363_p11, %s4702_s15, %s365_s4  }
  0x32   : > { %s7456_s25 = scalar_select %p4957_p1, 1, 0 }
  0x33   : > { %7455 = sst [smem:[#allocation43_spill]] %s4953_s27  ;;  %p3939_p4 = scmp.ge.s32.totalorder %s4734_s23, 1 }
  0x34   : > { %7457 = sst [smem:[#allocation44_spill]] %s7456_s25  ;;  %p389_p9 = scmp.lt.s32.totalorder %s4734_s23, 5 }
  0x35   : > { %p4967_p5 = por %p381_p2, %p4936_p10  ;;  %s7461_s1 = sld [smem:[#allocation56_spill]] }
  0x36   : > { %p4971_p13 = pnand %p3939_p4, %p389_p9  ;;  %s4736_s24 = smov [#allocation8]  }
  0x37   : > { %s7458_s9 = scalar_select %p4967_p5, 1, 0 }
  0x38   : > { %p4135_p7 = pneg %p4971_p13  ;;  %s403_s2 = sshll.u32 %s4736_s24, 4  ;;  %s404_s2 = int_to_ptr.vmem [resolvable:$true] %s403_s2 }
  0x39   : > { %7459 = sst [smem:[#allocation45_spill]] %s7458_s9  ;;  %s4737_s28 = smov [#allocation11]  }
  0x3a   : > { %s7462_s5 = sld [smem:[#allocation60_spill]]  ;;  %p4985_p9 = pnand %p4135_p7, %p4912_p6 }
  0x3b   : > { %s401_s12 = sshll.u32 %s7461_s1, 4  ;;  %s434_s4 = sshll.u32 %s4737_s28, 4  ;;  %s402_s12 = int_to_ptr.hbm [resolvable:$true] %s401_s12  ;;  %s435_s4 = int_to_ptr.vmem [resolvable:$true] %s434_s4 }
  0x3c   : > { %4138 = dma.hbm_to_vmem [thread:$0]  (!%p4985_p9), %s402_s12, 16, %s404_s2, [#allocation9]  }
  0x3d   : > { %s4738_s24 = smov 128   ;;  %s4739_s1 = smov 8  }
  0x3e   : > { %s7464_s7 = sld [smem:[#allocation61_spill]]  ;;  %s4740_s29 = smov [#allocation14]  }
  0x3f   : > { %s462_s19 = sshll.u32 %s4740_s29, 4  ;;  %s7465_s3 = sld [smem:[#allocation58_spill]]  ;;  %s463_s19 = int_to_ptr.vmem [resolvable:$true] %s462_s19 }
  0x40   : > { %s432_s15 = sshll.u32 %s7462_s5, 4  ;;  %s4743_s27 = smov 4   ;;  %s433_s15 = int_to_ptr.hbm [resolvable:$true] %s432_s15 }
  0x41   : > { %4144 = dma.hbm_to_vmem [thread:$0]  (!%p4985_p9), %s433_s15, 256, %s435_s4, [#allocation12], %s4738_s24, %s4738_s24, %s4739_s1  }
  0x42   : > { %s4741_s15 = smov [#allocation10]   ;;  %s4742_s4 = smov 64  }
  0x43   : > { %s417_s12 = sshll.u32 %s4741_s15, 4  ;;  %s446_s25 = sshll.u32 %s7318_s6, 4  ;;  %s418_s12 = int_to_ptr.vmem [resolvable:$true] %s417_s12  ;;  %s447_s25 = int_to_ptr.hbm [resolvable:$true] %s446_s25 }
  0x44   : > { %s460_s5 = sshll.u32 %s7464_s7, 4  ;;  %s4744_s28 = smov [#allocation13]   ;;  %s461_s5 = int_to_ptr.hbm [resolvable:$true] %s460_s5 }
  0x45   : > { %s415_s2 = sshll.u32 %s7465_s3, 4  ;;  %s448_s3 = sshll.u32 %s4744_s28, 4  ;;  %s416_s2 = int_to_ptr.hbm [resolvable:$true] %s415_s2  ;;  %s449_s3 = int_to_ptr.vmem [resolvable:$true] %s448_s3 }
  0x46   : > { %4150 = dma.hbm_to_vmem [thread:$0]  (!%p4985_p9), %s461_s5, 4096, %s463_s19, [#allocation15], %s4738_s24, %s4738_s24, %s4739_s1  }
  0x47   : > { %4141 = dma.hbm_to_vmem [thread:$0]  (!%p4985_p9), %s416_s2, 1024, %s418_s12, [#allocation9], %s4742_s4, %s4742_s4, %s4743_s27  }
  0x48   : > { %s474_s19 = sshll.u32 %s7320_s8, 4  ;;  %s4745_s2 = smov [#allocation16]   ;;  %s475_s19 = int_to_ptr.hbm [resolvable:$true] %s474_s19 }
  0x49   : > { %4147 = dma.hbm_to_vmem [thread:$0]  (!%p4985_p9), %s447_s25, 4096, %s449_s3, [#allocation12], %s4738_s24, %s4738_s24, %s4739_s1  }
  0x4a   : > { %s476_s15 = sshll.u32 %s4745_s2, 4  ;;  %s494_s10 = sshll.u32 %s7323_s11, 4  ;;  %s477_s15 = int_to_ptr.vmem [resolvable:$true] %s476_s15  ;;  %s495_s10 = int_to_ptr.hbm [resolvable:$true] %s494_s10 }
  0x4b   : > { %4153 = dma.hbm_to_vmem [thread:$0]  (!%p4985_p9), %s475_s19, 256, %s477_s15, [#allocation15], %s4738_s24, %s4738_s24, %s4739_s1  }
  0x4c   : > { %s4746_s7 = smov [#allocation17]   ;;  %p3947_p10 = scmp.ge.s32.totalorder %s4734_s23, 4 }
  0x4d   : > { %s496_s28 = sshll.u32 %s4746_s7, 4  ;;  %s497_s28 = int_to_ptr.vmem [resolvable:$true] %s496_s28 }
  0x4e   : > { %4156 = dma.hbm_to_vmem [thread:$0]  (!%p4985_p9), %s495_s10, 1024, %s497_s28, [#allocation18], %s4742_s4, %s4742_s4, %s4743_s27  }
  0x4f   : > { %509 = sbr.rel (%p3947_p10) target bundleno = 100 (0x64), region = 64 }
  0x54   : > { %s513_s3 = sand.u32 1, %s4714_s18   ;;  %s3950_s25 = sshll.u32 %s4726_s21, 1 }
  0x55   : > { %s3948_s5 = sshll.u32 %s513_s3, 5  ;;  %s4052_s1 = sshll.u32 %s4730_s22, 3 }
  0x56   : > { %s523_s24 = sadd.s32 %s4052_s1, %s3950_s25  ;;  %s517_s2 = scalar_lea.vmem [#allocation5], %s3948_s5 }
  0x57   : > { %s3952_s19 = sshll.u32 %s523_s24, 3  ;;  %s540_s9 = sshll.u32 %s517_s2, 4  ;;  %s541_s9 = int_to_ptr.vmem [resolvable:$true] %s540_s9 }
  0x58   : > { %s525_s15 = scalar_lea.hbm %s7312_s0, %s3952_s19  ;;  %s4747_s29 = smov 512  }
  0x59   : > { %s4102_s12 = scalar_select %p4906_p3, [#allocation0], [#allocation26] }
  0x5a   : > { %4103 = sst [smem:[#allocation23]] (%p4906_p3), %s4747_s29  ;;  %s538_s7 = sshll.u32 %s525_s15, 4  ;;  %s539_s7 = int_to_ptr.hbm [resolvable:$true] %s538_s7 }
  0x5b   : > { %s530_s10 = sld [smem:[%s4102_s12]]   ;;  %s4748_s28 = smov 256  }
  0x5c   : > { %4104 = sst [smem:[#allocation23 + $0x1]] (%p4906_p3), %s4748_s28  ;;  %s4749_s25 = smov 2  }
  0x5d   : > { %4105 = sst [smem:[#allocation23 + $0x2]] (%p4906_p3), %s4749_s25  ;;  %s4750_s5 = smov 128  }
  0x5e   : > { %4106 = sst [smem:[#allocation23 + $0x3]] (%p4906_p3), %s4750_s5  ;;  %s4751_s24 = smov 8  }
  0x5f   : > { %4107 = sst [smem:[#allocation23 + $0x4]] (%p4906_p3), %s4750_s5  ;;  %s514_s2 = scalar_lea.sflag [#allocation6], %s513_s3 }
  0x60   : > { %4108 = sst [smem:[#allocation23 + $0x5]] (%p4906_p3), %s4751_s24  ;;  %s4752_s4 = smov [#allocation22]  }
  0x61   : > { %s3953_s1 = sshll.u32 %s530_s10, 26 }
  0x62   : > { %s3954_s19 = sadd.s32 134217728, %s3953_s1 }
  0x63   : > { %4109 = dma.general (%p4906_p3), %s539_s7, 512, %s541_s9, %s514_s2, %s4752_s4, [#allocation23], %s3954_s19, 0  }
  0x64 PF: > { %565 = sbr.rel (%p4971_p13) target bundleno = 1167 (0x48f), region = 72 }
  0x69   : > { %s5056_s27 = sand.u32 1, %s4710_s17  }
  0x6a   : > { %s3956_s15 = sshll.u32 %s5056_s27, 5  ;;  %s568_s12 = scalar_lea.sflag [#allocation6], %s5056_s27 }
  0x6b   : > { %s5062_s29 = scalar_lea.vmem [#allocation5], %s3956_s15 }
  0x6c   : > { %4665 = dma.done.wait (%p4924_p8), %s568_s12, 512  }
  0x6d   : > { %4667 = vsyncadd (%p4924_p8), %s568_s12, 4294966784 }
  0x6e   : > { %4669 = dma.done.wait (%p4912_p6), [#allocation9], 1040  }
  0x6f   : > { %4671 = vsyncadd (%p4912_p6), [#allocation9], 4294966256 }
  0x70   : > { %4673 = dma.done.wait (%p4912_p6), [#allocation12], 4352  }
  0x71   : > { %4675 = vsyncadd (%p4912_p6), [#allocation12], 4294962944 }
  0x72   : > { %4677 = dma.done.wait (%p4912_p6), [#allocation15], 4352  }
  0x73   : > { %4679 = vsyncadd (%p4912_p6), [#allocation15], 4294962944 }
  0x74   : > { %4681 = dma.done.wait (%p4912_p6), [#allocation18], 1024  }
  0x75   : > { %4683 = vsyncadd (%p4912_p6), [#allocation18], 4294966272  ;;  %v5085_v0 = vld [vmem:[%s5062_s29 + $0x10] sm:$0xff]  ;;  %v5088_v1 = vld [vmem:[%s5062_s29] sm:$0xff]  ;;  %s654_s13 = sand.u32 1, %s4698_s30   ;;  %s7466_s3 = sld [smem:[#allocation57_spill]] }
  0x76   : > { %670 = vadd.xlane.f32.xlu0 %v5085_v0  ;;  %v676_v2 = vmul.f32 %v5085_v0, %v5085_v0  ;;  %666 = vadd.xlane.f32.xlu2 %v5088_v1  ;;  %v5095_v3 = vld [vmem:[%s5062_s29 + $0x18] sm:$0xff]  ;;  %v5098_v4 = vld [vmem:[%s5062_s29 + $0x8] sm:$0xff]  ;;  %v674_v6 = vmul.f32 %v5088_v1, %v5088_v1  ;;  %s5111_s20 = sshll.u32 %s654_s13, 5  ;;  %s7467_s7 = sld [smem:[#allocation59_spill]] }
  0x77   : > { %v677_v5 = vmul.f32 %v5095_v3, %v5095_v3  ;;  %v675_v7 = vmul.f32 %v5098_v4, %v5098_v4  ;;  %v4060_v8 = vld [vmem:[#allocation10 + $0x38] sm:$0xff]  ;;  %v4059_v9 = vld [vmem:[#allocation10 + $0x30] sm:$0xff]  ;;  %v4058_v10 = vld [vmem:[#allocation10 + $0x28] sm:$0xff]  ;;  %s5147_s28 = scalar_lea.vmem [#allocation19], %s3956_s15  ;;  %s5150_s25 = scalar_lea.vmem [#allocation20], %s5111_s20 }
  0x78   : > { %682 = vadd.xlane.f32.xlu1 %v676_v2  ;;  %4072 = vmatpush.bf16.msra.mxu2 %v4060_v8  ;;  %v4057_v11 = vld [vmem:[#allocation10 + $0x20] sm:$0xff]  ;;  %v4056_v12 = vld [vmem:[#allocation10 + $0x18] sm:$0xff]  ;;  %v4055_v16 = vld [vmem:[#allocation10 + $0x10] sm:$0xff]  ;;  %s7468_s5 = sld [smem:[#allocation37_spill]] }
  0x79   : > { %844 = vmatpush.bf16.msra.mxu0 %v4060_v8  ;;  %v4054_v21 = vld [vmem:[#allocation10 + $0x8] sm:$0xff]  ;;  %v4053_v26 = vld [vmem:[#allocation10] sm:$0xff] }
  0x7c   : > { %4073 = vmatpush.bf16.msra.mxu2 %v4059_v9 }
  0x7d   : > { %845 = vmatpush.bf16.msra.mxu0 %v4059_v9 }
  0x7e   : > { %672 = vadd.xlane.f32.xlu0 %v5095_v3  ;;  %668 = vadd.xlane.f32.xlu2 %v5098_v4  ;;  %p3998_p3 = scmp.ne.s32.totalorder %s7468_s5, 0 }
  0x80   : > { %684 = vadd.xlane.f32.xlu1 %v677_v5  ;;  %4074 = vmatpush.bf16.msra.mxu2 %v4058_v10  ;;  %v4294_v5 = vld [vmem:[#allocation8] ss:$0 sm:$0xff] }
  0x81   : > { %846 = vmatpush.bf16.msra.mxu0 %v4058_v10 }
  0x84   : > { %4075 = vmatpush.bf16.msra.mxu2 %v4057_v11 }
  0x85   : > { %847 = vmatpush.bf16.msra.mxu0 %v4057_v11 }
  0x86   : > { %678 = vadd.xlane.f32.xlu0 %v674_v6 }
  0x88   : > { %680 = vadd.xlane.f32.xlu1 %v675_v7  ;;  %4076 = vmatpush.bf16.msra.mxu2 %v4056_v12 }
  0x89   : > { %848 = vmatpush.bf16.msra.mxu0 %v4056_v12 }
  0x8c   : > { %4077 = vmatpush.bf16.msra.mxu2 %v4055_v16 }
  0x8d   : > { %849 = vmatpush.bf16.msra.mxu0 %v4055_v16  ;;  %v4295_v16 = vld [vmem:[%s7466_s3] ss:$0 sm:$0xff] }
  0x90   : > { %4078 = vmatpush.bf16.msra.mxu2 %v4054_v21 }
  0x91   : > { %850 = vmatpush.bf16.msra.mxu0 %v4054_v21 }
  0x94   : > { %4079 = vmatpush.bf16.msra.mxu2 %v4053_v26 }
  0x95   : > { %851 = vmatpush.bf16.msra.mxu0 %v4053_v26 }
  0xe9   : > { %v671_v13 = vpop.xlane.xlu0 %670  ;;  %v667_v14 = vpop.xlane.xlu2 %666 }
  0xea   : > { %v5113_v15 = vmul.f32 0.03125, %v671_v13  ;;  %v5121_v31 = vmul.f32 0.03125, %v667_v14 }
  0xeb   : > { %v683_v17 = vpop.xlane.xlu1 %682 }
  0xec   : > { %v696_v18 = vmul.f32 %v5113_v15, %v5113_v15  ;;  %v692_v19 = vmul.f32 0.03125, %v683_v17  ;;  %v694_v37 = vmul.f32 %v5121_v31, %v5121_v31  ;;  %v708_v59 = vsub.f32 %v5085_v0, %v5113_v15 }
  0xee   : > { %v700_v20 = vsub.f32 %v692_v19, %v696_v18 }
  0xf0   : > { %v704_v22 = vmax.f32 %v700_v20, 0.0 }
  0xf1   : > { %v673_v23 = vpop.xlane.xlu0 %672  ;;  %v669_v28 = vpop.xlane.xlu2 %668 }
  0xf2   : > { %v712_v24 = vadd.f32 1e-05, %v704_v22  ;;  %v5117_v25 = vmul.f32 0.03125, %v673_v23  ;;  %v5123_v32 = vmul.f32 0.03125, %v669_v28 }
  0xf3   : > { %v685_v27 = vpop.xlane.xlu1 %684 }
  0xf4   : > { %4297 = vrsqrt.f32 %v712_v24  ;;  %v697_v29 = vmul.f32 %v5117_v25, %v5117_v25  ;;  %v693_v30 = vmul.f32 0.03125, %v685_v27  ;;  %v695_v38 = vmul.f32 %v5123_v32, %v5123_v32 }
  0xf5   : > { %vm740_vm1 = vweird.f32 %v712_v24  ;;  %v709_v9 = vsub.f32 %v5095_v3, %v5117_v25  ;;  %v706_v3 = vsub.f32 %v5088_v1, %v5121_v31 }
  0xf6   : > { %v701_v33 = vsub.f32 %v693_v30, %v697_v29 }
  0xf8   : > { %v705_v34 = vmax.f32 %v701_v33, 0.0 }
  0xf9   : > { %v679_v35 = vpop.xlane.xlu0 %678 }
  0xfa   : > { %v4298_v36 = vpop.eup %4297  ;;  %v690_v39 = vmul.f32 0.03125, %v679_v35  ;;  %v713_v41 = vadd.f32 1e-05, %v705_v34  ;;  %v4296_v34 = vld [vmem:[%s7467_s7] ss:$0 sm:$0xff] }
  0xfb   : > { %v735_v40 = vmul.f32 %v4298_v36, %v712_v24  ;;  %v681_v42 = vpop.xlane.xlu1 %680  ;;  %vm741_vm0 = vweird.f32 %v4298_v36  ;;  %v707_v24 = vsub.f32 %v5098_v4, %v5123_v32 }
  0xfc   : > { %v698_v43 = vsub.f32 %v690_v39, %v694_v37  ;;  %v691_v44 = vmul.f32 0.03125, %v681_v42  ;;  %4299 = vrsqrt.f32 %v713_v41  ;;  %vm742_vm2 = vmor %vm740_vm1, %vm741_vm0  ;;  %vm750_vm4 = vweird.f32 %v713_v41 }
  0xfd   : > { %v736_v45 = vmul.f32 %v4298_v36, %v735_v40 }
  0xfe   : > { %v702_v46 = vmax.f32 %v698_v43, 0.0  ;;  %v699_v47 = vsub.f32 %v691_v44, %v695_v38 }
  0xff   : > { %v737_v48 = vmul.f32 0.5, %v736_v45 }
 0x100   : > { %v710_v49 = vadd.f32 1e-05, %v702_v46  ;;  %v703_v50 = vmax.f32 %v699_v47, 0.0 }
 0x101   : > { %v738_v51 = vsub.f32 1.5, %v737_v48 }
 0x102   : > { %4301 = vrsqrt.f32 %v710_v49  ;;  %v711_v52 = vadd.f32 1e-05, %v703_v50  ;;  %v4300_v53 = vpop.eup %4299  ;;  %vm720_vm7 = vweird.f32 %v710_v49 }
 0x103   : > { %v739_v54 = vmul.f32 %v4298_v36, %v738_v51  ;;  %v745_v55 = vmul.f32 %v4300_v53, %v713_v41  ;;  %vm751_vm3 = vweird.f32 %v4300_v53 }
 0x104   : > { %4303 = vrsqrt.f32 %v711_v52  ;;  %vm752_vm5 = vmor %vm750_vm4, %vm751_vm3  ;;  %vm730_vm10 = vweird.f32 %v711_v52 }
 0x105   : > { %v746_v56 = vmul.f32 %v4300_v53, %v745_v55  ;;  %v743_v57 = vsel %vm742_vm2, %v4298_v36, %v739_v54 }
 0x106   : > { %v756_v2 = vmul.f32 %v743_v57, %v708_v59 }
 0x107   : > { %v747_v60 = vmul.f32 0.5, %v746_v56 }
 0x108   : > { %v4302_v58 = vpop.eup %4301  ;;  %v764_v13 = vmul.f32 %v4294_v5, %v756_v2 }
 0x109   : > { %v715_v61 = vmul.f32 %v4302_v58, %v710_v49  ;;  %v748_v63 = vsub.f32 1.5, %v747_v60  ;;  %vm721_vm6 = vweird.f32 %v4302_v58 }
 0x10a   : > { %v4304_v62 = vpop.eup %4303  ;;  %vm722_vm9 = vmor %vm720_vm7, %vm721_vm6  ;;  %v772_v21 = vadd.f32 %v4295_v16, %v764_v13 }
 0x10b   : > { %v716_v6 = vmul.f32 %v4302_v58, %v715_v61  ;;  %v725_v7 = vmul.f32 %v4304_v62, %v711_v52  ;;  %v749_v8 = vmul.f32 %v4300_v53, %v748_v63  ;;  %vm731_vm8 = vweird.f32 %v4304_v62 }
 0x10c   : > { %vm732_vm11 = vmor %vm730_vm10, %vm731_vm8 }
 0x10d   : > { %v717_v10 = vmul.f32 0.5, %v716_v6  ;;  %v726_v11 = vmul.f32 %v4304_v62, %v725_v7  ;;  %v753_v12 = vsel %vm752_vm5, %v4300_v53, %v749_v8 }
 0x10e   : > { %v757_v15 = vmul.f32 %v753_v12, %v709_v9 }
 0x10f   : > { %v718_v0 = vsub.f32 1.5, %v717_v10  ;;  %v727_v14 = vmul.f32 0.5, %v726_v11 }
 0x110   : > { %v765_v19 = vmul.f32 %v4294_v5, %v757_v15 }
 0x111   : > { %v719_v17 = vmul.f32 %v4302_v58, %v718_v0  ;;  %v728_v18 = vsub.f32 1.5, %v727_v14 }
 0x112   : > { %v773_v22 = vadd.f32 %v4295_v16, %v765_v19 }
 0x113   : > { %v729_v20 = vmul.f32 %v4304_v62, %v728_v18  ;;  %v723_v23 = vsel %vm722_vm9, %v4302_v58, %v719_v17 }
 0x114   : > { %v754_v25 = vmul.f32 %v723_v23, %v706_v3  ;;  %v775_v26 = vpack.c.bf16 %v773_v22, %v772_v21 }
 0x115   : > { %v733_v27 = vsel %vm732_vm11, %v4304_v62, %v729_v20 }
 0x116   : > { %v755_v28 = vmul.f32 %v733_v27, %v707_v24  ;;  %v762_v29 = vmul.f32 %v4294_v5, %v754_v25  ;;  %857 = vmatmul.bf16.vlgmr.msra.gmra.mxu2 %v775_v26 }
 0x118   : > { %v763_v30 = vmul.f32 %v4294_v5, %v755_v28  ;;  %v770_v1 = vadd.f32 %v4295_v16, %v762_v29 }
 0x11a   : > { %v771_v31 = vadd.f32 %v4295_v16, %v763_v30 }
 0x11c   : > { %v774_v33 = vpack.c.bf16 %v771_v31, %v770_v1 }
 0x11e   : > { %852 = vmatmul.bf16.vlgmr.msra.gmra.mxu0 %v774_v33 }
 0x199   : > { %v858_v35 = vpop.f32.mrf.mxu2 }
 0x19a   : > { %v859_v4 = vadd.f32 %v4296_v34, %v858_v35 }
 0x19b   : > { %v853_v32 = vpop.f32.mrf.mxu0 }
 0x19c   : > { %v854_v36 = vadd.f32 %v4296_v34, %v853_v32 }
 0x1a0   : > { %866 = sbr.rel (%p3998_p3) target bundleno = 430 (0x1ae), region = 108 }
 0x1a1   : > { %v860_v37 = vpop.f32.mrf.mxu2 }
 0x1a2   : > { %v5143_v38 = vadd.f32 %v4296_v34, %v860_v37 }
 0x1a3   : > { %v855_v39 = vpop.f32.mrf.mxu0 }
 0x1a4   : > { %v856_v40 = vadd.f32 %v4296_v34, %v855_v39 }
 0x1a5   : > { %v4753_v41 = vmov 0.0  }
 0x1a6   : > { %867 = vst [vmem:[#allocation4 + $0x10] sm:$0xff] %v4753_v41 }
 0x1a7   : > { %868 = vst [vmem:[#allocation4] sm:$0xff] %v4753_v41 }
 0x1a8   : > { %869 = vst [vmem:[#allocation4 + $0x18] sm:$0xff] %v4753_v41 }
 0x1a9   : > { %870 = vst [vmem:[#allocation4 + $0x8] sm:$0xff] %v4753_v41 }
 0x1aa   : > { %871 = vst [vmem:[#allocation2] sm:$0xff] %v4753_v41 }
 0x1ab   : > { %872 = vst [vmem:[#allocation2 + $0x18] sm:$0xff] %v4753_v41 }
 0x1ac   : > { %873 = vst [vmem:[#allocation3] sm:$0xff] %v4753_v41 }
 0x1ad   : > { %874 = vst [vmem:[#allocation3 + $0x18] sm:$0xff] %v4753_v41 }
 0x1ae PF: > { %s7469_s1 = sld [smem:[#allocation37_spill]] }
 0x1b4   : > { %p3999_p6 = scmp.le.s32.totalorder %s7469_s1, 0 }
 0x1b6   : > { %878 = sbr.rel (%p3999_p6) target bundleno = 446 (0x1be), region = 112 }
 0x1bb   : > { %v879_v42 = vld [vmem:[#allocation3 + $0x15] sm:$0x7]  ;;  %v880_v43 = vld [vmem:[#allocation3 + $0x2d] sm:$0x7] }
 0x1bc   : > { %881 = vst [vmem:[#allocation3 + $0x5] sm:$0x7] %v879_v42 }
 0x1bd   : > { %882 = vst [vmem:[#allocation3 + $0x1d] sm:$0x7] %v880_v43 }
 0x1be PF: > { %v5154_v44 = vld [vmem:[#allocation4 + $0x10] sm:$0xff]  ;;  %v5156_v45 = vld [vmem:[#allocation4 + $0x18] sm:$0xff]  ;;  %887 = vst [vmem:[#allocation2 + $0x8] sm:$0xff] %v854_v36  ;;  %v895_v46 = vld [vmem:[#allocation11] sm:$0xff]  ;;  %vm1001_vm12 = vcmask 1041409   ;;  %vm1004_vm13 = vcmask 1042434  }
 0x1bf   : > { %7470 = vst [vmem:[#allocation46_spill] sm:$0xff] %v5154_v44  ;;  %v5159_v47 = vperm.slane %v5154_v44, 0  ;;  %v5162_v48 = vperm.slane %v5156_v45, 0  ;;  %v5164_v49 = vld [vmem:[#allocation13] sm:$0xff]  ;;  %v5166_v50 = vld [vmem:[#allocation13 + $0x10] sm:$0xff]  ;;  %v929_v51 = vperm.slane %v895_v46, 0 }
 0x1c0   : > { %7471 = vst [vmem:[#allocation47_spill] sm:$0xff] %v5156_v45  ;;  %vm1007_vm14 = vcmask 1043459   ;;  %v5169_v52 = vld [vmem:[#allocation13 + $0x20] sm:$0xff]  ;;  %v5183_v57 = vld [vmem:[#allocation13 + $0x30] sm:$0xff]  ;;  %vm1010_vm15 = vcmask 1044484   ;;  %vm1013_vm0 = vcmask 1045509  }
 0x1c1   : > { %888 = vst [vmem:[#allocation2 + $0x10] sm:$0xff] %v856_v40  ;;  %v936_v53 = vmul.f32 %v5159_v47, %v5164_v49  ;;  %v937_v54 = vmul.f32 %v5159_v47, %v5166_v50  ;;  %v5177_v55 = vmul.f32 %v5162_v48, %v5164_v49  ;;  %v5181_v56 = vmul.f32 %v5162_v48, %v5166_v50  ;;  %v5185_v58 = vld [vmem:[#allocation13 + $0x40] sm:$0xff]  ;;  %v5196_v63 = vld [vmem:[#allocation13 + $0x50] sm:$0xff]  ;;  %s7570_s24 = sld [smem:[#allocation37_spill]] }
 0x1c2   : > { %889 = vst [vmem:[#allocation2 + $0x20] sm:$0xff] %v859_v4  ;;  %v5187_v59 = vmul.f32 %v929_v51, %v854_v36  ;;  %v5189_v60 = vmul.f32 %v929_v51, %v856_v40  ;;  %v5191_v61 = vmul.f32 %v929_v51, %v859_v4  ;;  %v5194_v62 = vmul.f32 %v929_v51, %v5143_v38  ;;  %v5208_v8 = vld [vmem:[#allocation13 + $0x60] sm:$0xff]  ;;  %v5210_v9 = vld [vmem:[#allocation13 + $0x70] sm:$0xff] }
 0x1c3   : > { %890 = vst [vmem:[#allocation2 + $0x28] sm:$0xff] %v5143_v38  ;;  %v938_v2 = vmul.f32 %v5159_v47, %v5169_v52  ;;  %v939_v5 = vmul.f32 %v5159_v47, %v5183_v57  ;;  %v940_v6 = vmul.f32 %v5159_v47, %v5185_v58  ;;  %v5206_v7 = vmul.f32 %v5162_v48, %v5169_v52  ;;  %v5227_v0 = vld [vmem:[#allocation13 + $0x80] sm:$0xff]  ;;  %v5241_v18 = vld [vmem:[#allocation13 + $0x90] sm:$0xff] }
 0x1c4   : > { %891 = vst [vmem:[#allocation3 + $0x8] sm:$0xff] %v854_v36  ;;  %v941_v10 = vmul.f32 %v5159_v47, %v5196_v63  ;;  %v5216_v11 = vmul.f32 %v5162_v48, %v5183_v57  ;;  %v5220_v12 = vmul.f32 %v5162_v48, %v5185_v58  ;;  %v5224_v13 = vmul.f32 %v5162_v48, %v5196_v63  ;;  %v5243_v19 = vld [vmem:[#allocation13 + $0xa0] sm:$0xff]  ;;  %v5251_v23 = vld [vmem:[#allocation13 + $0xb0] sm:$0xff] }
 0x1c5   : > { %892 = vst [vmem:[#allocation3 + $0x10] sm:$0xff] %v856_v40  ;;  %v942_v14 = vmul.f32 %v5159_v47, %v5208_v8  ;;  %v943_v15 = vmul.f32 %v5159_v47, %v5210_v9  ;;  %v5235_v16 = vmul.f32 %v5162_v48, %v5208_v8  ;;  %v5239_v17 = vmul.f32 %v5162_v48, %v5210_v9  ;;  %v5263_v28 = vld [vmem:[#allocation13 + $0xc0] sm:$0xff]  ;;  %v5265_v29 = vld [vmem:[#allocation13 + $0xd0] sm:$0xff] }
 0x1c6   : > { %893 = vst [vmem:[#allocation3 + $0x20] sm:$0xff] %v859_v4  ;;  %v944_v3 = vmul.f32 %v5159_v47, %v5227_v0  ;;  %v5249_v20 = vmul.f32 %v5162_v48, %v5227_v0  ;;  %v1000_v21 = vrot.slane %v937_v54, 7  ;;  %v1003_v22 = vrot.slane %v938_v2, 6  ;;  %v5274_v34 = vld [vmem:[#allocation13 + $0xe0] sm:$0xff]  ;;  %v5286_v37 = vld [vmem:[#allocation13 + $0xf0] sm:$0xff] }
 0x1c7   : > { %894 = vst [vmem:[#allocation3 + $0x28] sm:$0xff] %v5143_v38  ;;  %v945_v24 = vmul.f32 %v5159_v47, %v5241_v18  ;;  %v946_v25 = vmul.f32 %v5159_v47, %v5243_v19  ;;  %v961_v26 = vmul.f32 %v5162_v48, %v5241_v18  ;;  %v5261_v27 = vmul.f32 %v5162_v48, %v5243_v19  ;;  %p4000_p8 = scmp.ne.s32.totalorder %s7570_s24, 1 }
 0x1c8   : > { %7472 = vst [vmem:[#allocation48_spill] sm:$0xff] %v5241_v18  ;;  %v947_v30 = vmul.f32 %v5159_v47, %v5251_v23  ;;  %v5271_v1 = vmul.f32 %v5162_v48, %v5251_v23  ;;  %v1002_v31 = vsel %vm1001_vm12, %v1000_v21, %v936_v53  ;;  %v1006_v33 = vrot.slane %v939_v5, 5 }
 0x1c9   : > { %7473 = vst [vmem:[#allocation49_spill] sm:$0xff] %v5243_v19  ;;  %v948_v35 = vmul.f32 %v5159_v47, %v5263_v28  ;;  %v949_v4 = vmul.f32 %v5159_v47, %v5265_v29  ;;  %v964_v32 = vmul.f32 %v5162_v48, %v5263_v28  ;;  %v5284_v36 = vmul.f32 %v5162_v48, %v5265_v29 }
 0x1ca   : > { %7474 = vst [vmem:[#allocation50_spill] sm:$0xff] %v5251_v23  ;;  %v950_v38 = vmul.f32 %v5159_v47, %v5274_v34  ;;  %v5292_v39 = vmul.f32 %v5162_v48, %v5274_v34  ;;  %v1005_v40 = vsel %vm1004_vm13, %v1003_v22, %v1002_v31  ;;  %v1009_v41 = vrot.slane %v940_v6, 4 }
 0x1cb   : > { %7475 = vst [vmem:[#allocation51_spill] sm:$0xff] %v5263_v28  ;;  %v951_v42 = vmul.f32 %v5159_v47, %v5286_v37  ;;  %v5299_v43 = vmul.f32 %v5162_v48, %v5286_v37  ;;  %v1008_v46 = vsel %vm1007_vm14, %v1006_v33, %v1005_v40  ;;  %v1012_v53 = vrot.slane %v941_v10, 3 }
 0x1cc   : > { %7476 = vst [vmem:[#allocation52_spill] sm:$0xff] %v5265_v29  ;;  %v1011_v51 = vsel %vm1010_vm15, %v1009_v41, %v1008_v46  ;;  %v1015_v54 = vrot.slane %v942_v14, 2  ;;  %vm1016_vm1 = vcmask 1046534   ;;  %v1018_v2 = vrot.slane %v943_v15, 1 }
 0x1cd   : > { %7477 = vst [vmem:[#allocation53_spill] sm:$0xff] %v5274_v34  ;;  %vm1019_vm2 = vcmask 1047559   ;;  %v1021_v5 = vrot.slane %v945_v24, 7  ;;  %v1014_v6 = vsel %vm1013_vm0, %v1012_v53, %v1011_v51  ;;  %v1023_v21 = vrot.slane %v946_v25, 6 }
 0x1ce   : > { %7478 = vst [vmem:[#allocation54_spill] sm:$0xff] %v5286_v37  ;;  %v1025_v47 = vrot.slane %v947_v30, 5  ;;  %v1027_v22 = vrot.slane %v948_v35, 4  ;;  %v1017_v48 = vsel %vm1016_vm1, %v1015_v54, %v1014_v6  ;;  %v1029_v33 = vrot.slane %v949_v4, 3 }
 0x1cf   : > { %v1022_v31 = vsel %vm1001_vm12, %v1021_v5, %v944_v3  ;;  %v1031_v40 = vrot.slane %v950_v38, 2  ;;  %v1020_v41 = vsel %vm1019_vm2, %v1018_v2, %v1017_v48  ;;  %v1033_v14 = vrot.slane %v951_v42, 1 }
 0x1d0   : > { %v1024_v10 = vsel %vm1004_vm13, %v1023_v21, %v1022_v31  ;;  %v1035_v15 = vrot.slane %v5181_v56, 7  ;;  %v1037_v46 = vrot.slane %v5206_v7, 6  ;;  %v1039_v25 = vrot.slane %v5216_v11, 5 }
 0x1d1   : > { %v1026_v24 = vsel %vm1007_vm14, %v1025_v47, %v1024_v10  ;;  %v1041_v30 = vrot.slane %v5220_v12, 4  ;;  %v1043_v4 = vrot.slane %v5224_v13, 3  ;;  %v1045_v38 = vrot.slane %v5235_v16, 2 }
 0x1d2   : > { %v1028_v35 = vsel %vm1010_vm15, %v1027_v22, %v1026_v24  ;;  %v1036_v3 = vsel %vm1001_vm12, %v1035_v15, %v5177_v55  ;;  %v1047_v51 = vrot.slane %v5239_v17, 1  ;;  %v1049_v7 = vrot.slane %v961_v26, 7 }
 0x1d3   : > { %v1030_v42 = vsel %vm1013_vm0, %v1029_v33, %v1028_v35  ;;  %v1038_v56 = vsel %vm1004_vm13, %v1037_v46, %v1036_v3  ;;  %v1051_v53 = vrot.slane %v5261_v27, 6  ;;  %v1053_v54 = vrot.slane %v5271_v1, 5 }
 0x1d4   : > { %v1032_v11 = vsel %vm1016_vm1, %v1031_v40, %v1030_v42  ;;  %v1040_v12 = vsel %vm1007_vm14, %v1039_v25, %v1038_v56  ;;  %v1050_v16 = vsel %vm1001_vm12, %v1049_v7, %v5249_v20  ;;  %v1055_v2 = vrot.slane %v964_v32, 4 }
 0x1d5   : > { %v1034_v55 = vsel %vm1019_vm2, %v1033_v14, %v1032_v11  ;;  %v1042_v13 = vsel %vm1010_vm15, %v1041_v30, %v1040_v12  ;;  %v1052_v17 = vsel %vm1004_vm13, %v1051_v53, %v1050_v16  ;;  %v1057_v26 = vrot.slane %v5284_v36, 3 }
 0x1d6   : > { %v1044_v5 = vsel %vm1013_vm0, %v1043_v4, %v1042_v13  ;;  %v1059_v6 = vrot.slane %v5292_v39, 2  ;;  %v1054_v1 = vsel %vm1007_vm14, %v1053_v54, %v1052_v17  ;;  %v1061_v21 = vrot.slane %v5299_v43, 1 }
 0x1d7   : > { %v1046_v27 = vsel %vm1016_vm1, %v1045_v38, %v1044_v5  ;;  %v5337_v47 = vadd.f32 %v1020_v41, %v5187_v59  ;;  %v1056_v32 = vsel %vm1010_vm15, %v1055_v2, %v1054_v1  ;;  %v5342_v22 = vadd.f32 %v1034_v55, %v5189_v60 }
 0x1d8   : > { %v1048_v20 = vsel %vm1019_vm2, %v1047_v51, %v1046_v27  ;;  %v1071_v36 = vperm.slane %v5154_v44, 1  ;;  %v1058_v39 = vsel %vm1013_vm0, %v1057_v26, %v1056_v32  ;;  %v1072_v31 = vperm.slane %v5156_v45, 1 }
 0x1d9   : > { %v5347_v48 = vadd.f32 %v1048_v20, %v5191_v61  ;;  %v5351_v43 = vperm.slane %v5154_v44, 2  ;;  %v1060_v59 = vsel %vm1016_vm1, %v1059_v6, %v1058_v39 }
 0x1da   : > { %v1073_v33 = vmul.f32 %v1071_v36, %v5164_v49  ;;  %v1074_v40 = vmul.f32 %v1071_v36, %v5166_v50  ;;  %v1075_v60 = vmul.f32 %v1071_v36, %v5169_v52  ;;  %v1062_v41 = vsel %vm1019_vm2, %v1061_v21, %v1060_v59 }
 0x1db   : > { %v1076_v10 = vmul.f32 %v1071_v36, %v5183_v57  ;;  %v1077_v61 = vmul.f32 %v1071_v36, %v5185_v58  ;;  %v1078_v14 = vmul.f32 %v1071_v36, %v5196_v63  ;;  %v5362_v15 = vadd.f32 %v1062_v41, %v5194_v62 }
 0x1dc   : > { %v1079_v24 = vmul.f32 %v1071_v36, %v5208_v8  ;;  %v1080_v46 = vmul.f32 %v1071_v36, %v5210_v9  ;;  %v1081_v25 = vmul.f32 %v1071_v36, %v5227_v0  ;;  %v1082_v30 = vmul.f32 %v1071_v36, %v5241_v18 }
 0x1dd   : > { %7479 = vst [vmem:[#allocation55_spill] sm:$0xff] %v5362_v15  ;;  %v1083_v35 = vmul.f32 %v1071_v36, %v5243_v19  ;;  %v1084_v3 = vmul.f32 %v1071_v36, %v5251_v23  ;;  %v1085_v4 = vmul.f32 %v1071_v36, %v5263_v28  ;;  %v1086_v38 = vmul.f32 %v1071_v36, %v5265_v29 }
 0x1de   : > { %v1087_v42 = vmul.f32 %v1071_v36, %v5274_v34  ;;  %v1088_v62 = vmul.f32 %v1071_v36, %v5286_v37  ;;  %v1089_v56 = vmul.f32 %v1072_v31, %v5164_v49  ;;  %v1090_v51 = vmul.f32 %v1072_v31, %v5166_v50 }
 0x1df   : > { %v1091_v7 = vmul.f32 %v1072_v31, %v5169_v52  ;;  %v1092_v11 = vmul.f32 %v1072_v31, %v5183_v57  ;;  %v1093_v12 = vmul.f32 %v1072_v31, %v5185_v58  ;;  %v1094_v53 = vmul.f32 %v1072_v31, %v5196_v63 }
 0x1e0   : > { %v1095_v54 = vmul.f32 %v1072_v31, %v5208_v8  ;;  %v1096_v55 = vmul.f32 %v1072_v31, %v5210_v9  ;;  %v1097_v13 = vmul.f32 %v1072_v31, %v5227_v0  ;;  %v1098_v16 = vmul.f32 %v1072_v31, %v5241_v18 }
 0x1e1   : > { %v1099_v2 = vmul.f32 %v1072_v31, %v5243_v19  ;;  %v1100_v5 = vmul.f32 %v1072_v31, %v5251_v23  ;;  %v5387_v17 = vmul.f32 %v1072_v31, %v5263_v28  ;;  %v5390_v26 = vmul.f32 %v1072_v31, %v5265_v29 }
 0x1e2   : > { %v5393_v6 = vmul.f32 %v1072_v31, %v5274_v34  ;;  %v5396_v27 = vmul.f32 %v1072_v31, %v5286_v37  ;;  %v1137_v1 = vrot.slane %v1073_v33, 1  ;;  %v1139_v21 = vrot.slane %v1075_v60, 7 }
 0x1e3   : > { %v1141_v20 = vrot.slane %v1076_v10, 6  ;;  %v1143_v32 = vrot.slane %v1077_v61, 5  ;;  %v1145_v36 = vrot.slane %v1078_v14, 4  ;;  %v1147_v59 = vrot.slane %v1079_v24, 3 }
 0x1e4   : > { %v1138_v39 = vsel %vm1001_vm12, %v1074_v40, %v1137_v1  ;;  %v1149_v41 = vrot.slane %v1080_v46, 2  ;;  %v1151_v44 = vrot.slane %v1081_v25, 1  ;;  %v1153_v29 = vrot.slane %v1083_v35, 7 }
 0x1e5   : > { %v1140_v15 = vsel %vm1004_vm13, %v1139_v21, %v1138_v39  ;;  %v1155_v28 = vrot.slane %v1084_v3, 6  ;;  %v1157_v23 = vrot.slane %v1085_v4, 5  ;;  %v1159_v37 = vrot.slane %v1086_v38, 4 }
 0x1e6   : > { %v1142_v34 = vsel %vm1007_vm14, %v1141_v20, %v1140_v15  ;;  %v1152_v31 = vsel %vm1001_vm12, %v1082_v30, %v1151_v44  ;;  %v1161_v33 = vrot.slane %v1087_v42, 3  ;;  %v1163_v61 = vrot.slane %v1088_v62, 2 }
 0x1e7   : > { %v1144_v60 = vsel %vm1010_vm15, %v1143_v32, %v1142_v34  ;;  %v1154_v10 = vsel %vm1004_vm13, %v1153_v29, %v1152_v31  ;;  %v1165_v40 = vrot.slane %v1089_v56, 1  ;;  %v1167_v46 = vrot.slane %v1091_v7, 7 }
 0x1e8   : > { %v1146_v14 = vsel %vm1013_vm0, %v1145_v36, %v1144_v60  ;;  %v1156_v24 = vsel %vm1007_vm14, %v1155_v28, %v1154_v10  ;;  %v1169_v25 = vrot.slane %v1092_v11, 6  ;;  %v1171_v30 = vrot.slane %v1093_v12, 5 }
 0x1e9   : > { %v1148_v35 = vsel %vm1016_vm1, %v1147_v59, %v1146_v14  ;;  %v1158_v15 = vsel %vm1010_vm15, %v1157_v23, %v1156_v24  ;;  %v1166_v44 = vsel %vm1001_vm12, %v1090_v51, %v1165_v40  ;;  %v1173_v4 = vrot.slane %v1094_v53, 4  ;;  %v7480_v40 = vld [vmem:[#allocation50_spill] sm:$0xff]  ;;  %v7481_v24 = vld [vmem:[#allocation51_spill] sm:$0xff] }
 0x1ea   : > { %v1150_v3 = vsel %vm1019_vm2, %v1149_v41, %v1148_v35  ;;  %v1160_v34 = vsel %vm1013_vm0, %v1159_v37, %v1158_v15  ;;  %v1168_v29 = vsel %vm1004_vm13, %v1167_v46, %v1166_v44  ;;  %v1175_v42 = vrot.slane %v1095_v54, 3  ;;  %v7483_v15 = vld [vmem:[#allocation52_spill] sm:$0xff] }
 0x1eb   : > { %v1162_v38 = vsel %vm1016_vm1, %v1161_v33, %v1160_v34  ;;  %v1170_v28 = vsel %vm1007_vm14, %v1169_v25, %v1168_v29  ;;  %v1177_v62 = vrot.slane %v1096_v55, 2  ;;  %v1179_v7 = vrot.slane %v1097_v13, 1  ;;  %v7482_v25 = vld [vmem:[#allocation55_spill] sm:$0xff]  ;;  %v7485_v34 = vld [vmem:[#allocation54_spill] sm:$0xff] }
 0x1ec   : > { %v1164_v56 = vsel %vm1019_vm2, %v1163_v61, %v1162_v38  ;;  %v1172_v23 = vsel %vm1010_vm15, %v1171_v30, %v1170_v28  ;;  %v1181_v51 = vrot.slane %v1099_v2, 7  ;;  %v1183_v12 = vrot.slane %v1100_v5, 6  ;;  %v7484_v30 = vld [vmem:[#allocation53_spill] sm:$0xff] }
 0x1ed   : > { %v1174_v11 = vsel %vm1013_vm0, %v1173_v4, %v1172_v23  ;;  %v1185_v37 = vrot.slane %v5387_v17, 5  ;;  %v1187_v1 = vrot.slane %v5390_v26, 4  ;;  %v1180_v21 = vsel %vm1001_vm12, %v1098_v16, %v1179_v7 }
 0x1ee   : > { %v1176_v53 = vsel %vm1016_vm1, %v1175_v42, %v1174_v11  ;;  %v1189_v54 = vrot.slane %v5393_v6, 3  ;;  %v1191_v55 = vrot.slane %v5396_v27, 2  ;;  %v1182_v13 = vsel %vm1004_vm13, %v1181_v51, %v1180_v21 }
 0x1ef   : > { %v1178_v20 = vsel %vm1019_vm2, %v1177_v62, %v1176_v53  ;;  %v5426_v2 = vadd.f32 %v1150_v3, %v5337_v47  ;;  %v5429_v5 = vadd.f32 %v1164_v56, %v5342_v22  ;;  %v1184_v17 = vsel %vm1007_vm14, %v1183_v12, %v1182_v13 }
 0x1f0   : > { %v5433_v26 = vadd.f32 %v1178_v20, %v5347_v48  ;;  %v1202_v16 = vperm.slane %v5156_v45, 2  ;;  %v1203_v6 = vmul.f32 %v5351_v43, %v5164_v49  ;;  %v1186_v27 = vsel %vm1010_vm15, %v1185_v37, %v1184_v17 }
 0x1f1   : > { %v1204_v32 = vmul.f32 %v5351_v43, %v5166_v50  ;;  %v1205_v47 = vmul.f32 %v5351_v43, %v5169_v52  ;;  %v1206_v22 = vmul.f32 %v5351_v43, %v5183_v57  ;;  %v1188_v36 = vsel %vm1013_vm0, %v1187_v1, %v1186_v27 }
 0x1f2   : > { %v1207_v48 = vmul.f32 %v5351_v43, %v5185_v58  ;;  %v1208_v39 = vmul.f32 %v5351_v43, %v5196_v63  ;;  %v1209_v59 = vmul.f32 %v5351_v43, %v5208_v8  ;;  %v1190_v41 = vsel %vm1016_vm1, %v1189_v54, %v1188_v36 }
 0x1f3   : > { %v1210_v31 = vmul.f32 %v5351_v43, %v5210_v9  ;;  %v1211_v33 = vmul.f32 %v5351_v43, %v5227_v0  ;;  %v1212_v60 = vmul.f32 %v5351_v43, %v5241_v18  ;;  %v1192_v10 = vsel %vm1019_vm2, %v1191_v55, %v1190_v41 }
 0x1f4   : > { %v1213_v61 = vmul.f32 %v5351_v43, %v5243_v19  ;;  %v1214_v14 = vmul.f32 %v5351_v43, %v7480_v40  ;;  %v1215_v46 = vmul.f32 %v5351_v43, %v7481_v24  ;;  %v5467_v35 = vadd.f32 %v1192_v10, %v7482_v25 }
 0x1f5   : > { %v1216_v44 = vmul.f32 %v5351_v43, %v7483_v15  ;;  %v1217_v3 = vmul.f32 %v5351_v43, %v7484_v30  ;;  %v1218_v29 = vmul.f32 %v5351_v43, %v7485_v34  ;;  %v1219_v4 = vmul.f32 %v1202_v16, %v5164_v49 }
 0x1f6   : > { %v1220_v38 = vmul.f32 %v1202_v16, %v5166_v50  ;;  %v1221_v28 = vmul.f32 %v1202_v16, %v5169_v52  ;;  %v1222_v42 = vmul.f32 %v1202_v16, %v5183_v57  ;;  %v1223_v62 = vmul.f32 %v1202_v16, %v5185_v58 }
 0x1f7   : > { %v1224_v56 = vmul.f32 %v1202_v16, %v5196_v63  ;;  %v1225_v23 = vmul.f32 %v1202_v16, %v5208_v8  ;;  %v1226_v7 = vmul.f32 %v1202_v16, %v5210_v9  ;;  %v1227_v51 = vmul.f32 %v1202_v16, %v5227_v0 }
 0x1f8   : > { %v1228_v43 = vmul.f32 %v1202_v16, %v5241_v18  ;;  %v1229_v11 = vmul.f32 %v1202_v16, %v5243_v19  ;;  %v1230_v12 = vmul.f32 %v1202_v16, %v7480_v40  ;;  %v1231_v37 = vmul.f32 %v1202_v16, %v7481_v24 }
 0x1f9   : > { %v5489_v1 = vmul.f32 %v1202_v16, %v7483_v15  ;;  %v5492_v53 = vmul.f32 %v1202_v16, %v7484_v30  ;;  %v5495_v21 = vmul.f32 %v1202_v16, %v7485_v34  ;;  %v1267_v54 = vrot.slane %v1203_v6, 2 }
 0x1fa   : > { %v1268_v55 = vrot.slane %v1204_v32, 1  ;;  %v1271_v20 = vrot.slane %v1206_v22, 7  ;;  %v1273_v13 = vrot.slane %v1207_v48, 6  ;;  %v1275_v17 = vrot.slane %v1208_v39, 5 }
 0x1fb   : > { %v1277_v27 = vrot.slane %v1209_v59, 4  ;;  %v1279_v36 = vrot.slane %v1210_v31, 3  ;;  %v1281_v41 = vrot.slane %v1211_v33, 2  ;;  %v1282_v25 = vrot.slane %v1212_v60, 1 }
 0x1fc   : > { %v1269_v10 = vsel %vm1001_vm12, %v1268_v55, %v1267_v54  ;;  %v1285_v24 = vrot.slane %v1214_v14, 7  ;;  %v1287_v15 = vrot.slane %v1215_v46, 6  ;;  %v1289_v30 = vrot.slane %v1216_v44, 5 }
 0x1fd   : > { %v1270_v40 = vsel %vm1004_vm13, %v1205_v47, %v1269_v10  ;;  %v1291_v19 = vrot.slane %v1217_v3, 4  ;;  %v1293_v18 = vrot.slane %v1218_v29, 3  ;;  %v1283_v6 = vsel %vm1001_vm12, %v1282_v25, %v1281_v41 }
 0x1fe   : > { %v1272_v16 = vsel %vm1007_vm14, %v1271_v20, %v1270_v40  ;;  %v1295_v32 = vrot.slane %v1219_v4, 2  ;;  %v1296_v22 = vrot.slane %v1220_v38, 1  ;;  %v1284_v39 = vsel %vm1004_vm13, %v1213_v61, %v1283_v6 }
 0x1ff   : > { %v1274_v48 = vsel %vm1010_vm15, %v1273_v13, %v1272_v16  ;;  %v1299_v59 = vrot.slane %v1222_v42, 7  ;;  %v1301_v31 = vrot.slane %v1223_v62, 6  ;;  %v1286_v60 = vsel %vm1007_vm14, %v1285_v24, %v1284_v39 }
 0x200   : > { %v1276_v33 = vsel %vm1013_vm0, %v1275_v17, %v1274_v48  ;;  %v1297_v47 = vsel %vm1001_vm12, %v1296_v22, %v1295_v32  ;;  %v1303_v14 = vrot.slane %v1224_v56, 5  ;;  %v1288_v40 = vsel %vm1010_vm15, %v1287_v15, %v1286_v60 }
 0x201   : > { %v1278_v46 = vsel %vm1016_vm1, %v1277_v27, %v1276_v33  ;;  %v1298_v44 = vsel %vm1004_vm13, %v1221_v28, %v1297_v47  ;;  %v1305_v3 = vrot.slane %v1225_v23, 4  ;;  %v1290_v61 = vsel %vm1013_vm0, %v1289_v30, %v1288_v40  ;;  %v7490_v33 = vld [vmem:[#allocation49_spill] sm:$0xff]  ;;  %v7491_v47 = vld [vmem:[#allocation50_spill] sm:$0xff] }
 0x202   : > { %v1280_v29 = vsel %vm1019_vm2, %v1279_v36, %v1278_v46  ;;  %v1300_v4 = vsel %vm1007_vm14, %v1299_v59, %v1298_v44  ;;  %v1307_v38 = vrot.slane %v1226_v7, 3  ;;  %v1292_v42 = vsel %vm1016_vm1, %v1291_v19, %v1290_v61  ;;  %v7489_v59 = vld [vmem:[#allocation48_spill] sm:$0xff]  ;;  %v7492_v46 = vld [vmem:[#allocation51_spill] sm:$0xff] }
 0x203   : > { %v1302_v24 = vsel %vm1010_vm15, %v1301_v31, %v1300_v4  ;;  %v1309_v62 = vrot.slane %v1227_v51, 2  ;;  %v1310_v56 = vrot.slane %v1228_v43, 1  ;;  %v1294_v54 = vsel %vm1019_vm2, %v1293_v18, %v1292_v42  ;;  %v7493_v44 = vld [vmem:[#allocation52_spill] sm:$0xff] }
 0x204   : > { %v1304_v15 = vsel %vm1013_vm0, %v1303_v14, %v1302_v24  ;;  %v1313_v55 = vrot.slane %v1230_v12, 7  ;;  %v1315_v28 = vrot.slane %v1231_v37, 6  ;;  %v1317_v30 = vrot.slane %v5489_v1, 5  ;;  %v7486_v1 = vld [vmem:[#allocation46_spill] sm:$0xff] }
 0x205   : > { %v1306_v23 = vsel %vm1016_vm1, %v1305_v3, %v1304_v15  ;;  %v1311_v20 = vsel %vm1001_vm12, %v1310_v56, %v1309_v62  ;;  %v1319_v7 = vrot.slane %v5492_v53, 4  ;;  %v1321_v51 = vrot.slane %v5495_v21, 3 }
 0x206   : > { %v1308_v19 = vsel %vm1019_vm2, %v1307_v38, %v1306_v23  ;;  %v1312_v13 = vsel %vm1004_vm13, %v1229_v11, %v1311_v20  ;;  %v5524_v18 = vadd.f32 %v1280_v29, %v5426_v2  ;;  %v5528_v12 = vadd.f32 %v1294_v54, %v5429_v5  ;;  %v7494_v29 = vld [vmem:[#allocation53_spill] sm:$0xff] }
 0x207   : > { %v1314_v43 = vsel %vm1007_vm14, %v1313_v55, %v1312_v13  ;;  %v5531_v37 = vadd.f32 %v1308_v19, %v5433_v26  ;;  %v1331_v17 = vperm.slane %v7486_v1, 3  ;;  %v1332_v27 = vperm.slane %v5156_v45, 3 }
 0x208   : > { %v1316_v53 = vsel %vm1010_vm15, %v1315_v28, %v1314_v43  ;;  %v5537_v11 = vperm.slane %v7486_v1, 4  ;;  %v5540_v2 = vperm.slane %v5156_v45, 4 }
 0x209   : > { %v1318_v21 = vsel %vm1013_vm0, %v1317_v30, %v1316_v53  ;;  %v1333_v5 = vmul.f32 %v1331_v17, %v5164_v49  ;;  %v1334_v36 = vmul.f32 %v1331_v17, %v5166_v50  ;;  %v1335_v26 = vmul.f32 %v1331_v17, %v5169_v52 }
 0x20a   : > { %7487 = vst [vmem:[#allocation55_spill] sm:$0xff] %v5540_v2  ;;  %v1320_v41 = vsel %vm1016_vm1, %v1319_v7, %v1318_v21  ;;  %v1336_v10 = vmul.f32 %v1331_v17, %v5183_v57  ;;  %v1337_v25 = vmul.f32 %v1331_v17, %v5185_v58  ;;  %v1338_v16 = vmul.f32 %v1331_v17, %v5196_v63 }
 0x20b   : > { %v1322_v6 = vsel %vm1019_vm2, %v1321_v51, %v1320_v41  ;;  %v1339_v32 = vmul.f32 %v1331_v17, %v5208_v8  ;;  %v1340_v22 = vmul.f32 %v1331_v17, %v5210_v9  ;;  %v1341_v48 = vmul.f32 %v1331_v17, %v5227_v0 }
 0x20c   : > { %v5555_v39 = vadd.f32 %v1322_v6, %v5467_v35  ;;  %v1342_v31 = vmul.f32 %v1331_v17, %v7489_v59  ;;  %v1343_v60 = vmul.f32 %v1331_v17, %v7490_v33  ;;  %v1344_v14 = vmul.f32 %v1331_v17, %v7491_v47 }
 0x20d   : > { %v1345_v40 = vmul.f32 %v1331_v17, %v7492_v46  ;;  %v1346_v3 = vmul.f32 %v1331_v17, %v7493_v44  ;;  %v1347_v61 = vmul.f32 %v1331_v17, %v7494_v29  ;;  %v1348_v4 = vmul.f32 %v1331_v17, %v7485_v34 }
 0x20e   : > { %7488 = vst [vmem:[#allocation54_spill] sm:$0xff] %v5555_v39  ;;  %v1349_v38 = vmul.f32 %v1332_v27, %v5164_v49  ;;  %v1350_v42 = vmul.f32 %v1332_v27, %v5166_v50  ;;  %v1351_v35 = vmul.f32 %v1332_v27, %v5169_v52  ;;  %v1352_v24 = vmul.f32 %v1332_v27, %v5183_v57 }
 0x20f   : > { %v1353_v62 = vmul.f32 %v1332_v27, %v5185_v58  ;;  %v1354_v56 = vmul.f32 %v1332_v27, %v5196_v63  ;;  %v1355_v54 = vmul.f32 %v1332_v27, %v5208_v8  ;;  %v1356_v15 = vmul.f32 %v1332_v27, %v5210_v9 }
 0x210   : > { %v1357_v55 = vmul.f32 %v1332_v27, %v5227_v0  ;;  %v1358_v28 = vmul.f32 %v1332_v27, %v7489_v59  ;;  %v1359_v23 = vmul.f32 %v1332_v27, %v7490_v33  ;;  %v1360_v20 = vmul.f32 %v1332_v27, %v7491_v47 }
 0x211   : > { %v1361_v30 = vmul.f32 %v1332_v27, %v7492_v46  ;;  %v5578_v7 = vmul.f32 %v1332_v27, %v7493_v44  ;;  %v5581_v19 = vmul.f32 %v1332_v27, %v7494_v29  ;;  %v5584_v13 = vmul.f32 %v1332_v27, %v7485_v34 }
 0x212   : > { %v1397_v51 = vrot.slane %v1333_v5, 3  ;;  %v1398_v43 = vrot.slane %v1334_v36, 2  ;;  %v1400_v17 = vrot.slane %v1335_v26, 1  ;;  %v1403_v53 = vrot.slane %v1337_v25, 7 }
 0x213   : > { %v1405_v21 = vrot.slane %v1338_v16, 6  ;;  %v1407_v41 = vrot.slane %v1339_v32, 5  ;;  %v1409_v6 = vrot.slane %v1340_v22, 4  ;;  %v1411_v45 = vrot.slane %v1341_v48, 3 }
 0x214   : > { %v1399_v1 = vsel %vm1001_vm12, %v1398_v43, %v1397_v51  ;;  %v1412_v2 = vrot.slane %v1342_v31, 2  ;;  %v1414_v39 = vrot.slane %v1343_v60, 1  ;;  %v1417_v44 = vrot.slane %v1345_v40, 7 }
 0x215   : > { %v1401_v46 = vsel %vm1004_vm13, %v1400_v17, %v1399_v1  ;;  %v1419_v29 = vrot.slane %v1346_v3, 6  ;;  %v1421_v47 = vrot.slane %v1347_v61, 5  ;;  %v1423_v33 = vrot.slane %v1348_v4, 4 }
 0x216   : > { %v1402_v27 = vsel %vm1007_vm14, %v1336_v10, %v1401_v46  ;;  %v1413_v5 = vsel %vm1001_vm12, %v1412_v2, %v1411_v45  ;;  %v1425_v36 = vrot.slane %v1349_v38, 3  ;;  %v1426_v26 = vrot.slane %v1350_v42, 2 }
 0x217   : > { %v1404_v25 = vsel %vm1010_vm15, %v1403_v53, %v1402_v27  ;;  %v1415_v16 = vsel %vm1004_vm13, %v1414_v39, %v1413_v5  ;;  %v1428_v32 = vrot.slane %v1351_v35, 1  ;;  %v1431_v22 = vrot.slane %v1353_v62, 7  ;;  %v7495_v5 = vld [vmem:[#allocation49_spill] sm:$0xff] }
 0x218   : > { %v1406_v48 = vsel %vm1013_vm0, %v1405_v21, %v1404_v25  ;;  %v1416_v31 = vsel %vm1007_vm14, %v1344_v14, %v1415_v16  ;;  %v1427_v1 = vsel %vm1001_vm12, %v1426_v26, %v1425_v36  ;;  %v1433_v60 = vrot.slane %v1354_v56, 6  ;;  %v7496_v26 = vld [vmem:[#allocation50_spill] sm:$0xff]  ;;  %v7497_v16 = vld [vmem:[#allocation51_spill] sm:$0xff] }
 0x219   : > { %v1408_v40 = vsel %vm1016_vm1, %v1407_v41, %v1406_v48  ;;  %v1418_v10 = vsel %vm1010_vm15, %v1417_v44, %v1416_v31  ;;  %v1429_v45 = vsel %vm1004_vm13, %v1428_v32, %v1427_v1  ;;  %v1435_v2 = vrot.slane %v1355_v54, 5  ;;  %v7499_v31 = vld [vmem:[#allocation52_spill] sm:$0xff] }
 0x21a   : > { %v1410_v46 = vsel %vm1019_vm2, %v1409_v6, %v1408_v40  ;;  %v1420_v39 = vsel %vm1013_vm0, %v1419_v29, %v1418_v10  ;;  %v1430_v3 = vsel %vm1007_vm14, %v1352_v24, %v1429_v45  ;;  %v1437_v61 = vrot.slane %v1356_v15, 4  ;;  %v7501_v45 = vld [vmem:[#allocation55_spill] sm:$0xff] }
 0x21b   : > { %v1422_v4 = vsel %vm1016_vm1, %v1421_v47, %v1420_v39  ;;  %v1432_v14 = vsel %vm1010_vm15, %v1431_v22, %v1430_v3  ;;  %v1439_v38 = vrot.slane %v1357_v55, 3  ;;  %v1440_v42 = vrot.slane %v1358_v28, 2  ;;  %v7498_v22 = vld [vmem:[#allocation54_spill] sm:$0xff] }
 0x21c   : > { %v1424_v35 = vsel %vm1019_vm2, %v1423_v33, %v1422_v4  ;;  %v1434_v44 = vsel %vm1013_vm0, %v1433_v60, %v1432_v14  ;;  %v1442_v62 = vrot.slane %v1359_v23, 1  ;;  %v1445_v56 = vrot.slane %v1361_v30, 7  ;;  %v7500_v60 = vld [vmem:[#allocation53_spill] sm:$0xff] }
 0x21d   : > { %v1436_v54 = vsel %vm1016_vm1, %v1435_v2, %v1434_v44  ;;  %v1441_v51 = vsel %vm1001_vm12, %v1440_v42, %v1439_v38  ;;  %v1447_v29 = vrot.slane %v5578_v7, 6  ;;  %v1449_v24 = vrot.slane %v5581_v19, 5 }
 0x21e   : > { %v1438_v47 = vsel %vm1019_vm2, %v1437_v61, %v1436_v54  ;;  %v1443_v15 = vsel %vm1004_vm13, %v1442_v62, %v1441_v51  ;;  %v1451_v55 = vrot.slane %v5584_v13, 4  ;;  %v5613_v33 = vadd.f32 %v1410_v46, %v5524_v18 }
 0x21f   : > { %v1444_v28 = vsel %vm1007_vm14, %v1360_v20, %v1443_v15  ;;  %v5617_v23 = vadd.f32 %v1424_v35, %v5528_v12  ;;  %v5620_v30 = vadd.f32 %v1438_v47, %v5531_v37  ;;  %v1463_v7 = vmul.f32 %v5537_v11, %v5164_v49 }
 0x220   : > { %v1446_v19 = vsel %vm1010_vm15, %v1445_v56, %v1444_v28  ;;  %v1464_v43 = vmul.f32 %v5537_v11, %v5166_v50  ;;  %v1465_v18 = vmul.f32 %v5537_v11, %v5169_v52  ;;  %v1466_v20 = vmul.f32 %v5537_v11, %v5183_v57 }
 0x221   : > { %v1448_v12 = vsel %vm1013_vm0, %v1447_v29, %v1446_v19  ;;  %v1467_v37 = vmul.f32 %v5537_v11, %v5185_v58  ;;  %v1468_v13 = vmul.f32 %v5537_v11, %v5196_v63  ;;  %v1469_v17 = vmul.f32 %v5537_v11, %v5208_v8 }
 0x222   : > { %v1450_v53 = vsel %vm1016_vm1, %v1449_v24, %v1448_v12  ;;  %v1470_v21 = vmul.f32 %v5537_v11, %v5210_v9  ;;  %v1471_v41 = vmul.f32 %v5537_v11, %v5227_v0  ;;  %v1472_v6 = vmul.f32 %v5537_v11, %v7489_v59 }
 0x223   : > { %v1452_v27 = vsel %vm1019_vm2, %v1451_v55, %v1450_v53  ;;  %v1473_v36 = vmul.f32 %v5537_v11, %v7495_v5  ;;  %v1474_v25 = vmul.f32 %v5537_v11, %v7496_v26  ;;  %v1475_v32 = vmul.f32 %v5537_v11, %v7497_v16 }
 0x224   : > { %v5653_v48 = vadd.f32 %v1452_v27, %v7498_v22  ;;  %v1476_v1 = vmul.f32 %v5537_v11, %v7499_v31  ;;  %v1477_v40 = vmul.f32 %v5537_v11, %v7500_v60  ;;  %v1478_v10 = vmul.f32 %v5537_v11, %v7485_v34 }
 0x225   : > { %v1479_v2 = vmul.f32 %v7501_v45, %v5164_v49  ;;  %v1480_v46 = vmul.f32 %v7501_v45, %v5166_v50  ;;  %v1481_v39 = vmul.f32 %v7501_v45, %v5169_v52  ;;  %v1482_v3 = vmul.f32 %v7501_v45, %v5183_v57 }
 0x226   : > { %v1483_v61 = vmul.f32 %v7501_v45, %v5185_v58  ;;  %v1484_v4 = vmul.f32 %v7501_v45, %v5196_v63  ;;  %v1485_v11 = vmul.f32 %v7501_v45, %v5208_v8  ;;  %v1486_v14 = vmul.f32 %v7501_v45, %v5210_v9 }
 0x227   : > { %v1487_v38 = vmul.f32 %v7501_v45, %v5227_v0  ;;  %v1488_v42 = vmul.f32 %v7501_v45, %v7489_v59  ;;  %v1489_v35 = vmul.f32 %v7501_v45, %v7495_v5  ;;  %v1490_v44 = vmul.f32 %v7501_v45, %v7496_v26 }
 0x228   : > { %v1491_v62 = vmul.f32 %v7501_v45, %v7497_v16  ;;  %v5689_v56 = vmul.f32 %v7501_v45, %v7499_v31  ;;  %v5693_v54 = vmul.f32 %v7501_v45, %v7500_v60  ;;  %v5697_v51 = vmul.f32 %v7501_v45, %v7485_v34 }
 0x229   : > { %v1527_v29 = vrot.slane %v1463_v7, 4  ;;  %v1528_v24 = vrot.slane %v1464_v43, 3  ;;  %v1530_v47 = vrot.slane %v1465_v18, 2  ;;  %v1532_v15 = vrot.slane %v1466_v20, 1 }
 0x22a   : > { %v1535_v55 = vrot.slane %v1468_v13, 7  ;;  %v1537_v28 = vrot.slane %v1469_v17, 6  ;;  %v1539_v19 = vrot.slane %v1470_v21, 5  ;;  %v1541_v12 = vrot.slane %v1471_v41, 4 }
 0x22b   : > { %v1529_v53 = vsel %vm1001_vm12, %v1528_v24, %v1527_v29  ;;  %v1542_v27 = vrot.slane %v1472_v6, 3  ;;  %v1544_v22 = vrot.slane %v1473_v36, 2  ;;  %v1546_v31 = vrot.slane %v1474_v25, 1 }
 0x22c   : > { %v1531_v60 = vsel %vm1004_vm13, %v1530_v47, %v1529_v53  ;;  %v1549_v16 = vrot.slane %v1476_v1, 7  ;;  %v1551_v26 = vrot.slane %v1477_v40, 6  ;;  %v1553_v5 = vrot.slane %v1478_v10, 5 }
 0x22d   : > { %v1533_v45 = vsel %vm1007_vm14, %v1532_v15, %v1531_v60  ;;  %v1543_v7 = vsel %vm1001_vm12, %v1542_v27, %v1541_v12  ;;  %v1555_v43 = vrot.slane %v1479_v2, 4  ;;  %v1556_v18 = vrot.slane %v1480_v46, 3 }
 0x22e   : > { %v1534_v20 = vsel %vm1010_vm15, %v1467_v37, %v1533_v45  ;;  %v1545_v13 = vsel %vm1004_vm13, %v1544_v22, %v1543_v7  ;;  %v1558_v17 = vrot.slane %v1481_v39, 2  ;;  %v1560_v21 = vrot.slane %v1482_v3, 1 }
 0x22f   : > { %v1536_v41 = vsel %vm1013_vm0, %v1535_v55, %v1534_v20  ;;  %v1547_v6 = vsel %vm1007_vm14, %v1546_v31, %v1545_v13  ;;  %v1557_v36 = vsel %vm1001_vm12, %v1556_v18, %v1555_v43  ;;  %v1563_v25 = vrot.slane %v1484_v4, 7  ;;  %v7504_v13 = vld [vmem:[#allocation49_spill] sm:$0xff] }
 0x230   : > { %v1538_v1 = vsel %vm1016_vm1, %v1537_v28, %v1536_v41  ;;  %v1548_v60 = vsel %vm1010_vm15, %v1475_v32, %v1547_v6  ;;  %v1559_v40 = vsel %vm1004_vm13, %v1558_v17, %v1557_v36  ;;  %v1565_v10 = vrot.slane %v1485_v11, 6  ;;  %v7506_v6 = vld [vmem:[#allocation51_spill] sm:$0xff] }
 0x231   : > { %v1540_v37 = vsel %vm1019_vm2, %v1539_v19, %v1538_v1  ;;  %v1550_v2 = vsel %vm1013_vm0, %v1549_v16, %v1548_v60  ;;  %v1561_v46 = vsel %vm1007_vm14, %v1560_v21, %v1559_v40  ;;  %v1567_v39 = vrot.slane %v1486_v14, 5  ;;  %v7503_v19 = vld [vmem:[#allocation47_spill] sm:$0xff]  ;;  %v7505_v21 = vld [vmem:[#allocation50_spill] sm:$0xff]  ;;  %v7508_v60 = vld [vmem:[#allocation53_spill] sm:$0xff] }
 0x232   : > { %v1552_v3 = vsel %vm1016_vm1, %v1551_v26, %v1550_v2  ;;  %v1562_v31 = vsel %vm1010_vm15, %v1483_v61, %v1561_v46  ;;  %v1569_v29 = vrot.slane %v1487_v38, 4  ;;  %v1570_v4 = vrot.slane %v1488_v42, 3 }
 0x233   : > { %v1554_v24 = vsel %vm1019_vm2, %v1553_v5, %v1552_v3  ;;  %v1564_v32 = vsel %vm1013_vm0, %v1563_v25, %v1562_v31  ;;  %v1572_v47 = vrot.slane %v1489_v35, 2  ;;  %v1574_v15 = vrot.slane %v1490_v44, 1  ;;  %v7507_v25 = vld [vmem:[#allocation52_spill] sm:$0xff] }
 0x234   : > { %v1566_v11 = vsel %vm1016_vm1, %v1565_v10, %v1564_v32  ;;  %v1571_v55 = vsel %vm1001_vm12, %v1570_v4, %v1569_v29  ;;  %v1577_v16 = vrot.slane %v5689_v56, 7  ;;  %v1579_v14 = vrot.slane %v5693_v54, 6  ;;  %v7502_v56 = vld [vmem:[#allocation46_spill] sm:$0xff] }
 0x235   : > { %v1568_v26 = vsel %vm1019_vm2, %v1567_v39, %v1566_v11  ;;  %v1573_v61 = vsel %vm1004_vm13, %v1572_v47, %v1571_v55  ;;  %v1581_v38 = vrot.slane %v5697_v51, 5  ;;  %v5726_v5 = vadd.f32 %v1540_v37, %v5613_v33  ;;  %v5768_v37 = vld [vmem:[#allocation13] sm:$0xff] }
 0x236   : > { %v1575_v42 = vsel %vm1007_vm14, %v1574_v15, %v1573_v61  ;;  %v5730_v35 = vadd.f32 %v1554_v24, %v5617_v23  ;;  %v5733_v44 = vadd.f32 %v1568_v26, %v5620_v30  ;;  %v1591_v28 = vperm.slane %v7502_v56, 5  ;;  %v5774_v39 = vld [vmem:[#allocation13 + $0x20] sm:$0xff] }
 0x237   : > { %v1576_v54 = vsel %vm1010_vm15, %v1491_v62, %v1575_v42  ;;  %v1592_v12 = vperm.slane %v7503_v19, 5  ;;  %v5739_v53 = vperm.slane %v7502_v56, 6  ;;  %v5742_v33 = vperm.slane %v7503_v19, 6 }
 0x238   : > { %v1578_v51 = vsel %vm1013_vm0, %v1577_v16, %v1576_v54  ;;  %v1593_v23 = vmul.f32 %v1591_v28, %v5164_v49  ;;  %v1594_v27 = vmul.f32 %v1591_v28, %v5166_v50  ;;  %v1595_v30 = vmul.f32 %v1591_v28, %v5169_v52 }
 0x239   : > { %v1580_v22 = vsel %vm1016_vm1, %v1579_v14, %v1578_v51  ;;  %v1596_v62 = vmul.f32 %v1591_v28, %v5183_v57  ;;  %v1597_v45 = vmul.f32 %v1591_v28, %v5185_v58  ;;  %v1598_v7 = vmul.f32 %v1591_v28, %v5196_v63 }
 0x23a   : > { %v1582_v43 = vsel %vm1019_vm2, %v1581_v38, %v1580_v22  ;;  %v1599_v18 = vmul.f32 %v1591_v28, %v5208_v8  ;;  %v5755_v20 = vmul.f32 %v1591_v28, %v5210_v9  ;;  %v1601_v49 = vmul.f32 %v1591_v28, %v5227_v0 }
 0x23b   : > { %v5759_v50 = vadd.f32 %v1582_v43, %v5653_v48  ;;  %v1602_v52 = vmul.f32 %v1591_v28, %v7489_v59  ;;  %v1603_v17 = vmul.f32 %v1591_v28, %v7504_v13  ;;  %v1604_v41 = vmul.f32 %v1591_v28, %v7505_v21  ;;  %v5771_v48 = vld [vmem:[#allocation13 + $0x10] sm:$0xff] }
 0x23c   : > { %v1605_v36 = vmul.f32 %v1591_v28, %v7506_v6  ;;  %v1606_v1 = vmul.f32 %v1591_v28, %v7507_v25  ;;  %v1607_v40 = vmul.f32 %v1591_v28, %v7508_v60  ;;  %v1608_v10 = vmul.f32 %v1591_v28, %v7485_v34 }
 0x23d   : > { %v1609_v2 = vmul.f32 %v5768_v37, %v1592_v12  ;;  %v1610_v46 = vmul.f32 %v5771_v48, %v1592_v12  ;;  %v1611_v3 = vmul.f32 %v5774_v39, %v1592_v12  ;;  %v1612_v31 = vmul.f32 %v1592_v12, %v5183_v57 }
 0x23e   : > { %v1613_v29 = vmul.f32 %v1592_v12, %v5185_v58  ;;  %v1614_v4 = vmul.f32 %v1592_v12, %v5196_v63  ;;  %v1615_v24 = vmul.f32 %v1592_v12, %v5208_v8  ;;  %v1616_v32 = vmul.f32 %v1592_v12, %v5210_v9 }
 0x23f   : > { %v1617_v47 = vmul.f32 %v1592_v12, %v5227_v0  ;;  %v1618_v15 = vmul.f32 %v1592_v12, %v7489_v59  ;;  %v1619_v11 = vmul.f32 %v1592_v12, %v7504_v13  ;;  %v1620_v55 = vmul.f32 %v1592_v12, %v7505_v21 }
 0x240   : > { %v1621_v16 = vmul.f32 %v1592_v12, %v7506_v6  ;;  %v5788_v57 = vmul.f32 %v1592_v12, %v7507_v25  ;;  %v5791_v58 = vmul.f32 %v1592_v12, %v7508_v60  ;;  %v5794_v63 = vmul.f32 %v1592_v12, %v7485_v34 }
 0x241   : > { %v1657_v8 = vrot.slane %v1593_v23, 5  ;;  %v1658_v9 = vrot.slane %v1594_v27, 4  ;;  %v1660_v0 = vrot.slane %v1595_v30, 3  ;;  %v1662_v14 = vrot.slane %v1596_v62, 2 }
 0x242   : > { %v1664_v59 = vrot.slane %v1597_v45, 1  ;;  %v1667_v26 = vrot.slane %v1599_v18, 7  ;;  %v1669_v61 = vrot.slane %v5755_v20, 6  ;;  %v1671_v38 = vrot.slane %v1601_v49, 5 }
 0x243   : > { %v1659_v42 = vsel %vm1001_vm12, %v1658_v9, %v1657_v8  ;;  %v1672_v56 = vrot.slane %v1602_v52, 4  ;;  %v1674_v28 = vrot.slane %v1603_v17, 3  ;;  %v1676_v54 = vrot.slane %v1604_v41, 2 }
 0x244   : > { %v1661_v19 = vsel %vm1004_vm13, %v1660_v0, %v1659_v42  ;;  %v1678_v51 = vrot.slane %v1605_v36, 1  ;;  %v1681_v22 = vrot.slane %v1607_v40, 7  ;;  %v1683_v34 = vrot.slane %v1608_v10, 6 }
 0x245   : > { %v1663_v12 = vsel %vm1007_vm14, %v1662_v14, %v1661_v19  ;;  %v1673_v23 = vsel %vm1001_vm12, %v1672_v56, %v1671_v38  ;;  %v1685_v27 = vrot.slane %v1609_v2, 5  ;;  %v1686_v30 = vrot.slane %v1610_v46, 4  ;;  %v5853_v38 = vld [vmem:[#allocation13 + $0x50] sm:$0xff]  ;;  %v5859_v56 = vld [vmem:[#allocation13 + $0x60] sm:$0xff] }
 0x246   : > { %v1665_v62 = vsel %vm1010_vm15, %v1664_v59, %v1663_v12  ;;  %v1675_v45 = vsel %vm1004_vm13, %v1674_v28, %v1673_v23  ;;  %v1688_v43 = vrot.slane %v1611_v3, 3  ;;  %v1690_v18 = vrot.slane %v1612_v31, 2 }
 0x247   : > { %v1666_v20 = vsel %vm1013_vm0, %v1598_v7, %v1665_v62  ;;  %v1677_v49 = vsel %vm1007_vm14, %v1676_v54, %v1675_v45  ;;  %v1687_v52 = vsel %vm1001_vm12, %v1686_v30, %v1685_v27  ;;  %v1692_v13 = vrot.slane %v1613_v29, 1  ;;  %v5866_v54 = vld [vmem:[#allocation13 + $0x70] sm:$0xff]  ;;  %v5881_v27 = vld [vmem:[#allocation13 + $0xa0] sm:$0xff] }
 0x248   : > { %v1668_v17 = vsel %vm1016_vm1, %v1667_v26, %v1666_v20  ;;  %v1679_v21 = vsel %vm1010_vm15, %v1678_v51, %v1677_v49  ;;  %v1689_v41 = vsel %vm1004_vm13, %v1688_v43, %v1687_v52  ;;  %v1695_v6 = vrot.slane %v1615_v24, 7  ;;  %v5847_v26 = vld [vmem:[#allocation13 + $0x40] sm:$0xff]  ;;  %v5885_v62 = vld [vmem:[#allocation13 + $0xb0] sm:$0xff] }
 0x249   : > { %v1670_v36 = vsel %vm1019_vm2, %v1669_v61, %v1668_v17  ;;  %v1680_v25 = vsel %vm1013_vm0, %v1606_v1, %v1679_v21  ;;  %v1691_v60 = vsel %vm1007_vm14, %v1690_v18, %v1689_v41  ;;  %v1697_v40 = vrot.slane %v1616_v32, 6  ;;  %v5872_v51 = vld [vmem:[#allocation13 + $0x80] sm:$0xff]  ;;  %v5896_v49 = vld [vmem:[#allocation13 + $0xd0] sm:$0xff] }
 0x24a   : > { %v1682_v7 = vsel %vm1016_vm1, %v1681_v22, %v1680_v25  ;;  %v1693_v10 = vsel %vm1010_vm15, %v1692_v13, %v1691_v60  ;;  %v1699_v2 = vrot.slane %v1617_v47, 5  ;;  %v1700_v46 = vrot.slane %v1618_v15, 4  ;;  %v5889_v43 = vld [vmem:[#allocation13 + $0xc0] sm:$0xff]  ;;  %7509 = vst [vmem:[#allocation48_spill] sm:$0xff] %v5896_v49  ;;  %v5904_v21 = vld [vmem:[#allocation13 + $0xf0] sm:$0xff] }
 0x24b   : > { %v1684_v3 = vsel %vm1019_vm2, %v1683_v34, %v1682_v7  ;;  %v1694_v31 = vsel %vm1013_vm0, %v1614_v4, %v1693_v10  ;;  %v1702_v29 = vrot.slane %v1619_v11, 3  ;;  %v1704_v8 = vrot.slane %v1620_v55, 2  ;;  %v5876_v34 = vld [vmem:[#allocation13 + $0x90] sm:$0xff]  ;;  %v5900_v13 = vld [vmem:[#allocation13 + $0xe0] sm:$0xff]  ;;  %7511 = vst [vmem:[#allocation55_spill] sm:$0xff] %v5904_v21 }
 0x24c   : > { %v1696_v24 = vsel %vm1016_vm1, %v1695_v6, %v1694_v31  ;;  %v1701_v9 = vsel %vm1001_vm12, %v1700_v46, %v1699_v2  ;;  %v1706_v1 = vrot.slane %v1621_v16, 1  ;;  %v1709_v0 = vrot.slane %v5791_v58, 7  ;;  %7510 = vst [vmem:[#allocation54_spill] sm:$0xff] %v5900_v13 }
 0x24d   : > { %v1698_v32 = vsel %vm1019_vm2, %v1697_v40, %v1696_v24  ;;  %v1703_v14 = vsel %vm1004_vm13, %v1702_v29, %v1701_v9  ;;  %v1711_v47 = vrot.slane %v5794_v63, 6  ;;  %v5823_v15 = vadd.f32 %v1670_v36, %v5726_v5  ;;  %v5839_v63 = vld [vmem:[#allocation13 + $0x30] sm:$0xff] }
 0x24e   : > { %v1705_v4 = vsel %vm1007_vm14, %v1704_v8, %v1703_v14  ;;  %v5827_v11 = vadd.f32 %v1684_v3, %v5730_v35  ;;  %v5830_v55 = vadd.f32 %v1698_v32, %v5733_v44  ;;  %v1723_v16 = vmul.f32 %v5768_v37, %v5739_v53 }
 0x24f   : > { %v1707_v58 = vsel %vm1010_vm15, %v1706_v1, %v1705_v4  ;;  %v1724_v59 = vmul.f32 %v5771_v48, %v5739_v53  ;;  %v1725_v5 = vmul.f32 %v5774_v39, %v5739_v53  ;;  %v5843_v35 = vmul.f32 %v5839_v63, %v5739_v53 }
 0x250   : > { %v1708_v44 = vsel %vm1013_vm0, %v5788_v57, %v1707_v58  ;;  %v5851_v61 = vmul.f32 %v5847_v26, %v5739_v53  ;;  %v5857_v42 = vmul.f32 %v5853_v38, %v5739_v53  ;;  %v5863_v28 = vmul.f32 %v5859_v56, %v5739_v53 }
 0x251   : > { %v1710_v57 = vsel %vm1016_vm1, %v1709_v0, %v1708_v44  ;;  %v5870_v19 = vmul.f32 %v5866_v54, %v5739_v53  ;;  %v1731_v22 = vmul.f32 %v5872_v51, %v5739_v53  ;;  %v1732_v12 = vmul.f32 %v5876_v34, %v5739_v53 }
 0x252   : > { %v1712_v23 = vsel %vm1019_vm2, %v1711_v47, %v1710_v57  ;;  %v1733_v30 = vmul.f32 %v5881_v27, %v5739_v53  ;;  %v1734_v45 = vmul.f32 %v5885_v62, %v5739_v53  ;;  %v1735_v18 = vmul.f32 %v5889_v43, %v5739_v53 }
 0x253   : > { %v5894_v20 = vadd.f32 %v1712_v23, %v5759_v50  ;;  %v1736_v52 = vmul.f32 %v5896_v49, %v5739_v53  ;;  %v1737_v17 = vmul.f32 %v5900_v13, %v5739_v53  ;;  %v1738_v41 = vmul.f32 %v5904_v21, %v5739_v53 }
 0x254   : > { %v1739_v6 = vmul.f32 %v5768_v37, %v5742_v33  ;;  %v1740_v50 = vmul.f32 %v5771_v48, %v5742_v33  ;;  %v1741_v36 = vmul.f32 %v5774_v39, %v5742_v33  ;;  %v1742_v25 = vmul.f32 %v5839_v63, %v5742_v33 }
 0x255   : > { %v1743_v60 = vmul.f32 %v5847_v26, %v5742_v33  ;;  %v1744_v40 = vmul.f32 %v5853_v38, %v5742_v33  ;;  %v1745_v53 = vmul.f32 %v5859_v56, %v5742_v33  ;;  %v1746_v7 = vmul.f32 %v5866_v54, %v5742_v33 }
 0x256   : > { %v1747_v10 = vmul.f32 %v5872_v51, %v5742_v33  ;;  %v1748_v2 = vmul.f32 %v5876_v34, %v5742_v33  ;;  %v1749_v46 = vmul.f32 %v5881_v27, %v5742_v33  ;;  %v1750_v3 = vmul.f32 %v5885_v62, %v5742_v33 }
 0x257   : > { %v5934_v31 = vmul.f32 %v5889_v43, %v5742_v33  ;;  %v5938_v29 = vmul.f32 %v5896_v49, %v5742_v33  ;;  %v5942_v8 = vmul.f32 %v5900_v13, %v5742_v33  ;;  %v5946_v24 = vmul.f32 %v5904_v21, %v5742_v33 }
 0x258   : > { %v1787_v9 = vrot.slane %v1723_v16, 6  ;;  %v1788_v1 = vrot.slane %v1724_v59, 5  ;;  %v1790_v0 = vrot.slane %v1725_v5, 4  ;;  %v1792_v32 = vrot.slane %v5843_v35, 3 }
 0x259   : > { %v1794_v14 = vrot.slane %v5851_v61, 2  ;;  %v1796_v47 = vrot.slane %v5857_v42, 1  ;;  %v1799_v4 = vrot.slane %v5870_v19, 7  ;;  %v1801_v58 = vrot.slane %v1731_v22, 6 }
 0x25a   : > { %v1789_v44 = vsel %vm1001_vm12, %v1788_v1, %v1787_v9  ;;  %v1802_v57 = vrot.slane %v1732_v12, 5  ;;  %v1804_v23 = vrot.slane %v1733_v30, 4  ;;  %v1806_v13 = vrot.slane %v1734_v45, 3 }
 0x25b   : > { %v1791_v33 = vsel %vm1004_vm13, %v1790_v0, %v1789_v44  ;;  %v1808_v21 = vrot.slane %v1735_v18, 2  ;;  %v1810_v16 = vrot.slane %v1736_v52, 1  ;;  %v1813_v59 = vrot.slane %v1738_v41, 7 }
 0x25c   : > { %v1793_v5 = vsel %vm1007_vm14, %v1792_v32, %v1791_v33  ;;  %v1803_v35 = vsel %vm1001_vm12, %v1802_v57, %v1801_v58  ;;  %v1815_v61 = vrot.slane %v1739_v6, 6  ;;  %v1816_v49 = vrot.slane %v1740_v50, 5 }
 0x25d   : > { %v1795_v42 = vsel %vm1010_vm15, %v1794_v14, %v1793_v5  ;;  %v1805_v19 = vsel %vm1004_vm13, %v1804_v23, %v1803_v35  ;;  %v1818_v22 = vrot.slane %v1741_v36, 4  ;;  %v1820_v9 = vrot.slane %v1742_v25, 3 }
 0x25e   : > { %v1797_v12 = vsel %vm1013_vm0, %v1796_v47, %v1795_v42  ;;  %v1807_v30 = vsel %vm1007_vm14, %v1806_v13, %v1805_v19  ;;  %v1817_v45 = vsel %vm1001_vm12, %v1816_v49, %v1815_v61  ;;  %v1822_v18 = vrot.slane %v1743_v60, 2 }
 0x25f   : > { %v1798_v52 = vsel %vm1016_vm1, %v5863_v28, %v1797_v12  ;;  %v1809_v41 = vsel %vm1010_vm15, %v1808_v21, %v1807_v30  ;;  %v1819_v6 = vsel %vm1004_vm13, %v1818_v22, %v1817_v45  ;;  %v1824_v50 = vrot.slane %v1744_v40, 1  ;;  %v5972_v40 = vld [vmem:[#allocation4] sm:$0xff] }
 0x260   : > { %v1800_v1 = vsel %vm1019_vm2, %v1799_v4, %v1798_v52  ;;  %v1811_v36 = vsel %vm1013_vm0, %v1810_v16, %v1809_v41  ;;  %v1821_v25 = vsel %vm1007_vm14, %v1820_v9, %v1819_v6  ;;  %v1827_v0 = vrot.slane %v1746_v7, 7  ;;  %7512 = vst [vmem:[#allocation46_spill] sm:$0xff] %v5972_v40  ;;  %v5974_v4 = vld [vmem:[#allocation4 + $0x8] sm:$0xff]  ;;  %v4322_v16 = vld [vmem:[#allocation4 + $0x18] sm:$0xff] }
 0x261   : > { %v1812_v13 = vsel %vm1016_vm1, %v1737_v17, %v1811_v36  ;;  %v1823_v49 = vsel %vm1010_vm15, %v1822_v18, %v1821_v25  ;;  %v1829_v60 = vrot.slane %v1747_v10, 6  ;;  %v1830_v32 = vrot.slane %v1748_v2, 5  ;;  %7513 = vst [vmem:[#allocation47_spill] sm:$0xff] %v5974_v4  ;;  %v7515_v36 = vld [vmem:[#allocation54_spill] sm:$0xff] }
 0x262   : > { %v1814_v28 = vsel %vm1019_vm2, %v1813_v59, %v1812_v13  ;;  %v1825_v21 = vsel %vm1013_vm0, %v1824_v50, %v1823_v49  ;;  %v1832_v14 = vrot.slane %v1749_v46, 4  ;;  %v1834_v47 = vrot.slane %v1750_v3, 3  ;;  %v7514_v50 = vld [vmem:[#allocation48_spill] sm:$0xff] }
 0x263   : > { %v1826_v58 = vsel %vm1016_vm1, %v1745_v53, %v1825_v21  ;;  %v1831_v7 = vsel %vm1001_vm12, %v1830_v32, %v1829_v60  ;;  %v1836_v17 = vrot.slane %v5934_v31, 2  ;;  %v1838_v44 = vrot.slane %v5938_v29, 1  ;;  %v4321_v31 = vld [vmem:[#allocation4 + $0x10] sm:$0xff] }
 0x264   : > { %v1828_v10 = vsel %vm1019_vm2, %v1827_v0, %v1826_v58  ;;  %v1833_v2 = vsel %vm1004_vm13, %v1832_v14, %v1831_v7  ;;  %v1841_v57 = vrot.slane %v5946_v24, 7  ;;  %v5984_v46 = vadd.f32 %v1800_v1, %v5823_v15  ;;  %v7516_v0 = vld [vmem:[#allocation55_spill] sm:$0xff] }
 0x265   : > { %v1835_v3 = vsel %vm1007_vm14, %v1834_v47, %v1833_v2  ;;  %v5988_v23 = vadd.f32 %v1814_v28, %v5827_v11  ;;  %v5991_v53 = vadd.f32 %v1828_v10, %v5830_v55  ;;  %v1851_v33 = vperm.slane %v4321_v31, 7 }
 0x266   : > { %v1837_v29 = vsel %vm1010_vm15, %v1836_v17, %v1835_v3  ;;  %v1852_v59 = vperm.slane %v4322_v16, 7  ;;  %v5995_v5 = vperm.slane %v5972_v40, 0  ;;  %v5998_v15 = vperm.slane %v5974_v4, 0 }
 0x267   : > { %v1839_v24 = vsel %vm1013_vm0, %v1838_v44, %v1837_v29  ;;  %v1853_v11 = vmul.f32 %v5768_v37, %v1851_v33  ;;  %v1854_v35 = vmul.f32 %v5771_v48, %v1851_v33  ;;  %v1855_v55 = vmul.f32 %v5774_v39, %v1851_v33 }
 0x268   : > { %v1840_v61 = vsel %vm1016_vm1, %v5942_v8, %v1839_v24  ;;  %v1856_v42 = vmul.f32 %v5839_v63, %v1851_v33  ;;  %v1857_v19 = vmul.f32 %v5847_v26, %v1851_v33  ;;  %v1858_v22 = vmul.f32 %v5853_v38, %v1851_v33 }
 0x269   : > { %v1842_v9 = vsel %vm1019_vm2, %v1841_v57, %v1840_v61  ;;  %v1859_v12 = vmul.f32 %v5859_v56, %v1851_v33  ;;  %v1860_v30 = vmul.f32 %v5866_v54, %v1851_v33  ;;  %v1861_v45 = vmul.f32 %v5872_v51, %v1851_v33 }
 0x26a   : > { %v6014_v18 = vadd.f32 %v1842_v9, %v5894_v20  ;;  %v1862_v52 = vmul.f32 %v5876_v34, %v1851_v33  ;;  %v1863_v8 = vmul.f32 %v5881_v27, %v1851_v33  ;;  %v1864_v41 = vmul.f32 %v5885_v62, %v1851_v33 }
 0x26b   : > { %v1865_v6 = vmul.f32 %v5889_v43, %v1851_v33  ;;  %v1866_v1 = vmul.f32 %v7514_v50, %v1851_v33  ;;  %v1867_v25 = vmul.f32 %v7515_v36, %v1851_v33  ;;  %v1868_v13 = vmul.f32 %v7516_v0, %v1851_v33 }
 0x26c   : > { %v1869_v49 = vmul.f32 %v5768_v37, %v1852_v59  ;;  %v1870_v60 = vmul.f32 %v5771_v48, %v1852_v59  ;;  %v1871_v20 = vmul.f32 %v5774_v39, %v1852_v59  ;;  %v1872_v32 = vmul.f32 %v5839_v63, %v1852_v59 }
 0x26d   : > { %v1873_v28 = vmul.f32 %v5847_v26, %v1852_v59  ;;  %v1874_v21 = vmul.f32 %v5853_v38, %v1852_v59  ;;  %v1875_v14 = vmul.f32 %v5859_v56, %v1852_v59  ;;  %v6031_v47 = vmul.f32 %v5866_v54, %v1852_v59 }
 0x26e   : > { %v1877_v58 = vmul.f32 %v5872_v51, %v1852_v59  ;;  %v1878_v7 = vmul.f32 %v5876_v34, %v1852_v59  ;;  %v6036_v37 = vmul.f32 %v5881_v27, %v1852_v59  ;;  %v6039_v48 = vmul.f32 %v5885_v62, %v1852_v59 }
 0x26f   : > { %v6042_v39 = vmul.f32 %v5889_v43, %v1852_v59  ;;  %v6045_v63 = vmul.f32 %v7514_v50, %v1852_v59  ;;  %v6048_v26 = vmul.f32 %v7515_v36, %v1852_v59  ;;  %v6051_v38 = vmul.f32 %v7516_v0, %v1852_v59 }
 0x270   : > { %v1917_v56 = vrot.slane %v1853_v11, 7  ;;  %v1918_v54 = vrot.slane %v1854_v35, 6  ;;  %v1920_v51 = vrot.slane %v1855_v55, 5  ;;  %v1922_v34 = vrot.slane %v1856_v42, 4 }
 0x271   : > { %v1924_v27 = vrot.slane %v1857_v19, 3  ;;  %v1926_v17 = vrot.slane %v1858_v22, 2  ;;  %v1928_v62 = vrot.slane %v1859_v12, 1  ;;  %v1931_v44 = vrot.slane %v1861_v45, 7 }
 0x272   : > { %v1919_v43 = vsel %vm1001_vm12, %v1918_v54, %v1917_v56  ;;  %v1932_v10 = vrot.slane %v1862_v52, 6  ;;  %v1934_v2 = vrot.slane %v1863_v8, 5  ;;  %v1936_v57 = vrot.slane %v1864_v41, 4  ;;  %v6076_v56 = vld [vmem:[#allocation13 + $0x18] sm:$0xff]  ;;  %v6078_v54 = vld [vmem:[#allocation13 + $0x28] sm:$0xff] }
 0x273   : > { %v1921_v3 = vsel %vm1004_vm13, %v1920_v51, %v1919_v43  ;;  %v1938_v31 = vrot.slane %v1865_v6, 3  ;;  %v1940_v33 = vrot.slane %v1866_v1, 2  ;;  %v1942_v29 = vrot.slane %v1867_v25, 1  ;;  %v6099_v43 = vld [vmem:[#allocation13 + $0x78] sm:$0xff] }
 0x274   : > { %v1923_v16 = vsel %vm1007_vm14, %v1922_v34, %v1921_v3  ;;  %v1933_v59 = vsel %vm1001_vm12, %v1932_v10, %v1931_v44  ;;  %v1945_v24 = vrot.slane %v1869_v49, 7  ;;  %v1946_v11 = vrot.slane %v1870_v60, 6  ;;  %v6086_v34 = vld [vmem:[#allocation13 + $0x48] sm:$0xff] }
 0x275   : > { %v1925_v35 = vsel %vm1010_vm15, %v1924_v27, %v1923_v16  ;;  %v1935_v55 = vsel %vm1004_vm13, %v1934_v2, %v1933_v59  ;;  %v1948_v61 = vrot.slane %v1871_v20, 5  ;;  %v1950_v42 = vrot.slane %v1872_v32, 4  ;;  %v6070_v20 = vld [vmem:[#allocation13 + $0x8] sm:$0xff]  ;;  %v6088_v27 = vld [vmem:[#allocation13 + $0x58] sm:$0xff] }
 0x276   : > { %v1927_v19 = vsel %vm1013_vm0, %v1926_v17, %v1925_v35  ;;  %v1937_v22 = vsel %vm1007_vm14, %v1936_v57, %v1935_v55  ;;  %v1947_v9 = vsel %vm1001_vm12, %v1946_v11, %v1945_v24  ;;  %v1952_v12 = vrot.slane %v1873_v28, 3  ;;  %v6114_v57 = vld [vmem:[#allocation13 + $0xa8] sm:$0xff]  ;;  %v6131_v59 = vld [vmem:[#allocation13 + $0xf8] sm:$0xff] }
 0x277   : > { %v1929_v45 = vsel %vm1016_vm1, %v1928_v62, %v1927_v19  ;;  %v1939_v52 = vsel %vm1010_vm15, %v1938_v31, %v1937_v22  ;;  %v1949_v8 = vsel %vm1004_vm13, %v1948_v61, %v1947_v9  ;;  %v1954_v41 = vrot.slane %v1874_v21, 2  ;;  %7518 = vst [vmem:[#allocation50_spill] sm:$0xff] %v6114_v57  ;;  %v6118_v3 = vld [vmem:[#allocation13 + $0xc8] sm:$0xff] }
 0x278   : > { %v1930_v6 = vsel %vm1019_vm2, %v1860_v30, %v1929_v45  ;;  %v1941_v50 = vsel %vm1013_vm0, %v1940_v33, %v1939_v52  ;;  %v1951_v1 = vsel %vm1007_vm14, %v1950_v42, %v1949_v8  ;;  %v1956_v36 = vrot.slane %v1875_v14, 1  ;;  %v6080_v14 = vld [vmem:[#allocation13 + $0x38] sm:$0xff]  ;;  %7520 = vst [vmem:[#allocation52_spill] sm:$0xff] %v6118_v3  ;;  %v6129_v16 = vld [vmem:[#allocation13 + $0xe8] sm:$0xff] }
 0x279   : > { %v1943_v25 = vsel %vm1016_vm1, %v1942_v29, %v1941_v50  ;;  %v1953_v0 = vsel %vm1010_vm15, %v1952_v12, %v1951_v1  ;;  %v1959_v49 = vrot.slane %v1877_v58, 7  ;;  %v1960_v60 = vrot.slane %v1878_v7, 6  ;;  %v6127_v29 = vld [vmem:[#allocation13 + $0xd8] sm:$0xff]  ;;  %7522 = vst [vmem:[#allocation48_spill] sm:$0xff] %v6129_v16 }
 0x27a   : > { %v1944_v32 = vsel %vm1019_vm2, %v1868_v13, %v1943_v25  ;;  %v1955_v28 = vsel %vm1013_vm0, %v1954_v41, %v1953_v0  ;;  %v1962_v21 = vrot.slane %v6036_v37, 5  ;;  %v1964_v30 = vrot.slane %v6039_v48, 4  ;;  %v6090_v37 = vld [vmem:[#allocation13 + $0x68] sm:$0xff]  ;;  %7521 = vst [vmem:[#allocation53_spill] sm:$0xff] %v6127_v29 }
 0x27b   : > { %v1957_v51 = vsel %vm1016_vm1, %v1956_v36, %v1955_v28  ;;  %v1961_v58 = vsel %vm1001_vm12, %v1960_v60, %v1959_v49  ;;  %v1966_v7 = vrot.slane %v6042_v39, 3  ;;  %v1968_v13 = vrot.slane %v6045_v63, 2  ;;  %v6101_v39 = vld [vmem:[#allocation13 + $0x88] sm:$0xff]  ;;  %v6103_v63 = vld [vmem:[#allocation13 + $0x98] sm:$0xff] }
 0x27c   : > { %v1958_v48 = vsel %vm1019_vm2, %v6031_v47, %v1957_v51  ;;  %v1963_v17 = vsel %vm1004_vm13, %v1962_v21, %v1961_v58  ;;  %v1970_v62 = vrot.slane %v6048_v26, 1  ;;  %v6097_v44 = vadd.f32 %v1930_v6, %v5984_v46  ;;  %7517 = vst [vmem:[#allocation49_spill] sm:$0xff] %v6103_v63  ;;  %v6116_v46 = vld [vmem:[#allocation13 + $0xb8] sm:$0xff] }
 0x27d   : > { %v1965_v10 = vsel %vm1007_vm14, %v1964_v30, %v1963_v17  ;;  %v6107_v2 = vadd.f32 %v1944_v32, %v5988_v23  ;;  %v6110_v47 = vadd.f32 %v1958_v48, %v5991_v53  ;;  %v1983_v26 = vmul.f32 %v5995_v5, %v6070_v20  ;;  %7519 = vst [vmem:[#allocation51_spill] sm:$0xff] %v6116_v46 }
 0x27e   : > { %v1967_v31 = vsel %vm1010_vm15, %v1966_v7, %v1965_v10  ;;  %v1984_v33 = vmul.f32 %v5995_v5, %v6076_v56  ;;  %v1985_v23 = vmul.f32 %v5995_v5, %v6078_v54  ;;  %v1986_v53 = vmul.f32 %v5995_v5, %v6080_v14 }
 0x27f   : > { %v1969_v24 = vsel %vm1013_vm0, %v1968_v13, %v1967_v31  ;;  %v1987_v11 = vmul.f32 %v5995_v5, %v6086_v34  ;;  %v1988_v35 = vmul.f32 %v5995_v5, %v6088_v27  ;;  %v1989_v55 = vmul.f32 %v5995_v5, %v6090_v37 }
 0x280   : > { %v1971_v61 = vsel %vm1016_vm1, %v1970_v62, %v1969_v24  ;;  %v1990_v42 = vmul.f32 %v5995_v5, %v6099_v43  ;;  %v1991_v19 = vmul.f32 %v5995_v5, %v6101_v39  ;;  %v1992_v22 = vmul.f32 %v5995_v5, %v6103_v63 }
 0x281   : > { %v1972_v9 = vsel %vm1019_vm2, %v6051_v38, %v1971_v61  ;;  %v1993_v12 = vmul.f32 %v5995_v5, %v6114_v57  ;;  %v1994_v45 = vmul.f32 %v5995_v5, %v6116_v46  ;;  %v1995_v52 = vmul.f32 %v5995_v5, %v6118_v3 }
 0x282   : > { %v6156_v8 = vadd.f32 %v1972_v9, %v6014_v18  ;;  %v1996_v41 = vmul.f32 %v5995_v5, %v6127_v29  ;;  %v1997_v6 = vmul.f32 %v5995_v5, %v6129_v16  ;;  %v1998_v38 = vmul.f32 %v5995_v5, %v6131_v59 }
 0x283   : > { %v1999_v50 = vmul.f32 %v5998_v15, %v6070_v20  ;;  %v2000_v1 = vmul.f32 %v5998_v15, %v6076_v56  ;;  %v2001_v36 = vmul.f32 %v5998_v15, %v6078_v54  ;;  %v2002_v18 = vmul.f32 %v5998_v15, %v6080_v14 }
 0x284   : > { %v2003_v25 = vmul.f32 %v5998_v15, %v6086_v34  ;;  %v2004_v0 = vmul.f32 %v5998_v15, %v6088_v27  ;;  %v2005_v5 = vmul.f32 %v5998_v15, %v6090_v37  ;;  %v2006_v49 = vmul.f32 %v5998_v15, %v6099_v43 }
 0x285   : > { %v2007_v60 = vmul.f32 %v5998_v15, %v6101_v39  ;;  %v2008_v32 = vmul.f32 %v5998_v15, %v6103_v63  ;;  %v2009_v28 = vmul.f32 %v5998_v15, %v6114_v57  ;;  %v2010_v21 = vmul.f32 %v5998_v15, %v6116_v46 }
 0x286   : > { %v2011_v30 = vmul.f32 %v5998_v15, %v6118_v3  ;;  %v6192_v51 = vmul.f32 %v5998_v15, %v6127_v29  ;;  %v6196_v58 = vmul.f32 %v5998_v15, %v6129_v16  ;;  %v6200_v7 = vmul.f32 %v5998_v15, %v6131_v59 }
 0x287   : > { %v2047_v13 = vrot.slane %v1984_v33, 7  ;;  %v2049_v48 = vrot.slane %v1985_v23, 6  ;;  %v2051_v17 = vrot.slane %v1986_v53, 5  ;;  %v2053_v62 = vrot.slane %v1987_v11, 4 }
 0x288   : > { %v2055_v10 = vrot.slane %v1988_v35, 3  ;;  %v2057_v31 = vrot.slane %v1989_v55, 2  ;;  %v2059_v24 = vrot.slane %v1990_v42, 1  ;;  %v2061_v61 = vrot.slane %v1992_v22, 7 }
 0x289   : > { %v2048_v9 = vsel %vm1001_vm12, %v2047_v13, %v1983_v26  ;;  %v2063_v29 = vrot.slane %v1993_v12, 6  ;;  %v2065_v3 = vrot.slane %v1994_v45, 5  ;;  %v2067_v46 = vrot.slane %v1995_v52, 4 }
 0x28a   : > { %v2050_v16 = vsel %vm1004_vm13, %v2049_v48, %v2048_v9  ;;  %v2062_v57 = vsel %vm1001_vm12, %v2061_v61, %v1991_v19  ;;  %v2069_v63 = vrot.slane %v1996_v41, 3  ;;  %v2071_v15 = vrot.slane %v1997_v6, 2 }
 0x28b   : > { %v2052_v33 = vsel %vm1007_vm14, %v2051_v17, %v2050_v16  ;;  %v2064_v23 = vsel %vm1004_vm13, %v2063_v29, %v2062_v57  ;;  %v2073_v53 = vrot.slane %v1998_v38, 1  ;;  %v2075_v11 = vrot.slane %v2000_v1, 7 }
 0x28c   : > { %v2054_v35 = vsel %vm1010_vm15, %v2053_v62, %v2052_v33  ;;  %v2066_v55 = vsel %vm1007_vm14, %v2065_v3, %v2064_v23  ;;  %v2077_v26 = vrot.slane %v2001_v36, 6  ;;  %v2079_v42 = vrot.slane %v2002_v18, 5 }
 0x28d   : > { %v2056_v22 = vsel %vm1013_vm0, %v2055_v10, %v2054_v35  ;;  %v2068_v12 = vsel %vm1010_vm15, %v2067_v46, %v2066_v55  ;;  %v2076_v19 = vsel %vm1001_vm12, %v2075_v11, %v1999_v50  ;;  %v2081_v45 = vrot.slane %v2003_v25, 4 }
 0x28e   : > { %v2058_v52 = vsel %vm1016_vm1, %v2057_v31, %v2056_v22  ;;  %v2070_v16 = vsel %vm1013_vm0, %v2069_v63, %v2068_v12  ;;  %v2078_v57 = vsel %vm1004_vm13, %v2077_v26, %v2076_v19  ;;  %v2083_v29 = vrot.slane %v2004_v0, 3  ;;  %v7525_v26 = vld [vmem:[#allocation49_spill] sm:$0xff]  ;;  %v7526_v22 = vld [vmem:[#allocation50_spill] sm:$0xff]  ;;  %v7527_v19 = vld [vmem:[#allocation51_spill] sm:$0xff] }
 0x28f   : > { %v2060_v41 = vsel %vm1019_vm2, %v2059_v24, %v2058_v52  ;;  %v2072_v3 = vsel %vm1016_vm1, %v2071_v15, %v2070_v16  ;;  %v2080_v6 = vsel %vm1007_vm14, %v2079_v42, %v2078_v57  ;;  %v2085_v38 = vrot.slane %v2005_v5, 2  ;;  %v7528_v52 = vld [vmem:[#allocation52_spill] sm:$0xff]  ;;  %v7529_v57 = vld [vmem:[#allocation53_spill] sm:$0xff] }
 0x290   : > { %v2074_v1 = vsel %vm1019_vm2, %v2073_v53, %v2072_v3  ;;  %v2082_v46 = vsel %vm1010_vm15, %v2081_v45, %v2080_v6  ;;  %v2087_v50 = vrot.slane %v2006_v49, 1  ;;  %v2089_v36 = vrot.slane %v2008_v32, 7 }
 0x291   : > { %v2084_v18 = vsel %vm1013_vm0, %v2083_v29, %v2082_v46  ;;  %v2091_v25 = vrot.slane %v2009_v28, 6  ;;  %v2093_v63 = vrot.slane %v2010_v21, 5  ;;  %v2095_v13 = vrot.slane %v2011_v30, 4 }
 0x292   : > { %v2086_v0 = vsel %vm1016_vm1, %v2085_v38, %v2084_v18  ;;  %v2090_v48 = vsel %vm1001_vm12, %v2089_v36, %v2007_v60  ;;  %v2097_v17 = vrot.slane %v6192_v51, 3  ;;  %v2099_v62 = vrot.slane %v6196_v58, 2 }
 0x293   : > { %v2088_v5 = vsel %vm1019_vm2, %v2087_v50, %v2086_v0  ;;  %v2092_v10 = vsel %vm1004_vm13, %v2091_v25, %v2090_v48  ;;  %v2101_v49 = vrot.slane %v6200_v7, 1  ;;  %v6229_v32 = vadd.f32 %v2060_v41, %v6097_v44  ;;  %v7530_v41 = vld [vmem:[#allocation48_spill] sm:$0xff] }
 0x294   : > { %v2094_v28 = vsel %vm1007_vm14, %v2093_v63, %v2092_v10  ;;  %v6233_v21 = vadd.f32 %v2074_v1, %v6107_v2  ;;  %v6236_v60 = vadd.f32 %v2088_v5, %v6110_v47  ;;  %v2111_v30 = vperm.slane %v5972_v40, 1 }
 0x295   : > { %v2096_v51 = vsel %vm1010_vm15, %v2095_v13, %v2094_v28  ;;  %v2112_v58 = vperm.slane %v5974_v4, 1  ;;  %v6242_v31 = vperm.slane %v5972_v40, 2  ;;  %v6245_v44 = vperm.slane %v5974_v4, 2 }
 0x296   : > { %v2098_v7 = vsel %vm1013_vm0, %v2097_v17, %v2096_v51  ;;  %v2113_v2 = vmul.f32 %v2111_v30, %v6070_v20  ;;  %v2114_v24 = vmul.f32 %v2111_v30, %v6076_v56  ;;  %v2115_v47 = vmul.f32 %v2111_v30, %v6078_v54 }
 0x297   : > { %7523 = vst [vmem:[#allocation54_spill] sm:$0xff] %v6245_v44  ;;  %v2100_v61 = vsel %vm1016_vm1, %v2099_v62, %v2098_v7  ;;  %v2116_v9 = vmul.f32 %v2111_v30, %v6080_v14  ;;  %v2117_v15 = vmul.f32 %v2111_v30, %v6086_v34  ;;  %v2118_v33 = vmul.f32 %v2111_v30, %v6088_v27 }
 0x298   : > { %v2102_v23 = vsel %vm1019_vm2, %v2101_v49, %v2100_v61  ;;  %v2119_v53 = vmul.f32 %v2111_v30, %v6090_v37  ;;  %v2120_v11 = vmul.f32 %v2111_v30, %v6099_v43  ;;  %v2121_v35 = vmul.f32 %v2111_v30, %v6101_v39 }
 0x299   : > { %v6260_v55 = vadd.f32 %v2102_v23, %v6156_v8  ;;  %v2122_v42 = vmul.f32 %v2111_v30, %v7525_v26  ;;  %v2123_v12 = vmul.f32 %v2111_v30, %v7526_v22  ;;  %v2124_v45 = vmul.f32 %v2111_v30, %v7527_v19 }
 0x29a   : > { %v2125_v16 = vmul.f32 %v2111_v30, %v7528_v52  ;;  %v2126_v29 = vmul.f32 %v2111_v30, %v7529_v57  ;;  %v2127_v3 = vmul.f32 %v2111_v30, %v7530_v41  ;;  %v2128_v6 = vmul.f32 %v2111_v30, %v6131_v59 }
 0x29b   : > { %7524 = vst [vmem:[#allocation55_spill] sm:$0xff] %v6260_v55  ;;  %v2129_v38 = vmul.f32 %v2112_v58, %v6070_v20  ;;  %v2130_v1 = vmul.f32 %v2112_v58, %v6076_v56  ;;  %v2131_v8 = vmul.f32 %v2112_v58, %v6078_v54  ;;  %v2132_v46 = vmul.f32 %v2112_v58, %v6080_v14 }
 0x29c   : > { %v2133_v50 = vmul.f32 %v2112_v58, %v6086_v34  ;;  %v2134_v36 = vmul.f32 %v2112_v58, %v6088_v27  ;;  %v2135_v18 = vmul.f32 %v2112_v58, %v6090_v37  ;;  %v2136_v25 = vmul.f32 %v2112_v58, %v6099_v43 }
 0x29d   : > { %v2137_v63 = vmul.f32 %v2112_v58, %v6101_v39  ;;  %v2138_v13 = vmul.f32 %v2112_v58, %v7525_v26  ;;  %v2139_v0 = vmul.f32 %v2112_v58, %v7526_v22  ;;  %v2140_v48 = vmul.f32 %v2112_v58, %v7527_v19 }
 0x29e   : > { %v2141_v17 = vmul.f32 %v2112_v58, %v7528_v52  ;;  %v6283_v62 = vmul.f32 %v2112_v58, %v7529_v57  ;;  %v6286_v5 = vmul.f32 %v2112_v58, %v7530_v41  ;;  %v6289_v10 = vmul.f32 %v2112_v58, %v6131_v59 }
 0x29f   : > { %v2177_v49 = vrot.slane %v2113_v2, 1  ;;  %v2179_v28 = vrot.slane %v2115_v47, 7  ;;  %v2181_v30 = vrot.slane %v2116_v9, 6  ;;  %v2183_v51 = vrot.slane %v2117_v15, 5 }
 0x2a0   : > { %v2185_v7 = vrot.slane %v2118_v33, 4  ;;  %v2187_v61 = vrot.slane %v2119_v53, 3  ;;  %v2189_v23 = vrot.slane %v2120_v11, 2  ;;  %v2191_v4 = vrot.slane %v2121_v35, 1 }
 0x2a1   : > { %v2178_v40 = vsel %vm1001_vm12, %v2114_v24, %v2177_v49  ;;  %v2193_v44 = vrot.slane %v2123_v12, 7  ;;  %v2195_v55 = vrot.slane %v2124_v45, 6  ;;  %v2197_v57 = vrot.slane %v2125_v16, 5 }
 0x2a2   : > { %v2180_v52 = vsel %vm1004_vm13, %v2179_v28, %v2178_v40  ;;  %v2192_v41 = vsel %vm1001_vm12, %v2122_v42, %v2191_v4  ;;  %v2199_v19 = vrot.slane %v2126_v29, 4  ;;  %v2201_v58 = vrot.slane %v2127_v3, 3 }
 0x2a3   : > { %v2182_v2 = vsel %vm1007_vm14, %v2181_v30, %v2180_v52  ;;  %v2194_v47 = vsel %vm1004_vm13, %v2193_v44, %v2192_v41  ;;  %v2203_v9 = vrot.slane %v2128_v6, 2  ;;  %v2205_v15 = vrot.slane %v2129_v38, 1 }
 0x2a4   : > { %v2184_v33 = vsel %vm1010_vm15, %v2183_v51, %v2182_v2  ;;  %v2196_v53 = vsel %vm1007_vm14, %v2195_v55, %v2194_v47  ;;  %v2207_v24 = vrot.slane %v2131_v8, 7  ;;  %v2209_v11 = vrot.slane %v2132_v46, 6 }
 0x2a5   : > { %v2186_v35 = vsel %vm1013_vm0, %v2185_v7, %v2184_v33  ;;  %v2198_v40 = vsel %vm1010_vm15, %v2197_v57, %v2196_v53  ;;  %v2206_v4 = vsel %vm1001_vm12, %v2130_v1, %v2205_v15  ;;  %v2211_v42 = vrot.slane %v2133_v50, 5  ;;  %v7531_v15 = vld [vmem:[#allocation51_spill] sm:$0xff]  ;;  %v7532_v53 = vld [vmem:[#allocation52_spill] sm:$0xff] }
 0x2a6   : > { %v2188_v12 = vsel %vm1016_vm1, %v2187_v61, %v2186_v35  ;;  %v2200_v45 = vsel %vm1013_vm0, %v2199_v19, %v2198_v40  ;;  %v2208_v44 = vsel %vm1004_vm13, %v2207_v24, %v2206_v4  ;;  %v2213_v52 = vrot.slane %v2134_v36, 4  ;;  %v7534_v40 = vld [vmem:[#allocation53_spill] sm:$0xff] }
 0x2a7   : > { %v2190_v16 = vsel %vm1019_vm2, %v2189_v23, %v2188_v12  ;;  %v2202_v55 = vsel %vm1016_vm1, %v2201_v58, %v2200_v45  ;;  %v2210_v29 = vsel %vm1007_vm14, %v2209_v11, %v2208_v44  ;;  %v2215_v41 = vrot.slane %v2135_v18, 3  ;;  %v7533_v11 = vld [vmem:[#allocation55_spill] sm:$0xff]  ;;  %v7536_v44 = vld [vmem:[#allocation54_spill] sm:$0xff] }
 0x2a8   : > { %v2204_v3 = vsel %vm1019_vm2, %v2203_v9, %v2202_v55  ;;  %v2212_v57 = vsel %vm1010_vm15, %v2211_v42, %v2210_v29  ;;  %v2217_v6 = vrot.slane %v2136_v25, 2  ;;  %v2219_v38 = vrot.slane %v2137_v63, 1  ;;  %v7535_v42 = vld [vmem:[#allocation48_spill] sm:$0xff] }
 0x2a9   : > { %v2214_v1 = vsel %vm1013_vm0, %v2213_v52, %v2212_v57  ;;  %v2221_v8 = vrot.slane %v2139_v0, 7  ;;  %v2223_v19 = vrot.slane %v2140_v48, 6  ;;  %v2225_v46 = vrot.slane %v2141_v17, 5 }
 0x2aa   : > { %v2216_v50 = vsel %vm1016_vm1, %v2215_v41, %v2214_v1  ;;  %v2220_v36 = vsel %vm1001_vm12, %v2138_v13, %v2219_v38  ;;  %v2227_v49 = vrot.slane %v6283_v62, 4  ;;  %v2229_v28 = vrot.slane %v6286_v5, 3 }
 0x2ab   : > { %v2218_v18 = vsel %vm1019_vm2, %v2217_v6, %v2216_v50  ;;  %v2222_v30 = vsel %vm1004_vm13, %v2221_v8, %v2220_v36  ;;  %v2231_v25 = vrot.slane %v6289_v10, 2  ;;  %v6318_v63 = vadd.f32 %v2190_v16, %v6229_v32 }
 0x2ac   : > { %v2224_v0 = vsel %vm1007_vm14, %v2223_v19, %v2222_v30  ;;  %v6322_v48 = vadd.f32 %v2204_v3, %v6233_v21  ;;  %v6325_v13 = vadd.f32 %v2218_v18, %v6236_v60  ;;  %v2243_v17 = vmul.f32 %v6242_v31, %v6070_v20 }
 0x2ad   : > { %v2226_v62 = vsel %vm1010_vm15, %v2225_v46, %v2224_v0  ;;  %v2244_v5 = vmul.f32 %v6242_v31, %v6076_v56  ;;  %v2245_v32 = vmul.f32 %v6242_v31, %v6078_v54  ;;  %v2246_v10 = vmul.f32 %v6242_v31, %v6080_v14 }
 0x2ae   : > { %v2228_v21 = vsel %vm1013_vm0, %v2227_v49, %v2226_v62  ;;  %v2247_v60 = vmul.f32 %v6242_v31, %v6086_v34  ;;  %v2248_v51 = vmul.f32 %v6242_v31, %v6088_v27  ;;  %v2249_v7 = vmul.f32 %v6242_v31, %v6090_v37 }
 0x2af   : > { %v2230_v61 = vsel %vm1016_vm1, %v2229_v28, %v2228_v21  ;;  %v2250_v23 = vmul.f32 %v6242_v31, %v6099_v43  ;;  %v2251_v58 = vmul.f32 %v6242_v31, %v6101_v39  ;;  %v2252_v2 = vmul.f32 %v6242_v31, %v7525_v26 }
 0x2b0   : > { %v2232_v47 = vsel %vm1019_vm2, %v2231_v25, %v2230_v61  ;;  %v2253_v9 = vmul.f32 %v6242_v31, %v7526_v22  ;;  %v2254_v33 = vmul.f32 %v6242_v31, %v7531_v15  ;;  %v2255_v24 = vmul.f32 %v6242_v31, %v7532_v53 }
 0x2b1   : > { %v6358_v35 = vadd.f32 %v2232_v47, %v7533_v11  ;;  %v2256_v4 = vmul.f32 %v6242_v31, %v7534_v40  ;;  %v2257_v12 = vmul.f32 %v6242_v31, %v7535_v42  ;;  %v2258_v45 = vmul.f32 %v6242_v31, %v6131_v59 }
 0x2b2   : > { %v2259_v52 = vmul.f32 %v7536_v44, %v6070_v20  ;;  %v2260_v16 = vmul.f32 %v7536_v44, %v6076_v56  ;;  %v2261_v55 = vmul.f32 %v7536_v44, %v6078_v54  ;;  %v2262_v29 = vmul.f32 %v7536_v44, %v6080_v14 }
 0x2b3   : > { %v2263_v41 = vmul.f32 %v7536_v44, %v6086_v34  ;;  %v2264_v3 = vmul.f32 %v7536_v44, %v6088_v27  ;;  %v2265_v31 = vmul.f32 %v7536_v44, %v6090_v37  ;;  %v2266_v57 = vmul.f32 %v7536_v44, %v6099_v43 }
 0x2b4   : > { %v2267_v6 = vmul.f32 %v7536_v44, %v6101_v39  ;;  %v2268_v38 = vmul.f32 %v7536_v44, %v7525_v26  ;;  %v2269_v1 = vmul.f32 %v7536_v44, %v7526_v22  ;;  %v2270_v8 = vmul.f32 %v7536_v44, %v7531_v15 }
 0x2b5   : > { %v2271_v19 = vmul.f32 %v7536_v44, %v7532_v53  ;;  %v6394_v46 = vmul.f32 %v7536_v44, %v7534_v40  ;;  %v6398_v50 = vmul.f32 %v7536_v44, %v7535_v42  ;;  %v6402_v36 = vmul.f32 %v7536_v44, %v6131_v59 }
 0x2b6   : > { %v2307_v49 = vrot.slane %v2243_v17, 2  ;;  %v2308_v28 = vrot.slane %v2244_v5, 1  ;;  %v2311_v18 = vrot.slane %v2246_v10, 7  ;;  %v2313_v30 = vrot.slane %v2247_v60, 6 }
 0x2b7   : > { %v2315_v25 = vrot.slane %v2248_v51, 5  ;;  %v2317_v0 = vrot.slane %v2249_v7, 4  ;;  %v2319_v62 = vrot.slane %v2250_v23, 3  ;;  %v2321_v21 = vrot.slane %v2251_v58, 2 }
 0x2b8   : > { %v2309_v61 = vsel %vm1001_vm12, %v2308_v28, %v2307_v49  ;;  %v2322_v47 = vrot.slane %v2252_v2, 1  ;;  %v2325_v11 = vrot.slane %v2254_v33, 7  ;;  %v2327_v40 = vrot.slane %v2255_v24, 6 }
 0x2b9   : > { %v2310_v42 = vsel %vm1004_vm13, %v2245_v32, %v2309_v61  ;;  %v2329_v53 = vrot.slane %v2256_v4, 5  ;;  %v2331_v15 = vrot.slane %v2257_v12, 4  ;;  %v2333_v22 = vrot.slane %v2258_v45, 3 }
 0x2ba   : > { %v2312_v44 = vsel %vm1007_vm14, %v2311_v18, %v2310_v42  ;;  %v2323_v17 = vsel %vm1001_vm12, %v2322_v47, %v2321_v21  ;;  %v2335_v5 = vrot.slane %v2259_v52, 2  ;;  %v2336_v10 = vrot.slane %v2260_v16, 1 }
 0x2bb   : > { %v2314_v60 = vsel %vm1010_vm15, %v2313_v30, %v2312_v44  ;;  %v2324_v51 = vsel %vm1004_vm13, %v2253_v9, %v2323_v17  ;;  %v2339_v7 = vrot.slane %v2262_v29, 7  ;;  %v2341_v23 = vrot.slane %v2263_v41, 6 }
 0x2bc   : > { %v2316_v58 = vsel %vm1013_vm0, %v2315_v25, %v2314_v60  ;;  %v2326_v2 = vsel %vm1007_vm14, %v2325_v11, %v2324_v51  ;;  %v2337_v32 = vsel %vm1001_vm12, %v2336_v10, %v2335_v5  ;;  %v2343_v33 = vrot.slane %v2264_v3, 5 }
 0x2bd   : > { %v2318_v24 = vsel %vm1016_vm1, %v2317_v0, %v2316_v58  ;;  %v2328_v4 = vsel %vm1010_vm15, %v2327_v40, %v2326_v2  ;;  %v2338_v42 = vsel %vm1004_vm13, %v2261_v55, %v2337_v32  ;;  %v2345_v12 = vrot.slane %v2265_v31, 4  ;;  %v7541_v58 = vld [vmem:[#allocation50_spill] sm:$0xff]  ;;  %v7542_v32 = vld [vmem:[#allocation51_spill] sm:$0xff] }
 0x2be   : > { %v2320_v45 = vsel %vm1019_vm2, %v2319_v62, %v2318_v24  ;;  %v2330_v9 = vsel %vm1013_vm0, %v2329_v53, %v2328_v4  ;;  %v2340_v52 = vsel %vm1007_vm14, %v2339_v7, %v2338_v42  ;;  %v2347_v16 = vrot.slane %v2266_v57, 3  ;;  %v7538_v62 = vld [vmem:[#allocation47_spill] sm:$0xff]  ;;  %v7543_v24 = vld [vmem:[#allocation52_spill] sm:$0xff]  ;;  %v7544_v42 = vld [vmem:[#allocation53_spill] sm:$0xff] }
 0x2bf   : > { %v2332_v29 = vsel %vm1016_vm1, %v2331_v15, %v2330_v9  ;;  %v2342_v41 = vsel %vm1010_vm15, %v2341_v23, %v2340_v52  ;;  %v2349_v49 = vrot.slane %v2267_v6, 2  ;;  %v2350_v3 = vrot.slane %v2268_v38, 1 }
 0x2c0   : > { %v2334_v28 = vsel %vm1019_vm2, %v2333_v22, %v2332_v29  ;;  %v2344_v40 = vsel %vm1013_vm0, %v2343_v33, %v2342_v41  ;;  %v2353_v18 = vrot.slane %v2270_v8, 7  ;;  %v2355_v55 = vrot.slane %v2271_v19, 6 }
 0x2c1   : > { %v2346_v31 = vsel %vm1016_vm1, %v2345_v12, %v2344_v40  ;;  %v2351_v30 = vsel %vm1001_vm12, %v2350_v3, %v2349_v49  ;;  %v2357_v53 = vrot.slane %v6394_v46, 5  ;;  %v2359_v57 = vrot.slane %v6398_v50, 4  ;;  %v7537_v46 = vld [vmem:[#allocation46_spill] sm:$0xff] }
 0x2c2   : > { %v2348_v15 = vsel %vm1019_vm2, %v2347_v16, %v2346_v31  ;;  %v2352_v25 = vsel %vm1004_vm13, %v2269_v1, %v2351_v30  ;;  %v2361_v6 = vrot.slane %v6402_v36, 3  ;;  %v6431_v22 = vadd.f32 %v2320_v45, %v6318_v63  ;;  %v7545_v45 = vld [vmem:[#allocation48_spill] sm:$0xff] }
 0x2c3   : > { %v2354_v38 = vsel %vm1007_vm14, %v2353_v18, %v2352_v25  ;;  %v6435_v8 = vadd.f32 %v2334_v28, %v6322_v48  ;;  %v6438_v19 = vadd.f32 %v2348_v15, %v6325_v13  ;;  %v2371_v0 = vperm.slane %v7537_v46, 3 }
 0x2c4   : > { %v2356_v50 = vsel %vm1010_vm15, %v2355_v55, %v2354_v38  ;;  %v2372_v21 = vperm.slane %v7538_v62, 3  ;;  %v6444_v1 = vperm.slane %v7537_v46, 4  ;;  %v6447_v63 = vperm.slane %v7538_v62, 4 }
 0x2c5   : > { %v2358_v36 = vsel %vm1013_vm0, %v2357_v53, %v2356_v50  ;;  %v2373_v48 = vmul.f32 %v2371_v0, %v6070_v20  ;;  %v2374_v61 = vmul.f32 %v2371_v0, %v6076_v56  ;;  %v2375_v13 = vmul.f32 %v2371_v0, %v6078_v54 }
 0x2c6   : > { %7539 = vst [vmem:[#allocation49_spill] sm:$0xff] %v6447_v63  ;;  %v2360_v47 = vsel %vm1016_vm1, %v2359_v57, %v2358_v36  ;;  %v2376_v11 = vmul.f32 %v2371_v0, %v6080_v14  ;;  %v2377_v44 = vmul.f32 %v2371_v0, %v6086_v34  ;;  %v2378_v17 = vmul.f32 %v2371_v0, %v6088_v27 }
 0x2c7   : > { %v2362_v5 = vsel %vm1019_vm2, %v2361_v6, %v2360_v47  ;;  %v2379_v10 = vmul.f32 %v2371_v0, %v6090_v37  ;;  %v2380_v60 = vmul.f32 %v2371_v0, %v6099_v43  ;;  %v2381_v51 = vmul.f32 %v2371_v0, %v6101_v39 }
 0x2c8   : > { %v6462_v7 = vadd.f32 %v2362_v5, %v6358_v35  ;;  %v2382_v23 = vmul.f32 %v2371_v0, %v7525_v26  ;;  %v2383_v2 = vmul.f32 %v2371_v0, %v7541_v58  ;;  %v2384_v33 = vmul.f32 %v2371_v0, %v7542_v32 }
 0x2c9   : > { %v2385_v4 = vmul.f32 %v2371_v0, %v7543_v24  ;;  %v2386_v12 = vmul.f32 %v2371_v0, %v7544_v42  ;;  %v2387_v9 = vmul.f32 %v2371_v0, %v7545_v45  ;;  %v2388_v52 = vmul.f32 %v2371_v0, %v6131_v59 }
 0x2ca   : > { %7540 = vst [vmem:[#allocation55_spill] sm:$0xff] %v6462_v7  ;;  %v2389_v16 = vmul.f32 %v2372_v21, %v6070_v20  ;;  %v2390_v29 = vmul.f32 %v2372_v21, %v6076_v56  ;;  %v2391_v35 = vmul.f32 %v2372_v21, %v6078_v54  ;;  %v2392_v41 = vmul.f32 %v2372_v21, %v6080_v14 }
 0x2cb   : > { %v2393_v49 = vmul.f32 %v2372_v21, %v6086_v34  ;;  %v2394_v3 = vmul.f32 %v2372_v21, %v6088_v27  ;;  %v2395_v28 = vmul.f32 %v2372_v21, %v6090_v37  ;;  %v2396_v40 = vmul.f32 %v2372_v21, %v6099_v43 }
 0x2cc   : > { %v2397_v18 = vmul.f32 %v2372_v21, %v6101_v39  ;;  %v2398_v55 = vmul.f32 %v2372_v21, %v7525_v26  ;;  %v2399_v31 = vmul.f32 %v2372_v21, %v7541_v58  ;;  %v2400_v30 = vmul.f32 %v2372_v21, %v7542_v32 }
 0x2cd   : > { %v2401_v53 = vmul.f32 %v2372_v21, %v7543_v24  ;;  %v6485_v57 = vmul.f32 %v2372_v21, %v7544_v42  ;;  %v6488_v15 = vmul.f32 %v2372_v21, %v7545_v45  ;;  %v6491_v25 = vmul.f32 %v2372_v21, %v6131_v59 }
 0x2ce   : > { %v2437_v6 = vrot.slane %v2373_v48, 3  ;;  %v2438_v38 = vrot.slane %v2374_v61, 2  ;;  %v2440_v46 = vrot.slane %v2375_v13, 1  ;;  %v2443_v0 = vrot.slane %v2377_v44, 7 }
 0x2cf   : > { %v2445_v50 = vrot.slane %v2378_v17, 6  ;;  %v2447_v62 = vrot.slane %v2379_v10, 5  ;;  %v2449_v36 = vrot.slane %v2380_v60, 4  ;;  %v2451_v47 = vrot.slane %v2381_v51, 3 }
 0x2d0   : > { %v2439_v5 = vsel %vm1001_vm12, %v2438_v38, %v2437_v6  ;;  %v2452_v63 = vrot.slane %v2382_v23, 2  ;;  %v2454_v7 = vrot.slane %v2383_v2, 1  ;;  %v2457_v42 = vrot.slane %v2385_v4, 7 }
 0x2d1   : > { %v2441_v24 = vsel %vm1004_vm13, %v2440_v46, %v2439_v5  ;;  %v2459_v45 = vrot.slane %v2386_v12, 6  ;;  %v2461_v32 = vrot.slane %v2387_v9, 5  ;;  %v2463_v58 = vrot.slane %v2388_v52, 4 }
 0x2d2   : > { %v2442_v21 = vsel %vm1007_vm14, %v2376_v11, %v2441_v24  ;;  %v2453_v48 = vsel %vm1001_vm12, %v2452_v63, %v2451_v47  ;;  %v2465_v61 = vrot.slane %v2389_v16, 3  ;;  %v2466_v13 = vrot.slane %v2390_v29, 2 }
 0x2d3   : > { %v2444_v44 = vsel %vm1010_vm15, %v2443_v0, %v2442_v21  ;;  %v2455_v17 = vsel %vm1004_vm13, %v2454_v7, %v2453_v48  ;;  %v2468_v10 = vrot.slane %v2391_v35, 1  ;;  %v2471_v60 = vrot.slane %v2393_v49, 7  ;;  %v7546_v48 = vld [vmem:[#allocation50_spill] sm:$0xff] }
 0x2d4   : > { %v2446_v51 = vsel %vm1013_vm0, %v2445_v50, %v2444_v44  ;;  %v2456_v23 = vsel %vm1007_vm14, %v2384_v33, %v2455_v17  ;;  %v2467_v2 = vsel %vm1001_vm12, %v2466_v13, %v2465_v61  ;;  %v2473_v4 = vrot.slane %v2394_v3, 6  ;;  %v7547_v13 = vld [vmem:[#allocation51_spill] sm:$0xff]  ;;  %v7548_v17 = vld [vmem:[#allocation52_spill] sm:$0xff] }
 0x2d5   : > { %v2448_v12 = vsel %vm1016_vm1, %v2447_v62, %v2446_v51  ;;  %v2458_v11 = vsel %vm1010_vm15, %v2457_v42, %v2456_v23  ;;  %v2469_v63 = vsel %vm1004_vm13, %v2468_v10, %v2467_v2  ;;  %v2475_v24 = vrot.slane %v2395_v28, 5  ;;  %v7550_v23 = vld [vmem:[#allocation53_spill] sm:$0xff] }
 0x2d6   : > { %v2450_v9 = vsel %vm1019_vm2, %v2449_v36, %v2448_v12  ;;  %v2460_v7 = vsel %vm1013_vm0, %v2459_v45, %v2458_v11  ;;  %v2470_v52 = vsel %vm1007_vm14, %v2392_v41, %v2469_v63  ;;  %v2477_v16 = vrot.slane %v2396_v40, 4  ;;  %v7552_v63 = vld [vmem:[#allocation49_spill] sm:$0xff] }
 0x2d7   : > { %v2462_v29 = vsel %vm1016_vm1, %v2461_v32, %v2460_v7  ;;  %v2472_v33 = vsel %vm1010_vm15, %v2471_v60, %v2470_v52  ;;  %v2479_v35 = vrot.slane %v2397_v18, 3  ;;  %v2480_v49 = vrot.slane %v2398_v55, 2  ;;  %v7549_v60 = vld [vmem:[#allocation55_spill] sm:$0xff] }
 0x2d8   : > { %v2464_v3 = vsel %vm1019_vm2, %v2463_v58, %v2462_v29  ;;  %v2474_v42 = vsel %vm1013_vm0, %v2473_v4, %v2472_v33  ;;  %v2482_v6 = vrot.slane %v2399_v31, 1  ;;  %v2485_v38 = vrot.slane %v2401_v53, 7  ;;  %v7551_v4 = vld [vmem:[#allocation48_spill] sm:$0xff] }
 0x2d9   : > { %v2476_v28 = vsel %vm1016_vm1, %v2475_v24, %v2474_v42  ;;  %v2481_v46 = vsel %vm1001_vm12, %v2480_v49, %v2479_v35  ;;  %v2487_v45 = vrot.slane %v6485_v57, 6  ;;  %v2489_v41 = vrot.slane %v6488_v15, 5 }
 0x2da   : > { %v2478_v32 = vsel %vm1019_vm2, %v2477_v16, %v2476_v28  ;;  %v2483_v40 = vsel %vm1004_vm13, %v2482_v6, %v2481_v46  ;;  %v2491_v18 = vrot.slane %v6491_v25, 4  ;;  %v6520_v58 = vadd.f32 %v2450_v9, %v6431_v22 }
 0x2db   : > { %v2484_v55 = vsel %vm1007_vm14, %v2400_v30, %v2483_v40  ;;  %v6524_v31 = vadd.f32 %v2464_v3, %v6435_v8  ;;  %v6527_v53 = vadd.f32 %v2478_v32, %v6438_v19  ;;  %v2503_v57 = vmul.f32 %v6444_v1, %v6070_v20 }
 0x2dc   : > { %v2486_v15 = vsel %vm1010_vm15, %v2485_v38, %v2484_v55  ;;  %v2504_v0 = vmul.f32 %v6444_v1, %v6076_v56  ;;  %v2505_v22 = vmul.f32 %v6444_v1, %v6078_v54  ;;  %v2506_v30 = vmul.f32 %v6444_v1, %v6080_v14 }
 0x2dd   : > { %v2488_v8 = vsel %vm1013_vm0, %v2487_v45, %v2486_v15  ;;  %v2507_v19 = vmul.f32 %v6444_v1, %v6086_v34  ;;  %v2508_v25 = vmul.f32 %v6444_v1, %v6088_v27  ;;  %v2509_v50 = vmul.f32 %v6444_v1, %v6090_v37 }
 0x2de   : > { %v2490_v62 = vsel %vm1016_vm1, %v2489_v41, %v2488_v8  ;;  %v2510_v36 = vmul.f32 %v6444_v1, %v6099_v43  ;;  %v2511_v47 = vmul.f32 %v6444_v1, %v6101_v39  ;;  %v2512_v5 = vmul.f32 %v6444_v1, %v7525_v26 }
 0x2df   : > { %v2492_v21 = vsel %vm1019_vm2, %v2491_v18, %v2490_v62  ;;  %v2513_v61 = vmul.f32 %v6444_v1, %v7546_v48  ;;  %v2514_v44 = vmul.f32 %v6444_v1, %v7547_v13  ;;  %v2515_v10 = vmul.f32 %v6444_v1, %v7548_v17 }
 0x2e0   : > { %v6560_v51 = vadd.f32 %v2492_v21, %v7549_v60  ;;  %v2516_v2 = vmul.f32 %v6444_v1, %v7550_v23  ;;  %v2517_v12 = vmul.f32 %v6444_v1, %v7551_v4  ;;  %v2518_v11 = vmul.f32 %v6444_v1, %v6131_v59 }
 0x2e1   : > { %v2519_v24 = vmul.f32 %v7552_v63, %v6070_v20  ;;  %v2520_v9 = vmul.f32 %v7552_v63, %v6076_v56  ;;  %v2521_v7 = vmul.f32 %v7552_v63, %v6078_v54  ;;  %v2522_v52 = vmul.f32 %v7552_v63, %v6080_v14 }
 0x2e2   : > { %v2523_v16 = vmul.f32 %v7552_v63, %v6086_v34  ;;  %v2524_v29 = vmul.f32 %v7552_v63, %v6088_v27  ;;  %v2525_v1 = vmul.f32 %v7552_v63, %v6090_v37  ;;  %v2526_v33 = vmul.f32 %v7552_v63, %v6099_v43 }
 0x2e3   : > { %v2527_v35 = vmul.f32 %v7552_v63, %v6101_v39  ;;  %v2528_v49 = vmul.f32 %v7552_v63, %v7525_v26  ;;  %v2529_v3 = vmul.f32 %v7552_v63, %v7546_v48  ;;  %v2530_v42 = vmul.f32 %v7552_v63, %v7547_v13 }
 0x2e4   : > { %v2531_v6 = vmul.f32 %v7552_v63, %v7548_v17  ;;  %v6596_v38 = vmul.f32 %v7552_v63, %v7550_v23  ;;  %v6600_v28 = vmul.f32 %v7552_v63, %v7551_v4  ;;  %v6604_v46 = vmul.f32 %v7552_v63, %v6131_v59 }
 0x2e5   : > { %v2567_v45 = vrot.slane %v2503_v57, 4  ;;  %v2568_v41 = vrot.slane %v2504_v0, 3  ;;  %v2570_v32 = vrot.slane %v2505_v22, 2  ;;  %v2572_v40 = vrot.slane %v2506_v30, 1 }
 0x2e6   : > { %v2575_v18 = vrot.slane %v2508_v25, 7  ;;  %v2577_v55 = vrot.slane %v2509_v50, 6  ;;  %v2579_v15 = vrot.slane %v2510_v36, 5  ;;  %v2581_v8 = vrot.slane %v2511_v47, 4 }
 0x2e7   : > { %v2569_v62 = vsel %vm1001_vm12, %v2568_v41, %v2567_v45  ;;  %v2582_v21 = vrot.slane %v2512_v5, 3  ;;  %v2584_v60 = vrot.slane %v2513_v61, 2  ;;  %v2586_v23 = vrot.slane %v2514_v44, 1 }
 0x2e8   : > { %v2571_v4 = vsel %vm1004_vm13, %v2570_v32, %v2569_v62  ;;  %v2589_v17 = vrot.slane %v2516_v2, 7  ;;  %v2591_v13 = vrot.slane %v2517_v12, 6  ;;  %v2593_v48 = vrot.slane %v2518_v11, 5 }
 0x2e9   : > { %v2573_v63 = vsel %vm1007_vm14, %v2572_v40, %v2571_v4  ;;  %v2583_v57 = vsel %vm1001_vm12, %v2582_v21, %v2581_v8  ;;  %v2595_v0 = vrot.slane %v2519_v24, 4  ;;  %v2596_v22 = vrot.slane %v2520_v9, 3 }
 0x2ea   : > { %v2574_v30 = vsel %vm1010_vm15, %v2507_v19, %v2573_v63  ;;  %v2585_v25 = vsel %vm1004_vm13, %v2584_v60, %v2583_v57  ;;  %v2598_v50 = vrot.slane %v2521_v7, 2  ;;  %v2600_v36 = vrot.slane %v2522_v52, 1 }
 0x2eb   : > { %v2576_v47 = vsel %vm1013_vm0, %v2575_v18, %v2574_v30  ;;  %v2587_v5 = vsel %vm1007_vm14, %v2586_v23, %v2585_v25  ;;  %v2597_v61 = vsel %vm1001_vm12, %v2596_v22, %v2595_v0  ;;  %v2603_v44 = vrot.slane %v2524_v29, 7  ;;  %v7555_v30 = vld [vmem:[#allocation50_spill] sm:$0xff]  ;;  %v7556_v25 = vld [vmem:[#allocation51_spill] sm:$0xff] }
 0x2ec   : > { %v2578_v2 = vsel %vm1016_vm1, %v2577_v55, %v2576_v47  ;;  %v2588_v4 = vsel %vm1010_vm15, %v2515_v10, %v2587_v5  ;;  %v2599_v12 = vsel %vm1004_vm13, %v2598_v50, %v2597_v61  ;;  %v2605_v11 = vrot.slane %v2525_v1, 6  ;;  %v7557_v50 = vld [vmem:[#allocation52_spill] sm:$0xff]  ;;  %v7558_v47 = vld [vmem:[#allocation53_spill] sm:$0xff] }
 0x2ed   : > { %v2580_v19 = vsel %vm1019_vm2, %v2579_v15, %v2578_v2  ;;  %v2590_v24 = vsel %vm1013_vm0, %v2589_v17, %v2588_v4  ;;  %v2601_v9 = vsel %vm1007_vm14, %v2600_v36, %v2599_v12  ;;  %v2607_v7 = vrot.slane %v2526_v33, 5  ;;  %v6646_v15 = vld [vmem:[#allocation4 + $0x8] sm:$0xff]  ;;  %v6695_v2 = vld [vmem:[#allocation13 + $0x28] sm:$0xff] }
 0x2ee   : > { %v2592_v52 = vsel %vm1016_vm1, %v2591_v13, %v2590_v24  ;;  %v2602_v23 = vsel %vm1010_vm15, %v2523_v16, %v2601_v9  ;;  %v2609_v45 = vrot.slane %v2527_v35, 4  ;;  %v2610_v29 = vrot.slane %v2528_v49, 3  ;;  %7554 = vst [vmem:[#allocation46_spill] sm:$0xff] %v6646_v15  ;;  %v6698_v12 = vld [vmem:[#allocation13 + $0x38] sm:$0xff] }
 0x2ef   : > { %v2594_v41 = vsel %vm1019_vm2, %v2593_v48, %v2592_v52  ;;  %v2604_v10 = vsel %vm1013_vm0, %v2603_v44, %v2602_v23  ;;  %v2612_v32 = vrot.slane %v2529_v3, 2  ;;  %v2614_v40 = vrot.slane %v2530_v42, 1  ;;  %v6704_v9 = vld [vmem:[#allocation13 + $0x58] sm:$0xff]  ;;  %v6707_v52 = vld [vmem:[#allocation13 + $0x68] sm:$0xff] }
 0x2f0   : > { %v2606_v1 = vsel %vm1016_vm1, %v2605_v11, %v2604_v10  ;;  %v2611_v18 = vsel %vm1001_vm12, %v2610_v29, %v2609_v45  ;;  %v2617_v17 = vrot.slane %v6596_v38, 7  ;;  %v2619_v33 = vrot.slane %v6600_v28, 6  ;;  %v6642_v38 = vld [vmem:[#allocation4] sm:$0xff]  ;;  %v6710_v45 = vld [vmem:[#allocation13 + $0x78] sm:$0xff] }
 0x2f1   : > { %v2608_v13 = vsel %vm1019_vm2, %v2607_v7, %v2606_v1  ;;  %v2613_v16 = vsel %vm1004_vm13, %v2612_v32, %v2611_v18  ;;  %v2621_v35 = vrot.slane %v6604_v46, 5  ;;  %v6633_v48 = vadd.f32 %v2580_v19, %v6520_v58  ;;  %7553 = vst [vmem:[#allocation54_spill] sm:$0xff] %v6642_v38  ;;  %v6701_v19 = vld [vmem:[#allocation13 + $0x48] sm:$0xff]  ;;  %v6716_v32 = vld [vmem:[#allocation13 + $0x98] sm:$0xff] }
 0x2f2   : > { %v2615_v49 = vsel %vm1007_vm14, %v2614_v40, %v2613_v16  ;;  %v6637_v3 = vadd.f32 %v2594_v41, %v6524_v31  ;;  %v6640_v42 = vadd.f32 %v2608_v13, %v6527_v53  ;;  %v2631_v28 = vperm.slane %v6642_v38, 5  ;;  %v6713_v41 = vld [vmem:[#allocation13 + $0x88] sm:$0xff] }
 0x2f3   : > { %v2616_v55 = vsel %vm1010_vm15, %v2531_v6, %v2615_v49  ;;  %v2632_v46 = vperm.slane %v6646_v15, 5  ;;  %v6650_v58 = vperm.slane %v6642_v38, 6  ;;  %v6653_v8 = vperm.slane %v6646_v15, 6 }
 0x2f4   : > { %v2618_v31 = vsel %vm1013_vm0, %v2617_v17, %v2616_v55  ;;  %v2633_v53 = vmul.f32 %v2631_v28, %v6070_v20  ;;  %v2634_v62 = vmul.f32 %v2631_v28, %v6076_v56  ;;  %v2635_v21 = vmul.f32 %v2631_v28, %v6078_v54 }
 0x2f5   : > { %v2620_v6 = vsel %vm1016_vm1, %v2619_v33, %v2618_v31  ;;  %v2636_v60 = vmul.f32 %v2631_v28, %v6080_v14  ;;  %v2637_v63 = vmul.f32 %v2631_v28, %v6086_v34  ;;  %v6663_v57 = vmul.f32 %v2631_v28, %v6088_v27 }
 0x2f6   : > { %v2622_v0 = vsel %vm1019_vm2, %v2621_v35, %v2620_v6  ;;  %v6667_v22 = vmul.f32 %v2631_v28, %v6090_v37  ;;  %v6670_v20 = vmul.f32 %v2631_v28, %v6099_v43  ;;  %v2641_v56 = vmul.f32 %v2631_v28, %v6101_v39  ;;  %v7559_v37 = vld [vmem:[#allocation48_spill] sm:$0xff]  ;;  %v6689_v39 = vld [vmem:[#allocation13 + $0x8] sm:$0xff] }
 0x2f7   : > { %v6674_v54 = vadd.f32 %v2622_v0, %v6560_v51  ;;  %v2642_v14 = vmul.f32 %v2631_v28, %v7525_v26  ;;  %v2643_v34 = vmul.f32 %v2631_v28, %v7555_v30  ;;  %v2644_v27 = vmul.f32 %v2631_v28, %v7556_v25  ;;  %v6692_v26 = vld [vmem:[#allocation13 + $0x18] sm:$0xff] }
 0x2f8   : > { %v2645_v36 = vmul.f32 %v2631_v28, %v7557_v50  ;;  %v6681_v5 = vmul.f32 %v2631_v28, %v7558_v47  ;;  %v6684_v61 = vmul.f32 %v2631_v28, %v7559_v37  ;;  %v6687_v43 = vmul.f32 %v2631_v28, %v6131_v59 }
 0x2f9   : > { %v2649_v51 = vmul.f32 %v6689_v39, %v2632_v46  ;;  %v2650_v44 = vmul.f32 %v6692_v26, %v2632_v46  ;;  %v2651_v4 = vmul.f32 %v6695_v2, %v2632_v46  ;;  %v2652_v11 = vmul.f32 %v6698_v12, %v2632_v46 }
 0x2fa   : > { %v2653_v24 = vmul.f32 %v6701_v19, %v2632_v46  ;;  %v2654_v7 = vmul.f32 %v6704_v9, %v2632_v46  ;;  %v2655_v23 = vmul.f32 %v6707_v52, %v2632_v46  ;;  %v2656_v29 = vmul.f32 %v6710_v45, %v2632_v46 }
 0x2fb   : > { %v2657_v10 = vmul.f32 %v6713_v41, %v2632_v46  ;;  %v2658_v40 = vmul.f32 %v6716_v32, %v2632_v46  ;;  %v2659_v1 = vmul.f32 %v2632_v46, %v7555_v30  ;;  %v2660_v18 = vmul.f32 %v2632_v46, %v7556_v25 }
 0x2fc   : > { %v2661_v17 = vmul.f32 %v2632_v46, %v7557_v50  ;;  %v6723_v33 = vmul.f32 %v2632_v46, %v7558_v47  ;;  %v6726_v13 = vmul.f32 %v2632_v46, %v7559_v37  ;;  %v6729_v16 = vmul.f32 %v2632_v46, %v6131_v59 }
 0x2fd   : > { %v2697_v35 = vrot.slane %v2633_v53, 5  ;;  %v2698_v49 = vrot.slane %v2634_v62, 4  ;;  %v2700_v28 = vrot.slane %v2635_v21, 3  ;;  %v2702_v55 = vrot.slane %v2636_v60, 2 }
 0x2fe   : > { %v2704_v31 = vrot.slane %v2637_v63, 1  ;;  %v2707_v6 = vrot.slane %v6667_v22, 7  ;;  %v2709_v0 = vrot.slane %v6670_v20, 6  ;;  %v2711_v30 = vrot.slane %v2641_v56, 5 }
 0x2ff   : > { %v2699_v25 = vsel %vm1001_vm12, %v2698_v49, %v2697_v35  ;;  %v2712_v50 = vrot.slane %v2642_v14, 4  ;;  %v2714_v47 = vrot.slane %v2643_v34, 3  ;;  %v2716_v15 = vrot.slane %v2644_v27, 2 }
 0x300   : > { %v2701_v37 = vsel %vm1004_vm13, %v2700_v28, %v2699_v25  ;;  %v2718_v38 = vrot.slane %v2645_v36, 1  ;;  %v2721_v59 = vrot.slane %v6684_v61, 7  ;;  %v2723_v46 = vrot.slane %v6687_v43, 6 }
 0x301   : > { %v2703_v53 = vsel %vm1007_vm14, %v2702_v55, %v2701_v37  ;;  %v2713_v62 = vsel %vm1001_vm12, %v2712_v50, %v2711_v30  ;;  %v2725_v21 = vrot.slane %v2649_v51, 5  ;;  %v2726_v60 = vrot.slane %v2650_v44, 4 }
 0x302   : > { %v2705_v63 = vsel %vm1010_vm15, %v2704_v31, %v2703_v53  ;;  %v2715_v22 = vsel %vm1004_vm13, %v2714_v47, %v2713_v62  ;;  %v2728_v20 = vrot.slane %v2651_v4, 3  ;;  %v2730_v56 = vrot.slane %v2652_v11, 2 }
 0x303   : > { %v2706_v14 = vsel %vm1013_vm0, %v6663_v57, %v2705_v63  ;;  %v2717_v34 = vsel %vm1007_vm14, %v2716_v15, %v2715_v22  ;;  %v2727_v27 = vsel %vm1001_vm12, %v2726_v60, %v2725_v21  ;;  %v2732_v36 = vrot.slane %v2653_v24, 1  ;;  %v6801_v21 = vld [vmem:[#allocation13 + $0xa8] sm:$0xff]  ;;  %v6805_v63 = vld [vmem:[#allocation13 + $0xb8] sm:$0xff] }
 0x304   : > { %v2708_v61 = vsel %vm1016_vm1, %v2707_v6, %v2706_v14  ;;  %v2719_v43 = vsel %vm1010_vm15, %v2718_v38, %v2717_v34  ;;  %v2729_v51 = vsel %vm1004_vm13, %v2728_v20, %v2727_v27  ;;  %v2735_v44 = vrot.slane %v2655_v23, 7  ;;  %7560 = vst [vmem:[#allocation47_spill] sm:$0xff] %v6805_v63  ;;  %v6809_v20 = vld [vmem:[#allocation13 + $0xc8] sm:$0xff]  ;;  %v6816_v34 = vld [vmem:[#allocation13 + $0xd8] sm:$0xff] }
 0x305   : > { %v2710_v35 = vsel %vm1019_vm2, %v2709_v0, %v2708_v61  ;;  %v2720_v4 = vsel %vm1013_vm0, %v6681_v5, %v2719_v43  ;;  %v2731_v11 = vsel %vm1007_vm14, %v2730_v56, %v2729_v51  ;;  %v2737_v57 = vrot.slane %v2656_v29, 6  ;;  %7561 = vst [vmem:[#allocation55_spill] sm:$0xff] %v6809_v20  ;;  %v6824_v43 = vld [vmem:[#allocation13 + $0xf8] sm:$0xff] }
 0x306   : > { %v2722_v15 = vsel %vm1016_vm1, %v2721_v59, %v2720_v4  ;;  %v2733_v49 = vsel %vm1010_vm15, %v2732_v36, %v2731_v11  ;;  %v2739_v24 = vrot.slane %v2657_v10, 5  ;;  %v2740_v28 = vrot.slane %v2658_v40, 4  ;;  %7562 = vst [vmem:[#allocation49_spill] sm:$0xff] %v6816_v34  ;;  %v6820_v36 = vld [vmem:[#allocation13 + $0xe8] sm:$0xff] }
 0x307   : > { %v2724_v55 = vsel %vm1019_vm2, %v2723_v46, %v2722_v15  ;;  %v2734_v38 = vsel %vm1013_vm0, %v2654_v7, %v2733_v49  ;;  %v2742_v31 = vrot.slane %v2659_v1, 3  ;;  %v2744_v23 = vrot.slane %v2660_v18, 2  ;;  %7563 = vst [vmem:[#allocation50_spill] sm:$0xff] %v6820_v36 }
 0x308   : > { %v2736_v6 = vsel %vm1016_vm1, %v2735_v44, %v2734_v38  ;;  %v2741_v0 = vsel %vm1001_vm12, %v2740_v28, %v2739_v24  ;;  %v2746_v5 = vrot.slane %v2661_v17, 1  ;;  %v2749_v30 = vrot.slane %v6726_v13, 7 }
 0x309   : > { %v2738_v29 = vsel %vm1019_vm2, %v2737_v57, %v2736_v6  ;;  %v2743_v25 = vsel %vm1004_vm13, %v2742_v31, %v2741_v0  ;;  %v2751_v10 = vrot.slane %v6729_v16, 6  ;;  %v6763_v40 = vadd.f32 %v2710_v35, %v6633_v48 }
 0x30a   : > { %v2745_v7 = vsel %vm1007_vm14, %v2744_v23, %v2743_v25  ;;  %v6767_v1 = vadd.f32 %v2724_v55, %v6637_v3  ;;  %v6770_v18 = vadd.f32 %v2738_v29, %v6640_v42  ;;  %v2763_v17 = vmul.f32 %v6689_v39, %v6650_v58 }
 0x30b   : > { %v2747_v13 = vsel %vm1010_vm15, %v2746_v5, %v2745_v7  ;;  %v2764_v50 = vmul.f32 %v6692_v26, %v6650_v58  ;;  %v2765_v48 = vmul.f32 %v6695_v2, %v6650_v58  ;;  %v2766_v16 = vmul.f32 %v6698_v12, %v6650_v58 }
 0x30c   : > { %v2748_v3 = vsel %vm1013_vm0, %v6723_v33, %v2747_v13  ;;  %v2767_v42 = vmul.f32 %v6701_v19, %v6650_v58  ;;  %v2768_v47 = vmul.f32 %v6704_v9, %v6650_v58  ;;  %v6789_v37 = vmul.f32 %v6707_v52, %v6650_v58 }
 0x30d   : > { %v2750_v59 = vsel %vm1016_vm1, %v2749_v30, %v2748_v3  ;;  %v6794_v46 = vmul.f32 %v6710_v45, %v6650_v58  ;;  %v2771_v53 = vmul.f32 %v6713_v41, %v6650_v58  ;;  %v2772_v33 = vmul.f32 %v6716_v32, %v6650_v58 }
 0x30e   : > { %v2752_v62 = vsel %vm1019_vm2, %v2751_v10, %v2750_v59  ;;  %v2773_v60 = vmul.f32 %v6801_v21, %v6650_v58  ;;  %v2774_v22 = vmul.f32 %v6805_v63, %v6650_v58  ;;  %v2775_v56 = vmul.f32 %v6809_v20, %v6650_v58 }
 0x30f   : > { %v6814_v14 = vadd.f32 %v2752_v62, %v6674_v54  ;;  %v2776_v27 = vmul.f32 %v6816_v34, %v6650_v58  ;;  %v2777_v61 = vmul.f32 %v6820_v36, %v6650_v58  ;;  %v2778_v51 = vmul.f32 %v6824_v43, %v6650_v58 }
 0x310   : > { %v2779_v44 = vmul.f32 %v6689_v39, %v6653_v8  ;;  %v2780_v54 = vmul.f32 %v6692_v26, %v6653_v8  ;;  %v2781_v35 = vmul.f32 %v6695_v2, %v6653_v8  ;;  %v2782_v4 = vmul.f32 %v6698_v12, %v6653_v8 }
 0x311   : > { %v2783_v11 = vmul.f32 %v6701_v19, %v6653_v8  ;;  %v2784_v57 = vmul.f32 %v6704_v9, %v6653_v8  ;;  %v2785_v58 = vmul.f32 %v6707_v52, %v6653_v8  ;;  %v2786_v15 = vmul.f32 %v6710_v45, %v6653_v8 }
 0x312   : > { %v2787_v49 = vmul.f32 %v6713_v41, %v6653_v8  ;;  %v2788_v24 = vmul.f32 %v6716_v32, %v6653_v8  ;;  %v2789_v28 = vmul.f32 %v6801_v21, %v6653_v8  ;;  %v2790_v55 = vmul.f32 %v6805_v63, %v6653_v8 }
 0x313   : > { %v2791_v38 = vmul.f32 %v6809_v20, %v6653_v8  ;;  %v6856_v31 = vmul.f32 %v6816_v34, %v6653_v8  ;;  %v6860_v23 = vmul.f32 %v6820_v36, %v6653_v8  ;;  %v6864_v6 = vmul.f32 %v6824_v43, %v6653_v8 }
 0x314   : > { %v2827_v0 = vrot.slane %v2763_v17, 6  ;;  %v2828_v5 = vrot.slane %v2764_v50, 5  ;;  %v2830_v30 = vrot.slane %v2765_v48, 4  ;;  %v2832_v29 = vrot.slane %v2766_v16, 3 }
 0x315   : > { %v2834_v25 = vrot.slane %v2767_v42, 2  ;;  %v2836_v10 = vrot.slane %v2768_v47, 1  ;;  %v2839_v7 = vrot.slane %v6794_v46, 7  ;;  %v2841_v13 = vrot.slane %v2771_v53, 6 }
 0x316   : > { %v2829_v3 = vsel %vm1001_vm12, %v2828_v5, %v2827_v0  ;;  %v2842_v59 = vrot.slane %v2772_v33, 5  ;;  %v2844_v62 = vrot.slane %v2773_v60, 4  ;;  %v2846_v34 = vrot.slane %v2774_v22, 3 }
 0x317   : > { %v2831_v36 = vsel %vm1004_vm13, %v2830_v30, %v2829_v3  ;;  %v2848_v20 = vrot.slane %v2775_v56, 2  ;;  %v2850_v63 = vrot.slane %v2776_v27, 1  ;;  %v2853_v8 = vrot.slane %v2778_v51, 7  ;;  %v7565_v3 = vld [vmem:[#allocation46_spill] sm:$0xff] }
 0x318   : > { %v2833_v17 = vsel %vm1007_vm14, %v2832_v29, %v2831_v36  ;;  %v2843_v50 = vsel %vm1001_vm12, %v2842_v59, %v2841_v13  ;;  %v2855_v48 = vrot.slane %v2779_v44, 6  ;;  %v2856_v16 = vrot.slane %v2780_v54, 5 }
 0x319   : > { %v2835_v42 = vsel %vm1010_vm15, %v2834_v25, %v2833_v17  ;;  %v2845_v47 = vsel %vm1004_vm13, %v2844_v62, %v2843_v50  ;;  %v2858_v46 = vrot.slane %v2781_v35, 4  ;;  %v2860_v53 = vrot.slane %v2782_v4, 3  ;;  %v6906_v62 = vld [vmem:[#allocation11] sm:$0xff] }
 0x31a   : > { %v2837_v33 = vsel %vm1013_vm0, %v2836_v10, %v2835_v42  ;;  %v2847_v60 = vsel %vm1007_vm14, %v2846_v34, %v2845_v47  ;;  %v2857_v22 = vsel %vm1001_vm12, %v2856_v16, %v2855_v48  ;;  %v2862_v56 = vrot.slane %v2783_v11, 2 }
 0x31b   : > { %v2838_v27 = vsel %vm1016_vm1, %v6789_v37, %v2837_v33  ;;  %v2849_v36 = vsel %vm1010_vm15, %v2848_v20, %v2847_v60  ;;  %v2859_v51 = vsel %vm1004_vm13, %v2858_v46, %v2857_v22  ;;  %v2864_v44 = vrot.slane %v2784_v57, 1 }
 0x31c   : > { %v2840_v54 = vsel %vm1019_vm2, %v2839_v7, %v2838_v27  ;;  %v2851_v35 = vsel %vm1013_vm0, %v2850_v63, %v2849_v36  ;;  %v2861_v4 = vsel %vm1007_vm14, %v2860_v53, %v2859_v51  ;;  %v2867_v0 = vrot.slane %v2786_v15, 7  ;;  %v7567_v36 = vld [vmem:[#allocation55_spill] sm:$0xff] }
 0x31d   : > { %v2852_v34 = vsel %vm1016_vm1, %v2777_v61, %v2851_v35  ;;  %v2863_v5 = vsel %vm1010_vm15, %v2862_v56, %v2861_v4  ;;  %v2869_v11 = vrot.slane %v2787_v49, 6  ;;  %v2870_v30 = vrot.slane %v2788_v24, 5  ;;  %v7566_v56 = vld [vmem:[#allocation47_spill] sm:$0xff]  ;;  %v7569_v35 = vld [vmem:[#allocation50_spill] sm:$0xff] }
 0x31e   : > { %v2854_v37 = vsel %vm1019_vm2, %v2853_v8, %v2852_v34  ;;  %v2865_v20 = vsel %vm1013_vm0, %v2864_v44, %v2863_v5  ;;  %v2872_v29 = vrot.slane %v2789_v28, 4  ;;  %v2874_v25 = vrot.slane %v2790_v55, 3  ;;  %v7564_v55 = vld [vmem:[#allocation54_spill] sm:$0xff]  ;;  %v7568_v44 = vld [vmem:[#allocation49_spill] sm:$0xff] }
 0x31f   : > { %v2866_v57 = vsel %vm1016_vm1, %v2785_v58, %v2865_v20  ;;  %v2871_v10 = vsel %vm1001_vm12, %v2870_v30, %v2869_v11  ;;  %v2876_v63 = vrot.slane %v2791_v38, 2  ;;  %v2878_v7 = vrot.slane %v6856_v31, 1 }
 0x320   : > { %v2868_v15 = vsel %vm1019_vm2, %v2867_v0, %v2866_v57  ;;  %v2873_v61 = vsel %vm1004_vm13, %v2872_v29, %v2871_v10  ;;  %v2881_v49 = vrot.slane %v6864_v6, 7  ;;  %v6894_v24 = vadd.f32 %v2840_v54, %v6763_v40 }
 0x321   : > { %v2875_v13 = vsel %vm1007_vm14, %v2874_v25, %v2873_v61  ;;  %v6898_v28 = vadd.f32 %v2854_v37, %v6767_v1  ;;  %v6901_v58 = vadd.f32 %v2868_v15, %v6770_v18  ;;  %v2891_v38 = vperm.slane %v7564_v55, 7 }
 0x322   : > { %v2877_v31 = vsel %vm1010_vm15, %v2876_v63, %v2875_v13  ;;  %v2892_v59 = vperm.slane %v7565_v3, 7  ;;  %v6909_v6 = vperm.slane %v6906_v62, 1  ;;  %v6912_v40 = vperm.slane %v6906_v62, 2 }
 0x323   : > { %v2879_v1 = vsel %vm1013_vm0, %v2878_v7, %v2877_v31  ;;  %v2893_v8 = vmul.f32 %v6689_v39, %v2891_v38  ;;  %v2894_v18 = vmul.f32 %v6692_v26, %v2891_v38  ;;  %v2895_v17 = vmul.f32 %v6695_v2, %v2891_v38 }
 0x324   : > { %v2880_v50 = vsel %vm1016_vm1, %v6860_v23, %v2879_v1  ;;  %v2896_v48 = vmul.f32 %v6698_v12, %v2891_v38  ;;  %v2897_v16 = vmul.f32 %v6701_v19, %v2891_v38  ;;  %v2898_v42 = vmul.f32 %v6704_v9, %v2891_v38 }
 0x325   : > { %v2882_v47 = vsel %vm1019_vm2, %v2881_v49, %v2880_v50  ;;  %v2899_v46 = vmul.f32 %v6707_v52, %v2891_v38  ;;  %v2900_v53 = vmul.f32 %v6710_v45, %v2891_v38  ;;  %v2901_v33 = vmul.f32 %v6713_v41, %v2891_v38 }
 0x326   : > { %v6928_v60 = vadd.f32 %v2882_v47, %v6814_v14  ;;  %v2902_v22 = vmul.f32 %v6716_v32, %v2891_v38  ;;  %v2903_v23 = vmul.f32 %v6801_v21, %v2891_v38  ;;  %v2904_v27 = vmul.f32 %v7566_v56, %v2891_v38 }
 0x327   : > { %v2905_v51 = vmul.f32 %v7567_v36, %v2891_v38  ;;  %v2906_v54 = vmul.f32 %v7568_v44, %v2891_v38  ;;  %v2907_v4 = vmul.f32 %v7569_v35, %v2891_v38  ;;  %v2908_v0 = vmul.f32 %v6824_v43, %v2891_v38 }
 0x328   : > { %v2909_v34 = vmul.f32 %v6689_v39, %v2892_v59  ;;  %v2910_v5 = vmul.f32 %v6692_v26, %v2892_v59  ;;  %v2911_v14 = vmul.f32 %v6695_v2, %v2892_v59  ;;  %v2912_v11 = vmul.f32 %v6698_v12, %v2892_v59 }
 0x329   : > { %v2913_v30 = vmul.f32 %v6701_v19, %v2892_v59  ;;  %v2914_v37 = vmul.f32 %v6704_v9, %v2892_v59  ;;  %v2915_v20 = vmul.f32 %v6707_v52, %v2892_v59  ;;  %v2916_v29 = vmul.f32 %v6710_v45, %v2892_v59 }
 0x32a   : > { %v2917_v25 = vmul.f32 %v6713_v41, %v2892_v59  ;;  %v2918_v57 = vmul.f32 %v6716_v32, %v2892_v59  ;;  %v2919_v39 = vmul.f32 %v6801_v21, %v2892_v59  ;;  %v6949_v26 = vmul.f32 %v7566_v56, %v2892_v59 }
 0x32b   : > { %v6952_v2 = vmul.f32 %v7567_v36, %v2892_v59  ;;  %v6955_v12 = vmul.f32 %v7568_v44, %v2892_v59  ;;  %v6958_v19 = vmul.f32 %v7569_v35, %v2892_v59  ;;  %v6961_v9 = vmul.f32 %v6824_v43, %v2892_v59 }
 0x32c   : > { %v2957_v52 = vrot.slane %v2893_v8, 7  ;;  %v2958_v45 = vrot.slane %v2894_v18, 6  ;;  %v2960_v41 = vrot.slane %v2895_v17, 5  ;;  %v2962_v32 = vrot.slane %v2896_v48, 4 }
 0x32d   : > { %v2964_v21 = vrot.slane %v2897_v16, 3  ;;  %v2966_v10 = vrot.slane %v2898_v42, 2  ;;  %v2968_v63 = vrot.slane %v2899_v46, 1  ;;  %v2971_v7 = vrot.slane %v2901_v33, 7 }
 0x32e   : > { %v2959_v15 = vsel %vm1001_vm12, %v2958_v45, %v2957_v52  ;;  %v2972_v61 = vrot.slane %v2902_v22, 6  ;;  %v2974_v49 = vrot.slane %v2903_v23, 5  ;;  %v2976_v13 = vrot.slane %v2904_v27, 4  ;;  %v6983_v45 = vld [vmem:[#allocation2 + $0x7] sm:$0xff] }
 0x32f   : > { %v2961_v38 = vsel %vm1004_vm13, %v2960_v41, %v2959_v15  ;;  %v2978_v31 = vrot.slane %v2905_v51, 3  ;;  %v2980_v1 = vrot.slane %v2906_v54, 2  ;;  %v2982_v50 = vrot.slane %v2907_v4, 1 }
 0x330   : > { %v2963_v43 = vsel %vm1007_vm14, %v2962_v32, %v2961_v38  ;;  %v2973_v59 = vsel %vm1001_vm12, %v2972_v61, %v2971_v7  ;;  %v2985_v8 = vrot.slane %v2909_v34, 7  ;;  %v2986_v18 = vrot.slane %v2910_v5, 6  ;;  %v3035_v7 = vld [vmem:[#allocation2 + $0xe] sm:$0xff]  ;;  %v3037_v38 = vld [vmem:[#allocation2 + $0x26] sm:$0xff] }
 0x331   : > { %v2965_v17 = vsel %vm1010_vm15, %v2964_v21, %v2963_v43  ;;  %v2975_v48 = vsel %vm1004_vm13, %v2974_v49, %v2973_v59  ;;  %v2988_v16 = vrot.slane %v2911_v14, 5  ;;  %v2990_v42 = vrot.slane %v2912_v11, 4  ;;  %v3022_v21 = vld [vmem:[#allocation2 + $0xf] sm:$0xff]  ;;  %v7002_v49 = vld [vmem:[#allocation2 + $0x1e] sm:$0xff] }
 0x332   : > { %v2967_v47 = vsel %vm1013_vm0, %v2966_v10, %v2965_v17  ;;  %v2977_v46 = vsel %vm1007_vm14, %v2976_v13, %v2975_v48  ;;  %v2987_v33 = vsel %vm1001_vm12, %v2986_v18, %v2985_v8  ;;  %v2992_v22 = vrot.slane %v2913_v30, 3  ;;  %v3048_v17 = vld [vmem:[#allocation2 + $0xd] sm:$0xff]  ;;  %v3050_v48 = vld [vmem:[#allocation2 + $0x25] sm:$0xff] }
 0x333   : > { %v2969_v23 = vsel %vm1016_vm1, %v2968_v63, %v2967_v47  ;;  %v2979_v56 = vsel %vm1010_vm15, %v2978_v31, %v2977_v46  ;;  %v2989_v27 = vsel %vm1004_vm13, %v2988_v16, %v2987_v33  ;;  %v2994_v36 = vrot.slane %v2914_v37, 2  ;;  %v6995_v63 = vld [vmem:[#allocation2 + $0x6] sm:$0xff] }
 0x334   : > { %v2970_v51 = vsel %vm1019_vm2, %v2900_v53, %v2969_v23  ;;  %v2981_v44 = vsel %vm1013_vm0, %v2980_v1, %v2979_v56  ;;  %v2991_v54 = vsel %vm1007_vm14, %v2990_v42, %v2989_v27  ;;  %v2996_v35 = vrot.slane %v2915_v20, 1  ;;  %v7024_v33 = vld [vmem:[#allocation2 + $0x4] sm:$0xff]  ;;  %v7026_v23 = vld [vmem:[#allocation2 + $0x1c] sm:$0xff] }
 0x335   : > { %v2983_v4 = vsel %vm1016_vm1, %v2982_v50, %v2981_v44  ;;  %v2993_v34 = vsel %vm1010_vm15, %v2992_v22, %v2991_v54  ;;  %v2999_v5 = vrot.slane %v2917_v25, 7  ;;  %v3000_v14 = vrot.slane %v2918_v57, 6  ;;  %v6989_v25 = vld [vmem:[#allocation2 + $0x1f] sm:$0xff]  ;;  %v3024_v57 = vld [vmem:[#allocation2 + $0x27] sm:$0xff] }
 0x336   : > { %v2984_v11 = vsel %vm1019_vm2, %v2908_v0, %v2983_v4  ;;  %v2995_v30 = vsel %vm1013_vm0, %v2994_v36, %v2993_v34  ;;  %v3002_v52 = vrot.slane %v2919_v39, 5  ;;  %v3004_v37 = vrot.slane %v6949_v26, 4  ;;  %v7013_v50 = vld [vmem:[#allocation2 + $0x5] sm:$0xff] }
 0x337   : > { %v2997_v53 = vsel %vm1016_vm1, %v2996_v35, %v2995_v30  ;;  %v3001_v41 = vsel %vm1001_vm12, %v3000_v14, %v2999_v5  ;;  %v3006_v20 = vrot.slane %v6952_v2, 3  ;;  %v3008_v32 = vrot.slane %v6955_v12, 2  ;;  %v3061_v22 = vld [vmem:[#allocation2 + $0xc] sm:$0xff] }
 0x338   : > { %v2998_v0 = vsel %vm1019_vm2, %v2916_v29, %v2997_v53  ;;  %v3003_v39 = vsel %vm1004_vm13, %v3002_v52, %v3001_v41  ;;  %v3010_v26 = vrot.slane %v6958_v19, 1  ;;  %v3017_v10 = vadd.f32 %v2970_v51, %v6894_v24  ;;  %v3063_v51 = vld [vmem:[#allocation2 + $0x24] sm:$0xff] }
 0x339   : > { %v3005_v15 = vsel %vm1007_vm14, %v3004_v37, %v3003_v39  ;;  %v3018_v2 = vadd.f32 %v2984_v11, %v6898_v28  ;;  %v3019_v12 = vadd.f32 %v2998_v0, %v6901_v58  ;;  %v3026_v61 = vmul.f32 %v6909_v6, %v6983_v45  ;;  %v7032_v4 = vld [vmem:[#allocation11 + $0x8] sm:$0xff]  ;;  %v7041_v0 = vld [vmem:[#allocation2 + $0x2] sm:$0xff] }
 0x33a   : > { %v3007_v29 = vsel %vm1010_vm15, %v3006_v20, %v3005_v15  ;;  %v3027_v19 = vmul.f32 %v6909_v6, %v3022_v21  ;;  %v3028_v24 = vmul.f32 %v6909_v6, %v6989_v25  ;;  %v3029_v13 = vmul.f32 %v6909_v6, %v3024_v57  ;;  %v7018_v6 = vld [vmem:[#allocation2 + $0x1d] sm:$0xff]  ;;  %v3074_v41 = vld [vmem:[#allocation2 + $0xb] sm:$0xff] }
 0x33b   : > { %v3009_v31 = vsel %vm1013_vm0, %v3008_v32, %v3007_v29  ;;  %v3030_v28 = vadd.f32 %v3026_v61, %v3017_v10  ;;  %v3039_v58 = vmul.f32 %v6912_v40, %v6995_v63  ;;  %v3040_v1 = vmul.f32 %v6912_v40, %v3035_v7  ;;  %v7038_v20 = vld [vmem:[#allocation2 + $0x1b] sm:$0xff]  ;;  %v3076_v32 = vld [vmem:[#allocation2 + $0x23] sm:$0xff] }
 0x33c   : > { %v3011_v43 = vsel %vm1016_vm1, %v3010_v26, %v3009_v31  ;;  %v3031_v59 = vadd.f32 %v3027_v19, %v3018_v2  ;;  %v3032_v8 = vadd.f32 %v3028_v24, %v3019_v12  ;;  %v3041_v18 = vmul.f32 %v6912_v40, %v7002_v49  ;;  %v3087_v39 = vld [vmem:[#allocation2 + $0xa] sm:$0xff]  ;;  %v7043_v26 = vld [vmem:[#allocation2 + $0x1a] sm:$0xff]  ;;  %v3089_v61 = vld [vmem:[#allocation2 + $0x22] sm:$0xff] }
 0x33d   : > { %v3012_v16 = vsel %vm1019_vm2, %v6961_v9, %v3011_v43  ;;  %v3042_v42 = vmul.f32 %v6912_v40, %v3037_v38  ;;  %v3043_v47 = vadd.f32 %v3039_v58, %v3030_v28  ;;  %v3051_v46 = vperm.slane %v6906_v62, 3  ;;  %v3099_v31 = vld [vmem:[#allocation2 + $0x1] sm:$0xff]  ;;  %v3100_v28 = vld [vmem:[#allocation2 + $0x9] sm:$0xff]  ;;  %v3101_v58 = vld [vmem:[#allocation2 + $0x19] sm:$0xff] }
 0x33e   : > { %v3020_v56 = vadd.f32 %v3012_v16, %v6928_v60  ;;  %v3044_v27 = vadd.f32 %v3040_v1, %v3031_v59  ;;  %v3045_v36 = vadd.f32 %v3041_v18, %v3032_v8  ;;  %v3064_v44 = vperm.slane %v6906_v62, 4  ;;  %v7036_v60 = vld [vmem:[#allocation2 + $0x3] sm:$0xff] }
 0x33f   : > { %v3052_v54 = vmul.f32 %v3051_v46, %v7013_v50  ;;  %v3053_v9 = vmul.f32 %v3051_v46, %v3048_v17  ;;  %v3054_v40 = vmul.f32 %v3051_v46, %v7018_v6  ;;  %v3055_v35 = vmul.f32 %v3051_v46, %v3050_v48  ;;  %v3102_v16 = vld [vmem:[#allocation2 + $0x21] sm:$0xff] }
 0x340   : > { %v3033_v34 = vadd.f32 %v3029_v13, %v3020_v56  ;;  %v3065_v5 = vmul.f32 %v3064_v44, %v7024_v33  ;;  %v3066_v14 = vmul.f32 %v3064_v44, %v3061_v22  ;;  %v3067_v11 = vmul.f32 %v3064_v44, %v7026_v23 }
 0x341   : > { %v3056_v30 = vadd.f32 %v3052_v54, %v3043_v47  ;;  %v3057_v52 = vadd.f32 %v3053_v9, %v3044_v27  ;;  %v3058_v37 = vadd.f32 %v3054_v40, %v3045_v36  ;;  %v3068_v53 = vmul.f32 %v3064_v44, %v3063_v51  ;;  %v3113_v47 = vld [vmem:[#allocation2 + $0x20] sm:$0xff] }
 0x342   : > { %v3046_v21 = vadd.f32 %v3042_v42, %v3033_v34  ;;  %v3077_v57 = vperm.slane %v6906_v62, 5  ;;  %v3090_v10 = vperm.slane %v6906_v62, 6  ;;  %v3103_v7 = vperm.slane %v6906_v62, 7  ;;  %v3112_v42 = vld [vmem:[#allocation2 + $0x8] sm:$0xff] }
 0x343   : > { %v3069_v15 = vadd.f32 %v3065_v5, %v3056_v30  ;;  %v3070_v2 = vadd.f32 %v3066_v14, %v3057_v52  ;;  %v3071_v12 = vadd.f32 %v3067_v11, %v3058_v37  ;;  %v3114_v29 = vperm.slane %v7032_v4, 0 }
 0x344   : > { %v3059_v19 = vadd.f32 %v3055_v35, %v3046_v21  ;;  %v3078_v24 = vmul.f32 %v3077_v57, %v7036_v60  ;;  %v3079_v13 = vmul.f32 %v3077_v57, %v3074_v41  ;;  %v3080_v38 = vmul.f32 %v3077_v57, %v7038_v20 }
 0x345   : > { %v3081_v1 = vmul.f32 %v3077_v57, %v3076_v32  ;;  %v3091_v43 = vmul.f32 %v3090_v10, %v7041_v0  ;;  %v3092_v59 = vmul.f32 %v3090_v10, %v3087_v39  ;;  %v3093_v62 = vmul.f32 %v3090_v10, %v7043_v26 }
 0x346   : > { %v3072_v8 = vadd.f32 %v3068_v53, %v3059_v19  ;;  %v3082_v18 = vadd.f32 %v3078_v24, %v3069_v15  ;;  %v3083_v17 = vadd.f32 %v3079_v13, %v3070_v2  ;;  %v3084_v48 = vadd.f32 %v3080_v38, %v3071_v12  ;;  %v3186_v2 = vld [vmem:[#allocation16] sm:$0xff] }
 0x347   : > { %v3094_v46 = vmul.f32 %v3090_v10, %v3089_v61  ;;  %v3104_v22 = vmul.f32 %v3103_v7, %v3099_v31  ;;  %v3105_v56 = vmul.f32 %v3103_v7, %v3100_v28  ;;  %v3106_v27 = vmul.f32 %v3103_v7, %v3101_v58  ;;  %v4342_v28 = vld [vmem:[#allocation4 + $0x10] sm:$0xff] }
 0x348   : > { %v3085_v36 = vadd.f32 %v3081_v1, %v3072_v8  ;;  %v3095_v51 = vadd.f32 %v3091_v43, %v3082_v18  ;;  %v3096_v44 = vadd.f32 %v3092_v59, %v3083_v17  ;;  %v3097_v54 = vadd.f32 %v3093_v62, %v3084_v48  ;;  %v3154_v8 = vld [vmem:[#allocation14] sm:$0xff]  ;;  %v3156_v48 = vld [vmem:[#allocation14 + $0x10] sm:$0xff] }
 0x349   : > { %v3107_v9 = vmul.f32 %v3103_v7, %v3102_v16  ;;  %v3115_v40 = vmul.f32 %v3114_v29, %v3112_v42  ;;  %v3116_v35 = vmul.f32 %v3114_v29, %v3113_v47  ;;  %v3119_v34 = vperm.slane %v7032_v4, 1  ;;  %v4343_v18 = vld [vmem:[#allocation4 + $0x18] sm:$0xff]  ;;  %v3157_v16 = vld [vmem:[#allocation14 + $0x18] sm:$0xff] }
 0x34a   : > { %v3098_v5 = vadd.f32 %v3094_v46, %v3085_v36  ;;  %v7053_v14 = vadd.f32 %v3104_v22, %v3095_v51  ;;  %v3109_v11 = vadd.f32 %v3105_v56, %v3096_v44  ;;  %v7055_v30 = vadd.f32 %v3106_v27, %v3097_v54  ;;  %v7077_v42 = vld [vmem:[#allocation2 + $0x10] sm:$0xff]  ;;  %v7080_v47 = vld [vmem:[#allocation2 + $0x28] sm:$0xff] }
 0x34b   : > { %v3120_v52 = vmul.f32 %v3119_v34, %v6983_v45  ;;  %v3121_v37 = vmul.f32 %v3119_v34, %v6989_v25  ;;  %v3124_v53 = vperm.slane %v7032_v4, 2  ;;  %v3129_v41 = vperm.slane %v7032_v4, 3  ;;  %v3187_v25 = vld [vmem:[#allocation16 + $0x8] sm:$0xff] }
 0x34c   : > { %v3111_v32 = vadd.f32 %v3107_v9, %v3098_v5  ;;  %v3117_v21 = vadd.f32 %v3115_v40, %v3109_v11  ;;  %v3134_v57 = vperm.slane %v7032_v4, 4  ;;  %v3139_v39 = vperm.slane %v7032_v4, 5  ;;  %v3158_v9 = vld [vmem:[#allocation14 + $0x20] sm:$0xff]  ;;  %v3159_v40 = vld [vmem:[#allocation14 + $0x28] sm:$0xff] }
 0x34d   : > { %v3125_v10 = vmul.f32 %v3124_v53, %v6995_v63  ;;  %v3126_v7 = vmul.f32 %v3124_v53, %v7002_v49  ;;  %v3130_v15 = vmul.f32 %v3129_v41, %v7013_v50  ;;  %v3131_v45 = vmul.f32 %v3129_v41, %v7018_v6 }
 0x34e   : > { %v3118_v12 = vadd.f32 %v3116_v35, %v3111_v32  ;;  %v3122_v61 = vadd.f32 %v3120_v52, %v3117_v21  ;;  %v3135_v29 = vmul.f32 %v3134_v57, %v7024_v33  ;;  %v3136_v19 = vmul.f32 %v3134_v57, %v7026_v23 }
 0x34f   : > { %v3140_v24 = vmul.f32 %v3139_v39, %v7036_v60  ;;  %v3141_v13 = vmul.f32 %v3139_v39, %v7038_v20  ;;  %v3144_v63 = vperm.slane %v7032_v4, 6  ;;  %v3149_v49 = vperm.slane %v7032_v4, 7  ;;  %v3155_v20 = vld [vmem:[#allocation14 + $0x8] sm:$0xff] }
 0x350   : > { %v3123_v38 = vadd.f32 %v3121_v37, %v3118_v12  ;;  %v3127_v50 = vadd.f32 %v3125_v10, %v3122_v61  ;;  %v3188_v6 = vmul.f32 %v4342_v28, %v3186_v2  ;;  %v3189_v1 = vmul.f32 %v7564_v55, %v3187_v25  ;;  %v3160_v12 = vld [vmem:[#allocation14 + $0x30] sm:$0xff]  ;;  %v3161_v61 = vld [vmem:[#allocation14 + $0x38] sm:$0xff] }
 0x351   : > { %v3145_v43 = vmul.f32 %v3144_v63, %v7041_v0  ;;  %v3146_v33 = vmul.f32 %v3144_v63, %v7043_v26  ;;  %v3150_v59 = vmul.f32 %v3149_v49, %v3099_v31  ;;  %v3151_v23 = vmul.f32 %v3149_v49, %v3101_v58 }
 0x352   : > { %v3128_v62 = vadd.f32 %v3126_v7, %v3123_v38  ;;  %v3132_v60 = vadd.f32 %v3130_v15, %v3127_v50  ;;  %v3190_v17 = vmul.f32 %v4343_v18, %v3186_v2  ;;  %v3191_v4 = vmul.f32 %v7565_v3, %v3187_v25  ;;  %v3163_v38 = vld [vmem:[#allocation14 + $0x48] sm:$0xff] }
 0x353   : > { %v3192_v55 = vperm.slane %v7077_v42, 7  ;;  %v3193_v0 = vperm.slane %v7080_v47, 7  ;;  %v3202_v26 = vperm.slane %v7077_v42, 6  ;;  %v3203_v31 = vperm.slane %v7080_v47, 6 }
 0x354   : > { %v3133_v58 = vadd.f32 %v3131_v45, %v3128_v62  ;;  %v3137_v46 = vadd.f32 %v3135_v29, %v3132_v60  ;;  %v3212_v22 = vperm.slane %v7077_v42, 5  ;;  %v3213_v3 = vperm.slane %v7080_v47, 5  ;;  %v3164_v62 = vld [vmem:[#allocation14 + $0x50] sm:$0xff]  ;;  %v3165_v60 = vld [vmem:[#allocation14 + $0x58] sm:$0xff] }
 0x355   : > { %v3194_v56 = vmul.f32 %v3192_v55, %v3154_v8  ;;  %v3195_v27 = vmul.f32 %v3192_v55, %v3155_v20  ;;  %v3196_v36 = vmul.f32 %v3193_v0, %v3154_v8  ;;  %v3197_v51 = vmul.f32 %v3193_v0, %v3155_v20  ;;  %v3166_v55 = vld [vmem:[#allocation14 + $0x60] sm:$0xff] }
 0x356   : > { %v3138_v44 = vadd.f32 %v3136_v19, %v3133_v58  ;;  %v3142_v54 = vadd.f32 %v3140_v24, %v3137_v46  ;;  %v3204_v35 = vmul.f32 %v3202_v26, %v3156_v48  ;;  %v3205_v34 = vmul.f32 %v3202_v26, %v3157_v16  ;;  %v3167_v46 = vld [vmem:[#allocation14 + $0x68] sm:$0xff] }
 0x357   : > { %v3198_v5 = vadd.f32 %v3194_v56, %v3188_v6  ;;  %v3199_v11 = vadd.f32 %v3195_v27, %v3189_v1  ;;  %v3200_v52 = vadd.f32 %v3196_v36, %v3190_v17  ;;  %v3201_v37 = vadd.f32 %v3197_v51, %v3191_v4 }
 0x358   : > { %v3143_v53 = vadd.f32 %v3141_v13, %v3138_v44  ;;  %v3147_v41 = vadd.f32 %v3145_v43, %v3142_v54  ;;  %v3206_v32 = vmul.f32 %v3203_v31, %v3156_v48  ;;  %v3207_v21 = vmul.f32 %v3203_v31, %v3157_v16  ;;  %v3162_v13 = vld [vmem:[#allocation14 + $0x40] sm:$0xff] }
 0x359   : > { %v3208_v57 = vadd.f32 %v3204_v35, %v3198_v5  ;;  %v3209_v39 = vadd.f32 %v3205_v34, %v3199_v11  ;;  %v3214_v10 = vmul.f32 %v3212_v22, %v3158_v9  ;;  %v3215_v7 = vmul.f32 %v3212_v22, %v3159_v40  ;;  %v3169_v11 = vld [vmem:[#allocation14 + $0x78] sm:$0xff] }
 0x35a   : > { %v3148_v15 = vadd.f32 %v3146_v33, %v3143_v53  ;;  %v7087_v45 = vadd.f32 %v3150_v59, %v3147_v41  ;;  %v3210_v2 = vadd.f32 %v3206_v32, %v3200_v52  ;;  %v3211_v25 = vadd.f32 %v3207_v21, %v3201_v37 }
 0x35b   : > { %v3216_v29 = vmul.f32 %v3213_v3, %v3158_v9  ;;  %v3217_v19 = vmul.f32 %v3213_v3, %v3159_v40  ;;  %v3218_v24 = vadd.f32 %v3214_v10, %v3208_v57  ;;  %v3219_v63 = vadd.f32 %v3215_v7, %v3209_v39  ;;  %v3168_v9 = vld [vmem:[#allocation14 + $0x70] sm:$0xff]  ;;  %v3170_v10 = vld [vmem:[#allocation14 + $0x80] sm:$0xff]  ;;  %v3171_v7 = vld [vmem:[#allocation14 + $0x88] sm:$0xff] }
 0x35c   : > { %v7089_v49 = vadd.f32 %v3151_v23, %v3148_v15  ;;  %v3222_v50 = vperm.slane %v7077_v42, 4  ;;  %v3223_v28 = vperm.slane %v7080_v47, 4  ;;  %v3232_v6 = vperm.slane %v7077_v42, 3 }
 0x35d   : > { %v3220_v1 = vadd.f32 %v3216_v29, %v3210_v2  ;;  %v3221_v43 = vadd.f32 %v3217_v19, %v3211_v25  ;;  %v3233_v33 = vperm.slane %v7080_v47, 3  ;;  %v3242_v59 = vperm.slane %v7077_v42, 2 }
 0x35e   : > { %v3224_v8 = vmul.f32 %v3222_v50, %v3160_v12  ;;  %v3225_v20 = vmul.f32 %v3222_v50, %v3161_v61  ;;  %v3226_v23 = vmul.f32 %v3223_v28, %v3160_v12  ;;  %v3227_v18 = vmul.f32 %v3223_v28, %v3161_v61  ;;  %v7104_v28 = vld [vmem:[#allocation2 + $0x20] sm:$0xff] }
 0x35f   : > { %v3234_v17 = vmul.f32 %v3232_v6, %v3162_v13  ;;  %v3235_v4 = vmul.f32 %v3232_v6, %v3163_v38  ;;  %v3236_v48 = vmul.f32 %v3233_v33, %v3162_v13  ;;  %v3237_v16 = vmul.f32 %v3233_v33, %v3163_v38  ;;  %v3172_v13 = vld [vmem:[#allocation14 + $0x90] sm:$0xff] }
 0x360   : > { %v3228_v0 = vadd.f32 %v3224_v8, %v3218_v24  ;;  %v3229_v26 = vadd.f32 %v3225_v20, %v3219_v63  ;;  %v3230_v31 = vadd.f32 %v3226_v23, %v3220_v1  ;;  %v3231_v58 = vadd.f32 %v3227_v18, %v3221_v43  ;;  %v7101_v24 = vld [vmem:[#allocation2 + $0x8] sm:$0xff]  ;;  %v3174_v23 = vld [vmem:[#allocation14 + $0xa0] sm:$0xff]  ;;  %v3175_v18 = vld [vmem:[#allocation14 + $0xa8] sm:$0xff] }
 0x361   : > { %v3243_v22 = vperm.slane %v7080_v47, 2  ;;  %v3244_v3 = vmul.f32 %v3242_v59, %v3164_v62  ;;  %v3245_v56 = vmul.f32 %v3242_v59, %v3165_v60  ;;  %v3252_v27 = vperm.slane %v7077_v42, 1  ;;  %v3173_v1 = vld [vmem:[#allocation14 + $0x98] sm:$0xff] }
 0x362   : > { %v3238_v36 = vadd.f32 %v3234_v17, %v3228_v0  ;;  %v3239_v51 = vadd.f32 %v3235_v4, %v3229_v26  ;;  %v3240_v44 = vadd.f32 %v3236_v48, %v3230_v31  ;;  %v3241_v54 = vadd.f32 %v3237_v16, %v3231_v58  ;;  %v3176_v58 = vld [vmem:[#allocation14 + $0xb0] sm:$0xff] }
 0x363   : > { %v3246_v40 = vmul.f32 %v3243_v22, %v3164_v62  ;;  %v3247_v35 = vmul.f32 %v3243_v22, %v3165_v60  ;;  %v3253_v34 = vperm.slane %v7080_v47, 1  ;;  %v3254_v5 = vmul.f32 %v3252_v27, %v3166_v55 }
 0x364   : > { %v3248_v52 = vadd.f32 %v3244_v3, %v3238_v36  ;;  %v3249_v37 = vadd.f32 %v3245_v56, %v3239_v51  ;;  %v3255_v53 = vmul.f32 %v3252_v27, %v3167_v46  ;;  %v3262_v41 = vperm.slane %v7077_v42, 0  ;;  %v3177_v27 = vld [vmem:[#allocation14 + $0xb8] sm:$0xff] }
 0x365   : > { %v3250_v32 = vadd.f32 %v3246_v40, %v3240_v44  ;;  %v3251_v21 = vadd.f32 %v3247_v35, %v3241_v54  ;;  %v3256_v57 = vmul.f32 %v3253_v34, %v3166_v55  ;;  %v3257_v39 = vmul.f32 %v3253_v34, %v3167_v46 }
 0x366   : > { %v3258_v15 = vadd.f32 %v3254_v5, %v3248_v52  ;;  %v3259_v2 = vadd.f32 %v3255_v53, %v3249_v37  ;;  %v3263_v25 = vperm.slane %v7080_v47, 0  ;;  %v3264_v12 = vmul.f32 %v3262_v41, %v3168_v9  ;;  %v3178_v5 = vld [vmem:[#allocation14 + $0xc0] sm:$0xff] }
 0x367   : > { %v3260_v61 = vadd.f32 %v3256_v57, %v3250_v32  ;;  %v3261_v29 = vadd.f32 %v3257_v39, %v3251_v21  ;;  %v3265_v19 = vmul.f32 %v3262_v41, %v3169_v11  ;;  %v3272_v63 = vperm.slane %v7101_v24, 7 }
 0x368   : > { %v3266_v42 = vmul.f32 %v3263_v25, %v3168_v9  ;;  %v3267_v38 = vmul.f32 %v3263_v25, %v3169_v11  ;;  %v3268_v50 = vadd.f32 %v3264_v12, %v3258_v15  ;;  %v3273_v6 = vperm.slane %v7104_v28, 7  ;;  %v3179_v11 = vld [vmem:[#allocation14 + $0xc8] sm:$0xff]  ;;  %v3181_v12 = vld [vmem:[#allocation14 + $0xd8] sm:$0xff] }
 0x369   : > { %v3269_v43 = vadd.f32 %v3265_v19, %v3259_v2  ;;  %v3274_v33 = vmul.f32 %v3272_v63, %v3170_v10  ;;  %v3275_v47 = vmul.f32 %v3272_v63, %v3171_v7  ;;  %v3282_v59 = vperm.slane %v7101_v24, 6 }
 0x36a   : > { %v3270_v62 = vadd.f32 %v3266_v42, %v3260_v61  ;;  %v3271_v60 = vadd.f32 %v3267_v38, %v3261_v29  ;;  %v3276_v8 = vmul.f32 %v3273_v6, %v3170_v10  ;;  %v3277_v20 = vmul.f32 %v3273_v6, %v3171_v7  ;;  %v3180_v10 = vld [vmem:[#allocation14 + $0xd0] sm:$0xff]  ;;  %v3182_v6 = vld [vmem:[#allocation14 + $0xe0] sm:$0xff] }
 0x36b   : > { %v3278_v17 = vadd.f32 %v3274_v33, %v3268_v50  ;;  %v3279_v4 = vadd.f32 %v3275_v47, %v3269_v43  ;;  %v3283_v48 = vperm.slane %v7104_v28, 6  ;;  %v3284_v16 = vmul.f32 %v3282_v59, %v3172_v13 }
 0x36c   : > { %v3280_v55 = vadd.f32 %v3276_v8, %v3270_v62  ;;  %v3281_v0 = vadd.f32 %v3277_v20, %v3271_v60  ;;  %v3285_v26 = vmul.f32 %v3282_v59, %v3173_v1  ;;  %v3292_v31 = vperm.slane %v7101_v24, 5 }
 0x36d   : > { %v3286_v46 = vmul.f32 %v3283_v48, %v3172_v13  ;;  %v3287_v22 = vmul.f32 %v3283_v48, %v3173_v1  ;;  %v3288_v3 = vadd.f32 %v3284_v16, %v3278_v17  ;;  %v3293_v56 = vperm.slane %v7104_v28, 5  ;;  %v3183_v1 = vld [vmem:[#allocation14 + $0xe8] sm:$0xff]  ;;  %v3185_v16 = vld [vmem:[#allocation14 + $0xf8] sm:$0xff] }
 0x36e   : > { %v3289_v36 = vadd.f32 %v3285_v26, %v3279_v4  ;;  %v3294_v51 = vmul.f32 %v3292_v31, %v3174_v23  ;;  %v3295_v44 = vmul.f32 %v3292_v31, %v3175_v18  ;;  %v3302_v54 = vperm.slane %v7101_v24, 4 }
 0x36f   : > { %v3290_v9 = vadd.f32 %v3286_v46, %v3280_v55  ;;  %v3291_v40 = vadd.f32 %v3287_v22, %v3281_v0  ;;  %v3296_v35 = vmul.f32 %v3293_v56, %v3174_v23  ;;  %v3297_v34 = vmul.f32 %v3293_v56, %v3175_v18  ;;  %v3184_v23 = vld [vmem:[#allocation14 + $0xf0] sm:$0xff] }
 0x370   : > { %v3298_v52 = vadd.f32 %v3294_v51, %v3288_v3  ;;  %v3299_v37 = vadd.f32 %v3295_v44, %v3289_v36  ;;  %v3303_v53 = vperm.slane %v7104_v28, 4  ;;  %v3304_v41 = vmul.f32 %v3302_v54, %v3176_v58 }
 0x371   : > { %v3300_v32 = vadd.f32 %v3296_v35, %v3290_v9  ;;  %v3301_v21 = vadd.f32 %v3297_v34, %v3291_v40  ;;  %v3305_v57 = vmul.f32 %v3302_v54, %v3177_v27  ;;  %v3312_v39 = vperm.slane %v7101_v24, 3 }
 0x372   : > { %v3306_v7 = vmul.f32 %v3303_v53, %v3176_v58  ;;  %v3307_v15 = vmul.f32 %v3303_v53, %v3177_v27  ;;  %v3308_v2 = vadd.f32 %v3304_v41, %v3298_v52  ;;  %v3313_v25 = vperm.slane %v7104_v28, 3 }
 0x373   : > { %v3309_v61 = vadd.f32 %v3305_v57, %v3299_v37  ;;  %v3314_v29 = vmul.f32 %v3312_v39, %v3178_v5  ;;  %v3315_v19 = vmul.f32 %v3312_v39, %v3179_v11  ;;  %v3322_v63 = vperm.slane %v7101_v24, 2 }
 0x374   : > { %v3310_v13 = vadd.f32 %v3306_v7, %v3300_v32  ;;  %v3311_v42 = vadd.f32 %v3307_v15, %v3301_v21  ;;  %v3316_v38 = vmul.f32 %v3313_v25, %v3178_v5  ;;  %v3317_v50 = vmul.f32 %v3313_v25, %v3179_v11 }
 0x375   : > { %v3318_v43 = vadd.f32 %v3314_v29, %v3308_v2  ;;  %v3319_v33 = vadd.f32 %v3315_v19, %v3309_v61  ;;  %v3323_v47 = vperm.slane %v7104_v28, 2  ;;  %v3324_v59 = vmul.f32 %v3322_v63, %v3180_v10 }
 0x376   : > { %v3320_v62 = vadd.f32 %v3316_v38, %v3310_v13  ;;  %v3321_v60 = vadd.f32 %v3317_v50, %v3311_v42  ;;  %v3325_v8 = vmul.f32 %v3322_v63, %v3181_v12  ;;  %v3332_v20 = vperm.slane %v7101_v24, 1 }
 0x377   : > { %v3326_v18 = vmul.f32 %v3323_v47, %v3180_v10  ;;  %v3327_v17 = vmul.f32 %v3323_v47, %v3181_v12  ;;  %v3328_v4 = vadd.f32 %v3324_v59, %v3318_v43  ;;  %v3333_v48 = vperm.slane %v7104_v28, 1 }
 0x378   : > { %v3329_v55 = vadd.f32 %v3325_v8, %v3319_v33  ;;  %v3334_v0 = vmul.f32 %v3332_v20, %v3182_v6  ;;  %v3335_v26 = vmul.f32 %v3332_v20, %v3183_v1  ;;  %v3342_v31 = vperm.slane %v7101_v24, 0 }
 0x379   : > { %v3330_v58 = vadd.f32 %v3326_v18, %v3320_v62  ;;  %v3331_v46 = vadd.f32 %v3327_v17, %v3321_v60  ;;  %v3336_v22 = vmul.f32 %v3333_v48, %v3182_v6  ;;  %v3337_v3 = vmul.f32 %v3333_v48, %v3183_v1 }
 0x37a   : > { %v3338_v56 = vadd.f32 %v3334_v0, %v3328_v4  ;;  %v3339_v27 = vadd.f32 %v3335_v26, %v3329_v55  ;;  %v3343_v36 = vperm.slane %v7104_v28, 0  ;;  %v3344_v51 = vmul.f32 %v3342_v31, %v3184_v23 }
 0x37b   : > { %v3340_v44 = vadd.f32 %v3336_v22, %v3330_v58  ;;  %v3341_v54 = vadd.f32 %v3337_v3, %v3331_v46  ;;  %v3345_v9 = vmul.f32 %v3342_v31, %v3185_v16 }
 0x37c   : > { %v3346_v40 = vmul.f32 %v3343_v36, %v3184_v23  ;;  %v3347_v35 = vmul.f32 %v3343_v36, %v3185_v16  ;;  %v3348_v34 = vadd.f32 %v3344_v51, %v3338_v56 }
 0x37d   : > { %v3349_v5 = vadd.f32 %v3345_v9, %v3339_v27  ;;  %3359 = sbr.rel (%p4000_p8) target bundleno = 902 (0x386), region = 116 }
 0x37e   : > { %v3350_v11 = vadd.f32 %v3346_v40, %v3340_v44  ;;  %v3351_v52 = vadd.f32 %v3347_v35, %v3341_v54  ;;  %3352 = vst [vmem:[#allocation4 + $0x10] sm:$0xff] %v3348_v34 }
 0x37f   : > { %3353 = vst [vmem:[#allocation4] sm:$0xff] %v3349_v5 }
 0x380   : > { %3354 = vst [vmem:[#allocation4 + $0x18] sm:$0xff] %v3350_v11 }
 0x381   : > { %3355 = vst [vmem:[#allocation4 + $0x8] sm:$0xff] %v3351_v52 }
 0x382   : > { %3360 = vst [vmem:[%s5150_s25] sm:$0xff] %v3348_v34 }
 0x383   : > { %3361 = vst [vmem:[%s5150_s25 + $0x8] sm:$0xff] %v3349_v5 }
 0x384   : > { %3362 = vst [vmem:[%s5150_s25 + $0x10] sm:$0xff] %v3350_v11 }
 0x385   : > { %3363 = vst [vmem:[%s5150_s25 + $0x18] sm:$0xff] %v3351_v52 }
 0x386 PF: > { %v4068_v24 = vld [vmem:[#allocation17 + $0x38] sm:$0xff]  ;;  %v4067_v28 = vld [vmem:[#allocation17 + $0x30] sm:$0xff]  ;;  %s7571_s4 = sld [smem:[#allocation62_spill]]  ;;  %v4066_v13 = vld [vmem:[#allocation17 + $0x28] sm:$0xff]  ;;  %s3683_s9 = scalar_lea.sflag [#allocation7], %s5056_s27 }
 0x387   : > { %3651 = vmatpush.bf16.msra.mxu1 %v4068_v24  ;;  %4080 = vmatpush.bf16.msra.mxu3 %v4068_v24  ;;  %v3365_v53 = vld [vmem:[#allocation3 + $0x5] sm:$0xff]  ;;  %v3366_v41 = vld [vmem:[#allocation3 + $0xd] sm:$0xff]  ;;  %v3367_v6 = vld [vmem:[#allocation3 + $0x1d] sm:$0xff]  ;;  %s7572_s20 = sld [smem:[#allocation63_spill]]  ;;  %s7234_s10 = scalar_lea.sflag [#allocation21], %s654_s13 }
 0x388   : > { %v3374_v21 = vld [vmem:[#allocation3 + $0x6] sm:$0xff]  ;;  %v3375_v10 = vld [vmem:[#allocation3 + $0xe] sm:$0xff]  ;;  %v3376_v62 = vld [vmem:[#allocation3 + $0x1e] sm:$0xff]  ;;  %s7593_s3 = sld [smem:[#allocation64_spill]] }
 0x389   : > { %v3387_v7 = vld [vmem:[#allocation3 + $0x7] sm:$0xff]  ;;  %v3388_v15 = vld [vmem:[#allocation3 + $0xf] sm:$0xff]  ;;  %v3389_v8 = vld [vmem:[#allocation3 + $0x1f] sm:$0xff] }
 0x38a   : > { %v3400_v19 = vld [vmem:[#allocation3 + $0x8] sm:$0xff]  ;;  %v3401_v63 = vld [vmem:[#allocation3 + $0x10] sm:$0xff]  ;;  %v3402_v48 = vld [vmem:[#allocation3 + $0x20] sm:$0xff] }
 0x38b   : > { %3652 = vmatpush.bf16.msra.mxu1 %v4067_v28  ;;  %4081 = vmatpush.bf16.msra.mxu3 %v4067_v28  ;;  %v3368_v1 = vld [vmem:[#allocation3 + $0x25] sm:$0xff]  ;;  %v4065_v46 = vld [vmem:[#allocation17 + $0x20] sm:$0xff] }
 0x38c   : > { %v3364_v37 = vld [vmem:[%s7571_s4] sm:$0xf]  ;;  %v3377_v60 = vld [vmem:[#allocation3 + $0x26] sm:$0xff] }
 0x38d   : > { %v3369_v32 = vperm.slane %v3364_v37, 0  ;;  %v3378_v57 = vperm.slane %v3364_v37, 1  ;;  %v3391_v39 = vperm.slane %v3364_v37, 2  ;;  %v3404_v2 = vperm.slane %v3364_v37, 3  ;;  %v3390_v17 = vld [vmem:[#allocation3 + $0x27] sm:$0xff] }
 0x38e   : > { %v3403_v16 = vld [vmem:[#allocation3 + $0x28] sm:$0xff]  ;;  %v4348_v26 = vld [vmem:[%s7572_s20] ss:$0 sm:$0xff] }
 0x38f   : > { %v3370_v25 = vmul.f32 %v3369_v32, %v3365_v53  ;;  %v3371_v12 = vmul.f32 %v3369_v32, %v3366_v41  ;;  %v3379_v61 = vmul.f32 %v3378_v57, %v3374_v21  ;;  %v3380_v29 = vmul.f32 %v3378_v57, %v3375_v10  ;;  %3653 = vmatpush.bf16.msra.mxu1 %v4066_v13  ;;  %v4064_v40 = vld [vmem:[#allocation17 + $0x18] sm:$0xff]  ;;  %v4063_v28 = vld [vmem:[#allocation17 + $0x10] sm:$0xff]  ;;  %v4062_v41 = vld [vmem:[#allocation17 + $0x8] sm:$0xff] }
 0x390   : > { %v3392_v42 = vmul.f32 %v3391_v39, %v3387_v7  ;;  %v3393_v38 = vmul.f32 %v3391_v39, %v3388_v15  ;;  %v3405_v50 = vmul.f32 %v3404_v2, %v3400_v19  ;;  %v3406_v47 = vmul.f32 %v3404_v2, %v3401_v63  ;;  %4082 = vmatpush.bf16.msra.mxu3 %v4066_v13  ;;  %v4061_v7 = vld [vmem:[#allocation17] sm:$0xff] }
 0x391   : > { %v3383_v43 = vadd.f32 %v3379_v61, %v3370_v25  ;;  %v3384_v33 = vadd.f32 %v3380_v29, %v3371_v12  ;;  %v3372_v59 = vmul.f32 %v3369_v32, %v3367_v6  ;;  %v3373_v20 = vmul.f32 %v3369_v32, %v3368_v1 }
 0x392   : > { %v3381_v23 = vmul.f32 %v3378_v57, %v3376_v62  ;;  %v3382_v18 = vmul.f32 %v3378_v57, %v3377_v60  ;;  %v3394_v4 = vmul.f32 %v3391_v39, %v3389_v8  ;;  %v3395_v31 = vmul.f32 %v3391_v39, %v3390_v17 }
 0x393   : > { %v3396_v55 = vadd.f32 %v3392_v42, %v3383_v43  ;;  %v3397_v0 = vadd.f32 %v3393_v38, %v3384_v33  ;;  %v3407_v58 = vmul.f32 %v3404_v2, %v3402_v48  ;;  %v3408_v56 = vmul.f32 %v3404_v2, %v3403_v16  ;;  %3654 = vmatpush.bf16.msra.mxu1 %v4065_v46 }
 0x394   : > { %v3385_v22 = vadd.f32 %v3381_v23, %v3372_v59  ;;  %v3386_v3 = vadd.f32 %v3382_v18, %v3373_v20  ;;  %4083 = vmatpush.bf16.msra.mxu3 %v4065_v46 }
 0x395   : > { %v3409_v27 = vadd.f32 %v3405_v50, %v3396_v55  ;;  %v3410_v36 = vadd.f32 %v3406_v47, %v3397_v0 }
 0x396   : > { %v3398_v51 = vadd.f32 %v3394_v4, %v3385_v22  ;;  %v3399_v44 = vadd.f32 %v3395_v31, %v3386_v3 }
 0x397   : > { %v7132_v54 = vadd.f32 %v4348_v26, %v3409_v27  ;;  %v7134_v9 = vadd.f32 %v4348_v26, %v3410_v36  ;;  %3655 = vmatpush.bf16.msra.mxu1 %v4064_v40 }
 0x398   : > { %v3411_v35 = vadd.f32 %v3407_v58, %v3398_v51  ;;  %v3412_v34 = vadd.f32 %v3408_v56, %v3399_v44  ;;  %4084 = vmatpush.bf16.msra.mxu3 %v4064_v40 }
 0x399   : > { %v4001_v5 = vmul.f32 -1.442695, %v7132_v54  ;;  %v4002_v11 = vmul.f32 -1.442695, %v7134_v9 }
 0x39a   : > { %v7138_v52 = vadd.f32 %v4348_v26, %v3411_v35  ;;  %v7140_v24 = vadd.f32 %v4348_v26, %v3412_v34 }
 0x39b   : > { %4350 = vpow2.f32 %v4001_v5  ;;  %3656 = vmatpush.bf16.msra.mxu1 %v4063_v28 }
 0x39c   : > { %4352 = vpow2.f32 %v4002_v11  ;;  %v4003_v37 = vmul.f32 -1.442695, %v7138_v52  ;;  %v4004_v53 = vmul.f32 -1.442695, %v7140_v24  ;;  %4085 = vmatpush.bf16.msra.mxu3 %v4063_v28 }
 0x39e   : > { %4354 = vpow2.f32 %v4003_v37 }
 0x39f   : > { %4356 = vpow2.f32 %v4004_v53  ;;  %3657 = vmatpush.bf16.msra.mxu1 %v4062_v41 }
 0x3a0   : > { %4086 = vmatpush.bf16.msra.mxu3 %v4062_v41 }
 0x3a1   : > { %v4351_v32 = vpop.eup %4350 }
 0x3a2   : > { %v4353_v21 = vpop.eup %4352  ;;  %v3433_v57 = vadd.f32 1.0, %v4351_v32 }
 0x3a3   : > { %v3434_v39 = vadd.f32 1.0, %v4353_v21  ;;  %3658 = vmatpush.bf16.msra.mxu1 %v4061_v7 }
 0x3a4   : > { %v4355_v10 = vpop.eup %4354  ;;  %4358 = vrcp.f32 %v3433_v57  ;;  %4087 = vmatpush.bf16.msra.mxu3 %v4061_v7  ;;  %v3446_v12 = vand.u32 2147483647, %v3433_v57  ;;  %v3448_v61 = vand.u32 2147483648, %v3433_v57  ;;  %vm3442_vm3 = vweird.f32 %v3433_v57 }
 0x3a5   : > { %v4357_v15 = vpop.eup %4356  ;;  %4360 = vrcp.f32 %v3434_v39  ;;  %v3435_v2 = vadd.f32 1.0, %v4355_v10  ;;  %v3461_v19 = vand.u32 2147483647, %v3434_v39  ;;  %v3463_v63 = vand.u32 2147483648, %v3434_v39 }
 0x3a6   : > { %v3436_v25 = vadd.f32 1.0, %v4357_v15  ;;  %vm3457_vm4 = vweird.f32 %v3434_v39  ;;  %vm7144_vm6 = vcmp.eq.f32.partialorder %v3446_v12, 8.507059e+37  ;;  %v3449_v1 = vor.u32 1.1754944e-38, %v3448_v61 }
 0x3a7   : > { %4362 = vrcp.f32 %v3435_v2  ;;  %vm7148_vm8 = vcmp.eq.f32.partialorder %v3461_v19, 8.507059e+37  ;;  %v3464_v59 = vor.u32 1.1754944e-38, %v3463_v63  ;;  %vm3472_vm9 = vweird.f32 %v3435_v2 }
 0x3a8   : > { %4364 = vrcp.f32 %v3436_v25  ;;  %v3476_v20 = vand.u32 2147483647, %v3435_v2  ;;  %v3478_v17 = vand.u32 2147483648, %v3435_v2  ;;  %vm3487_vm11 = vweird.f32 %v3436_v25 }
 0x3a9   : > { %v3493_v0 = vand.u32 2147483648, %v3436_v25  ;;  %v3491_v58 = vand.u32 2147483647, %v3436_v25 }
 0x3aa   : > { %v4359_v29 = vpop.eup %4358  ;;  %vm7164_vm15 = vcmp.eq.f32.partialorder %v3476_v20, 8.507059e+37  ;;  %v3479_v36 = vor.u32 1.1754944e-38, %v3478_v17 }
 0x3ab   : > { %v4361_v13 = vpop.eup %4360  ;;  %v3438_v42 = vmul.f32 %v4359_v29, %v3433_v57  ;;  %vm3443_vm5 = vweird.f32 %v4359_v29  ;;  %v3494_v34 = vor.u32 1.1754944e-38, %v3493_v0  ;;  %vm3492_vm2 = vcmp.eq.f32.partialorder %v3491_v58, 8.507059e+37 }
 0x3ac   : > { %v3453_v38 = vmul.f32 %v4361_v13, %v3434_v39  ;;  %vm3458_vm7 = vweird.f32 %v4361_v13  ;;  %vm7153_vm10 = vmor %vm3442_vm3, %vm3443_vm5 }
 0x3ad   : > { %v3439_v50 = vsub.f32 1.0, %v3438_v42  ;;  %v4363_v43 = vpop.eup %4362  ;;  %vm7158_vm12 = vmor %vm3457_vm4, %vm3458_vm7 }
 0x3ae   : > { %v3454_v33 = vsub.f32 1.0, %v3453_v38  ;;  %v4365_v62 = vpop.eup %4364  ;;  %v3468_v8 = vmul.f32 %v4363_v43, %v3435_v2  ;;  %vm3473_vm13 = vweird.f32 %v4363_v43 }
 0x3af   : > { %v3440_v60 = vmul.f32 %v4359_v29, %v3439_v50  ;;  %v3483_v4 = vmul.f32 %v4365_v62, %v3436_v25  ;;  %vm3488_vm14 = vweird.f32 %v4365_v62  ;;  %vm3474_vm0 = vmor %vm3472_vm9, %vm3473_vm13 }
 0x3b0   : > { %v3455_v18 = vmul.f32 %v4361_v13, %v3454_v33  ;;  %v3469_v55 = vsub.f32 1.0, %v3468_v8  ;;  %vm3489_vm1 = vmor %vm3487_vm11, %vm3488_vm14 }
 0x3b1   : > { %v3441_v48 = vadd.f32 %v4359_v29, %v3440_v60  ;;  %v3484_v31 = vsub.f32 1.0, %v3483_v4 }
 0x3b2   : > { %v3456_v26 = vadd.f32 %v4361_v13, %v3455_v18  ;;  %v3470_v22 = vmul.f32 %v4363_v43, %v3469_v55 }
 0x3b3   : > { %v3445_v46 = vsel %vm7153_vm10, %v4359_v29, %v3441_v48  ;;  %v3485_v51 = vmul.f32 %v4365_v62, %v3484_v31 }
 0x3b4   : > { %v3450_v56 = vsel %vm7144_vm6, %v3449_v1, %v3445_v46  ;;  %v3460_v27 = vsel %vm7158_vm12, %v4361_v13, %v3456_v26  ;;  %v3471_v35 = vadd.f32 %v4363_v43, %v3470_v22 }
 0x3b5   : > { %v3465_v44 = vsel %vm7148_vm8, %v3464_v59, %v3460_v27  ;;  %v3497_v40 = vmul.f32 %v3450_v56, %v7132_v54  ;;  %v3486_v11 = vadd.f32 %v4365_v62, %v3485_v51 }
 0x3b6   : > { %v3498_v5 = vmul.f32 %v3465_v44, %v7134_v9  ;;  %v3475_v37 = vsel %vm3474_vm0, %v4363_v43, %v3471_v35 }
 0x3b7   : > { %v4005_v28 = vmul.f32 -1.442695, %v3497_v40  ;;  %v3480_v41 = vsel %vm7164_vm15, %v3479_v36, %v3475_v37  ;;  %v3490_v32 = vsel %vm3489_vm1, %v4365_v62, %v3486_v11 }
 0x3b8   : > { %v4006_v53 = vmul.f32 -1.442695, %v3498_v5  ;;  %v3495_v21 = vsel %vm3492_vm2, %v3494_v34, %v3490_v32  ;;  %v3499_v57 = vmul.f32 %v3480_v41, %v7138_v52 }
 0x3b9   : > { %4366 = vpow2.f32 %v4005_v28  ;;  %v3500_v54 = vmul.f32 %v3495_v21, %v7140_v24 }
 0x3ba   : > { %4368 = vpow2.f32 %v4006_v53  ;;  %v4007_v39 = vmul.f32 -1.442695, %v3499_v57 }
 0x3bb   : > { %v4008_v10 = vmul.f32 -1.442695, %v3500_v54 }
 0x3bc   : > { %4370 = vpow2.f32 %v4007_v39 }
 0x3bd   : > { %4372 = vpow2.f32 %v4008_v10  ;;  %v3670_v10 = vld [vmem:[%s5062_s29] sm:$0xff] }
 0x3bf   : > { %v4367_v9 = vpop.eup %4366 }
 0x3c0   : > { %v4369_v7 = vpop.eup %4368  ;;  %v3513_v15 = vadd.f32 1.0, %v4367_v9 }
 0x3c1   : > { %v3514_v2 = vadd.f32 1.0, %v4369_v7 }
 0x3c2   : > { %4374 = vrcp.f32 %v3513_v15  ;;  %v4371_v25 = vpop.eup %4370  ;;  %v3526_v19 = vand.u32 2147483647, %v3513_v15  ;;  %v3528_v52 = vand.u32 2147483648, %v3513_v15  ;;  %vm3522_vm3 = vweird.f32 %v3513_v15 }
 0x3c3   : > { %4376 = vrcp.f32 %v3514_v2  ;;  %v4373_v12 = vpop.eup %4372  ;;  %v3515_v61 = vadd.f32 1.0, %v4371_v25  ;;  %v3541_v24 = vand.u32 2147483647, %v3514_v2  ;;  %v3543_v13 = vand.u32 2147483648, %v3514_v2  ;;  %v3672_v25 = vld [vmem:[%s5062_s29 + $0x10] sm:$0xff] }
 0x3c4   : > { %v3516_v29 = vadd.f32 1.0, %v4373_v12  ;;  %vm3537_vm4 = vweird.f32 %v3514_v2  ;;  %vm7182_vm6 = vcmp.eq.f32.partialorder %v3526_v19, 8.507059e+37  ;;  %v3529_v43 = vor.u32 1.1754944e-38, %v3528_v52  ;;  %v3673_v52 = vld [vmem:[%s5062_s29 + $0x18] sm:$0xff] }
 0x3c5   : > { %4378 = vrcp.f32 %v3515_v61  ;;  %vm7186_vm8 = vcmp.eq.f32.partialorder %v3541_v24, 8.507059e+37  ;;  %v3544_v62 = vor.u32 1.1754944e-38, %v3543_v13  ;;  %vm3552_vm9 = vweird.f32 %v3515_v61 }
 0x3c6   : > { %4380 = vrcp.f32 %v3516_v29  ;;  %v3556_v23 = vand.u32 2147483647, %v3515_v61  ;;  %v3558_v4 = vand.u32 2147483648, %v3515_v61  ;;  %vm3567_vm11 = vweird.f32 %v3516_v29 }
 0x3c7   : > { %v3573_v26 = vand.u32 2147483648, %v3516_v29  ;;  %v3571_v46 = vand.u32 2147483647, %v3516_v29 }
 0x3c8   : > { %v4375_v63 = vpop.eup %4374  ;;  %vm7202_vm15 = vcmp.eq.f32.partialorder %v3556_v23, 8.507059e+37  ;;  %v3559_v51 = vor.u32 1.1754944e-38, %v3558_v4 }
 0x3c9   : > { %v4377_v42 = vpop.eup %4376  ;;  %v3518_v38 = vmul.f32 %v4375_v63, %v3513_v15  ;;  %vm3523_vm5 = vweird.f32 %v4375_v63  ;;  %v3574_v5 = vor.u32 1.1754944e-38, %v3573_v26  ;;  %vm3572_vm2 = vcmp.eq.f32.partialorder %v3571_v46, 8.507059e+37  ;;  %v3671_v15 = vld [vmem:[%s5062_s29 + $0x8] sm:$0xff] }
 0x3ca   : > { %v3533_v50 = vmul.f32 %v4377_v42, %v3514_v2  ;;  %vm3538_vm7 = vweird.f32 %v4377_v42  ;;  %vm7191_vm10 = vmor %vm3522_vm3, %vm3523_vm5 }
 0x3cb   : > { %v3519_v6 = vsub.f32 1.0, %v3518_v38  ;;  %v4379_v33 = vpop.eup %4378  ;;  %vm7196_vm12 = vmor %vm3537_vm4, %vm3538_vm7 }
 0x3cc   : > { %v3534_v47 = vsub.f32 1.0, %v3533_v50  ;;  %v4381_v60 = vpop.eup %4380  ;;  %v3548_v20 = vmul.f32 %v4379_v33, %v3515_v61  ;;  %vm3553_vm13 = vweird.f32 %v4379_v33 }
 0x3cd   : > { %v3520_v8 = vmul.f32 %v4375_v63, %v3519_v6  ;;  %v3563_v48 = vmul.f32 %v4381_v60, %v3516_v29  ;;  %vm3568_vm14 = vweird.f32 %v4381_v60  ;;  %vm3554_vm0 = vmor %vm3552_vm9, %vm3553_vm13 }
 0x3ce   : > { %v3535_v17 = vmul.f32 %v4377_v42, %v3534_v47  ;;  %v3549_v0 = vsub.f32 1.0, %v3548_v20  ;;  %vm3569_vm1 = vmor %vm3567_vm11, %vm3568_vm14 }
 0x3cf   : > { %v3521_v16 = vadd.f32 %v4375_v63, %v3520_v8  ;;  %v3564_v58 = vsub.f32 1.0, %v3563_v48 }
 0x3d0   : > { %v3536_v31 = vadd.f32 %v4377_v42, %v3535_v17  ;;  %v3550_v3 = vmul.f32 %v4379_v33, %v3549_v0 }
 0x3d1   : > { %v3525_v22 = vsel %vm7191_vm10, %v4375_v63, %v3521_v16  ;;  %v3565_v44 = vmul.f32 %v4381_v60, %v3564_v58 }
 0x3d2   : > { %v3530_v27 = vsel %vm7182_vm6, %v3529_v43, %v3525_v22  ;;  %v3540_v36 = vsel %vm7196_vm12, %v4377_v42, %v3536_v31  ;;  %v3551_v34 = vadd.f32 %v4379_v33, %v3550_v3 }
 0x3d3   : > { %v3545_v40 = vsel %vm7186_vm8, %v3544_v62, %v3540_v36  ;;  %v3577_v35 = vmul.f32 %v3530_v27, %v7053_v14  ;;  %v3566_v28 = vadd.f32 %v4381_v60, %v3565_v44 }
 0x3d4   : > { %v3578_v11 = vmul.f32 %v3545_v40, %v7087_v45  ;;  %v3555_v37 = vsel %vm3554_vm0, %v4379_v33, %v3551_v34  ;;  %v4349_v45 = vld [vmem:[%s7593_s3] ss:$0 sm:$0xff] }
 0x3d5   : > { %v3560_v41 = vsel %vm7202_vm15, %v3559_v51, %v3555_v37  ;;  %v3570_v32 = vsel %vm3569_vm1, %v4381_v60, %v3566_v28 }
 0x3d6   : > { %v3581_v53 = vpack.c.bf16 %v3578_v11, %v3577_v35  ;;  %v3575_v21 = vsel %vm3572_vm2, %v3574_v5, %v3570_v32  ;;  %v3579_v14 = vmul.f32 %v3560_v41, %v7055_v30 }
 0x3d7   : > { %v3580_v57 = vmul.f32 %v3575_v21, %v7089_v49 }
 0x3d8   : > { %3659 = vmatmul.bf16.vlgmr.msra.gmra.mxu1 %v3581_v53 }
 0x3d9   : > { %v3582_v54 = vpack.c.bf16 %v3580_v57, %v3579_v14 }
 0x3db   : > { %3664 = vmatmul.bf16.vlgmr.msra.gmra.mxu3 %v3582_v54 }
 0x455   : > { %v3660_v39 = vpop.f32.mrf.mxu1 }
 0x456   : > { %v3661_v9 = vadd.f32 %v4349_v45, %v3660_v39 }
 0x458   : > { %v3674_v7 = vadd.f32 %v3670_v10, %v3661_v9 }
 0x45a   : > { %3678 = vst [vmem:[%s5147_s28] sm:$0xff] %v3674_v7 }
 0x45d   : > { %v3662_v30 = vpop.f32.mrf.mxu1 }
 0x45e   : > { %v3663_v49 = vadd.f32 %v4349_v45, %v3662_v30  ;;  %v3665_v2 = vpop.f32.mrf.mxu3 }
 0x45f   : > { %v3666_v12 = vadd.f32 %v4349_v45, %v3665_v2 }
 0x460   : > { %v3675_v61 = vadd.f32 %v3671_v15, %v3663_v49 }
 0x461   : > { %v3676_v29 = vadd.f32 %v3672_v25, %v3666_v12 }
 0x462   : > { %3679 = vst [vmem:[%s5147_s28 + $0x8] sm:$0xff] %v3675_v61 }
 0x463   : > { %3680 = vst [vmem:[%s5147_s28 + $0x10] sm:$0xff] %v3676_v29 }
 0x466   : > { %v3667_v19 = vpop.f32.mrf.mxu3 }
 0x467   : > { %v3668_v63 = vadd.f32 %v4349_v45, %v3667_v19 }
 0x469   : > { %v3677_v24 = vadd.f32 %v3673_v52, %v3668_v63 }
 0x46b   : > { %3681 = vst [vmem:[%s5147_s28 + $0x18] sm:$0xff] %v3677_v24 }
 0x46c   : > { %s7594_s7 = sld [smem:[#allocation37_spill]]  ;;  %s3713_s2 = sshll.u32 %s5147_s28, 4  ;;  %s3714_s2 = int_to_ptr.vmem [resolvable:$true] %s3713_s2 }
 0x46d   : > { %s7595_s5 = sld [smem:[#allocation38_spill]]  ;;  %s4754_s20 = smov 256  }
 0x46e   : > { %s7596_s15 = sld [smem:[#allocation65_spill]]  ;;  %p7597_p11 = scmp.ne.s32.totalorder %s7450_s16, 0 }
 0x46f   : > { %s4755_s26 = smov 512   ;;  %s4756_s14 = smov 2  }
 0x470   : > { %4125 = sst [smem:[#allocation25]] (%p7597_p11), %s4754_s20  ;;  %s4757_s28 = smov 128  }
 0x471   : > { %4126 = sst [smem:[#allocation25 + $0x1]] (%p7597_p11), %s4755_s26  ;;  %s4758_s3 = smov 8  }
 0x472   : > { %s4044_s1 = sshll.u32 %s7594_s7, 1  ;;  %4127 = sst [smem:[#allocation25 + $0x2]] (%p7597_p11), %s4756_s14 }
 0x473   : > { %s4069_s24 = sshll.u32 %s7595_s5, 3  ;;  %4128 = sst [smem:[#allocation25 + $0x3]] (%p7597_p11), %s4757_s28 }
 0x474   : > { %s3700_s19 = sadd.s32 %s4069_s24, %s4044_s1  ;;  %4129 = sst [smem:[#allocation25 + $0x4]] (%p7597_p11), %s4757_s28 }
 0x475   : > { %s4046_s29 = sshll.u32 %s3700_s19, 3  ;;  %4130 = sst [smem:[#allocation25 + $0x5]] (%p7597_p11), %s4758_s3 }
 0x476   : > { %s3702_s13 = scalar_lea.hbm %s7596_s15, %s4046_s29  ;;  %s4759_s7 = smov [#allocation24]  }
 0x477   : > { %s3715_s12 = sshll.u32 %s3702_s13, 4  ;;  %s4760_s1 = smov 0   ;;  %s3716_s12 = int_to_ptr.hbm [resolvable:$true] %s3715_s12 }
 0x478   : > { %4131 = dma.general (%p7597_p11), %s3714_s2, 512, %s3716_s12, %s3683_s9, %s4759_s7, [#allocation25], %s4760_s1, 0  }
 0x479   : > { %s4071_s19 = sshll.u32 %s7595_s5, 5  ;;  %s3744_s29 = sshll.u32 %s5150_s25, 4  ;;  %s3745_s29 = int_to_ptr.vmem [resolvable:$true] %s3744_s29 }
 0x47a   : > { %s7599_s15 = sld [smem:[#allocation66_spill]] }
 0x480   : > { %s7600_s13 = smov %s7599_s15  ;;  %s3743_s20 = scalar_lea.hbm %s7599_s15, %s4071_s19 }
 0x481   : > { %s3746_s26 = sshll.u32 %s3743_s20, 4  ;;  %s4612_s2 = scalar_lea.hbm %s7600_s13, 64  ;;  %s3747_s26 = int_to_ptr.hbm [resolvable:$true] %s3746_s26 }
 0x482   : > { %s4606_s14 = sshra.s32 %s3747_s26, 4  ;;  %s4607_s14 = int_to_ptr.hbm [resolvable:$true] %s4606_s14 }
 0x483   : > { %s4608_s28 = scalar_lea.hbm %s4607_s14, 32  ;;  %p4613_p2 = scmp.lt.s32.totalorder %s4607_s14, %s7600_s13 }
 0x484   : > { %p4609_p12 = scmp.ne.s32.totalorder %s4607_s14, %s4608_s28  ;;  %p4614_p4 = scmp.lt.s32.totalorder %s4612_s2, %s4608_s28 }
 0x486   : > { %p4610_p13 = pnand %p4609_p12, %p4957_p1  ;;  %p4615_p7 = por %p4614_p4, %p4613_p2 }
 0x488   : > { %p4611_p0 = pneg %p4610_p13 }
 0x48a   : > { %p4616_p9 = pnand %p4615_p7, %p4611_p0 }
 0x48c   : > { %4619 = shalt.err (!%p4616_p9)
}
 0x48d   : > { %s4761_s12 = smov 128   ;;  %s4762_s3 = smov 8  }
 0x48e   : > { %4132 = dma.vmem_to_hbm [thread:$0]  (%p4957_p1), %s3745_s29, 512, %s3747_s26, %s7234_s10, %s4761_s12, %s4761_s12, %s4762_s3  }
 0x48f PF: > { %s7601_s7 = sld [smem:[#allocation36_spill]]  ;;  %p4178_p10 = scmp.ge.s32.totalorder %s4734_s23, 2 }
 0x490   : > { %s7602_s1 = sld [smem:[#allocation41_spill]] }
 0x495   : > { %s3761_s19 = sand.u32 1, %s7601_s7  }
 0x496   : > { %p7603_p3 = scmp.ne.s32.totalorder %s7602_s1, 0  ;;  %s3762_s4 = scalar_lea.sflag [#allocation7], %s3761_s19 }
 0x498   : > { %p4158_p6 = pnand %p4178_p10, %p7603_p3 }
 0x49a   : > { %p4159_p8 = pneg %p4158_p6 }
 0x49c   : > { %4685 = dma.done.wait (%p4159_p8), %s3762_s4, 512  }
 0x49d   : > { %4687 = vsyncadd (%p4159_p8), %s3762_s4, 4294966784  ;;  %s7604_s27 = sld [smem:[#allocation34_spill]]  ;;  %p4161_p11 = pnand %p4178_p10, %p4967_p5 }
 0x49f   : > { %p4162_p12 = pneg %p4161_p11 }
 0x4a3   : > { %s3771_s20 = sand.u32 1, %s7604_s27  }
 0x4a4   : > { %s3772_s24 = scalar_lea.sflag [#allocation21], %s3771_s20 }
 0x4a5   : > { %4689 = dma.done.wait (%p4162_p12), %s3772_s24, 512  }
 0x4a6   : > { %4691 = vsyncadd (%p4162_p12), %s3772_s24, 4294966784  ;;  %s38_s23 = sadd.s32 1, %s4734_s23   ;;  %s7606_s10 = sld [smem:[#allocation35_spill]] }
 0x4a7   : > { %p35_p1 = scmp.ge.s32.totalorder %s38_s23, 6   ;;  %s7607_s15 = sld [smem:[#allocation43_spill]] }
 0x4a8   : > { %s7608_s26 = sld [smem:[#allocation42_spill]]  ;;  %s7611_s29 = smov %s4698_s30 }
 0x4a9   : > { %s7609_s14 = sld [smem:[#allocation39_spill]]  ;;  %s7613_s16 = smov %s4710_s17 }
 0x4aa   : > { %s7610_s28 = sld [smem:[#allocation40_spill]]  ;;  %s7614_s17 = smov %s4714_s18 }
 0x4ab   : > { %s7616_s19 = smov %s4726_s21  ;;  %s7617_s20 = smov %s4730_s22 }
 0x4ac   : > { %s7612_s30 = smov %s7606_s10  ;;  %37 = sbr.rel (!%p35_p1) target bundleno = 27 (0x1b), region = 184 }
 0x4ae   : > { %s7615_s18 = smov %s7608_s26 }
 0x4af   : > { %s7618_s21 = smov %s7609_s14 }
 0x4b0   : > { %s7619_s22 = smov %s7610_s28 }
 0x4b1   :  { %3778 = vsyncpa [#allocation6], 1 }
 0x4b2   :  { %3780 = vsyncpa [#allocation6 + $0x1], 1 }
 0x4b3   :  { %3781 = vsyncpa [#allocation9], 1 }
 0x4b4   :  { %3782 = vsyncpa [#allocation12], 1 }
 0x4b5   :  { %3783 = vsyncpa [#allocation15], 1 }
 0x4b6   :  { %3784 = vsyncpa [#allocation18], 1 }
 0x4b7   :  { %3785 = vsyncpa [#allocation7], 1 }
 0x4b8   :  { %3787 = vsyncpa [#allocation7 + $0x1], 1 }
 0x4b9   :  { %3788 = vsyncpa [#allocation21], 1 }
 0x4ba   :  { %3790 = vsyncpa [#allocation21 + $0x1], 1 }

</bundles_post_ra>
